<compile_context>
chip_gen: v6e
topology: v6e:2x2x1
jax: 0.10.0
libtpu: 0.0.40
codegen_flags: <defaults>
</compile_context>

<pallas_src>
import jax
import jax.numpy as jnp
import numpy as np
from jax.experimental import pallas as pl
from jax.experimental.pallas import tpu as pltpu

NUM_GROUPS = 32
EPS = 1e-6
LANE = 128


def _silu(z):
    # z * sigmoid(z); sigmoid via tanh so it lands on the EUP (no VALU divide).
    return z * (0.5 * (jnp.tanh(0.5 * z) + 1.0))


def _make_kernel(*, C_in, C_out, L_true, L_pad, Bb, has_nin):
    n1 = (C_in // NUM_GROUPS) * L_true
    n2 = (C_out // NUM_GROUPS) * L_true
    padded = L_pad != L_true

    def kernel(x_ref, proj_ref,
               g1_ref, be1_ref, m1_ref, w1_ref, b1_ref,
               g2_ref, be2_ref, m2_ref, w2_ref, b2_ref,
               *rest):
        out_ref = rest[-1]
        if has_nin:
            ws_ref, bs_ref = rest[0], rest[1]

        # --- hoisted lane iota / masks (shared by both convs, all Bb elements) ---
        lane = jax.lax.broadcasted_iota(jnp.int32, (1, L_pad), 1)
        left_ok = lane >= 1                    # tap k=0 reads h[l-1]; zero at l=0
        right_ok = lane <= (L_true - 2)        # tap k=2 reads h[l+1]; zero at true edge
        valid = (lane < L_true) if padded else None

        def group_norm(h, M2, gamma, beta, n):
            # Per-(group) statistics; padded lanes masked out of the sums.
            hm = h if valid is None else jnp.where(valid, h, 0.0)
            s = jnp.sum(hm, axis=1, keepdims=True)            # (C, 1)
            ss = jnp.sum(hm * hm, axis=1, keepdims=True)      # (C, 1)
            cat = jnp.concatenate([s, ss], axis=0)            # (2C, 1)
            # single f32 group-aggregation matmul for both moments
            agg = jnp.dot(M2, cat, preferred_element_type=jnp.float32)
            C = h.shape[0]
            mean = agg[:C] / n
            msq = agg[C:] / n
            var = msq - mean * mean
            inv = jax.lax.rsqrt(var + EPS)
            return (h - mean) * (inv * gamma) + beta

        def conv3(h, wcat_ref, bias):
            # wcat_ref: (C_out, 3*C) = [w_tap0 | w_tap1 | w_tap2] along axis 1.
            mxu_dtype = wcat_ref.dtype
            hl = jnp.where(left_ok, pltpu.roll(h, shift=1, axis=1), 0.0)         # h[l-1]
            hr = jnp.where(right_ok, pltpu.roll(h, shift=L_pad - 1, axis=1), 0.0)  # h[l+1]
            stacked = jnp.concatenate([hl, h, hr], axis=0).astype(mxu_dtype)     # (3C, L_pad)
            return jnp.dot(wcat_ref[...], stacked,
                           preferred_element_type=jnp.float32) + bias

        g1 = g1_ref[...]; be1 = be1_ref[...]; m1 = m1_ref[...]; b1 = b1_ref[...]
        g2 = g2_ref[...]; be2 = be2_ref[...]; m2 = m2_ref[...]; b2 = b2_ref[...]

        # Static (unrolled) loop over the Bb batch elements of this grid step.
        for ib in range(Bb):
            x = x_ref[ib]                                      # (C_in, L_pad) f32
            h = _silu(group_norm(x, m1, g1, be1, n1))
            h = conv3(h, w1_ref, b1)                           # (C_out, L_pad)
            h = h + proj_ref[ib]                               # + temb_proj (C_out, 1)
            h = _silu(group_norm(h, m2, g2, be2, n2))
            # TODO(synk): Dropout(0.1) is identity (inference / eval mode).
            h = conv3(h, w2_ref, b2)
            if has_nin:
                xs = jnp.dot(ws_ref[...], x.astype(ws_ref.dtype),
                             preferred_element_type=jnp.float32) + bs_ref[...]
            else:
                xs = x
            out_ref[ib] = (xs + h).astype(out_ref.dtype)

    return kernel


def _group_mask_blockdiag(C):
    """Block-diag([M, M]) where M[i,j]=1 iff channels i,j share a GroupNorm group."""
    gidx = jnp.arange(C) // (C // NUM_GROUPS)
    M = (gidx[:, None] == gidx[None, :]).astype(jnp.float32)
    Z = jnp.zeros((C, C), jnp.float32)
    top = jnp.concatenate([M, Z], axis=1)
    bot = jnp.concatenate([Z, M], axis=1)
    return jnp.concatenate([top, bot], axis=0)


def resnet_block(x, temb, p, *, batch_block=None, mxu_dtype=jnp.bfloat16,
                 vmem_limit_bytes=None):
    B, C_in, L = x.shape
    C_out = p["conv1_w"].shape[0]
    assert C_in % NUM_GROUPS == 0 and C_out % NUM_GROUPS == 0
    has_nin = C_in != C_out

    # Pad L to a lane multiple (lane-dense stores); true length handled in-kernel.
    L_pad = max(LANE, ((L + LANE - 1) // LANE) * LANE)

    # Batch elements per grid step: amortize per-step overhead, keep grid >= 2.
    if batch_block is None:
        target = min(4, max(1, B // 2))
        batch_block = max(d for d in range(1, target + 1) if B % d == 0)
    Bb = batch_block
    assert B % Bb == 0

    # temb projection as a plain XLA matmul (once, not per grid step).
    proj = _silu(temb.astype(jnp.float32)) @ p["temb_w"].T.astype(jnp.float32) \
        + p["temb_b"].astype(jnp.float32)                       # (B, C_out)
    proj3 = proj.reshape(B, C_out, 1)

    xp = x.astype(jnp.float32)
    if L_pad != L:
        xp = jnp.pad(xp, ((0, 0), (0, 0), (0, L_pad - L)))

    def fuse_w(w):   # (C_out, C, 3) -> (C_out, 3*C), tap-major [w0 | w1 | w2]
        return jnp.transpose(w, (0, 2, 1)).reshape(w.shape[0], 3 * w.shape[1]).astype(mxu_dtype)

    col = lambda v: v.reshape(-1, 1).astype(jnp.float32)

    inputs = [
        xp, proj3,
        col(p["norm1_g"]), col(p["norm1_b"]), _group_mask_blockdiag(C_in),
        fuse_w(p["conv1_w"]), col(p["conv1_b"]),
        col(p["norm2_g"]), col(p["norm2_b"]), _group_mask_blockdiag(C_out),
        fuse_w(p["conv2_w"]), col(p["conv2_b"]),
    ]
    if has_nin:
        inputs += [p["nin_w"].astype(mxu_dtype), col(p["nin_b"])]

    def full_spec(a):
        nd = a.ndim
        return pl.BlockSpec(a.shape, lambda i, _nd=nd: (0,) * _nd)

    in_specs = ([pl.BlockSpec((Bb, C_in, L_pad), lambda i: (i, 0, 0)),
                 pl.BlockSpec((Bb, C_out, 1), lambda i: (i, 0, 0))]
                + [full_spec(a) for a in inputs[2:]])

    kernel = _make_kernel(C_in=C_in, C_out=C_out, L_true=L, L_pad=L_pad,
                          Bb=Bb, has_nin=has_nin)

    cp_kwargs = dict(dimension_semantics=("parallel",))
    if vmem_limit_bytes is not None:
        cp_kwargs["vmem_limit_bytes"] = vmem_limit_bytes

    out = pl.pallas_call(
        kernel,
        out_shape=jax.ShapeDtypeStruct((B, C_out, L_pad), jnp.float32),
        grid_spec=pltpu.PrefetchScalarGridSpec(
            num_scalar_prefetch=0,
            grid=(B // Bb,),
            in_specs=in_specs,
            out_specs=pl.BlockSpec((Bb, C_out, L_pad), lambda i: (i, 0, 0)),
        ),
        compiler_params=pltpu.CompilerParams(**cp_kwargs),
    )(*inputs)

    if L_pad != L:
        out = out[:, :, :L]
    return out


# ----------------------------- pure-JAX reference -----------------------------

def ref_forward(x, temb, p):
    """Matches the PyTorch ResnetBlock.forward semantics (eval mode)."""
    P = jax.lax.Precision.HIGHEST

    def gn(h, gamma, beta):
        B, C, L = h.shape
        hg = h.reshape(B, NUM_GROUPS, C // NUM_GROUPS, L)
        mean = hg.mean(axis=(2, 3), keepdims=True)
        var = hg.var(axis=(2, 3), keepdims=True)
        hn = ((hg - mean) / jnp.sqrt(var + EPS)).reshape(B, C, L)
        return hn * gamma[None, :, None] + beta[None, :, None]

    def conv3(h, w, bias):
        hp = jnp.pad(h, ((0, 0), (0, 0), (1, 1)))
        y = (jnp.einsum("oi,bil->bol", w[:, :, 0], hp[:, :, :-2], precision=P)
             + jnp.einsum("oi,bil->bol", w[:, :, 1], hp[:, :, 1:-1], precision=P)
             + jnp.einsum("oi,bil->bol", w[:, :, 2], hp[:, :, 2:], precision=P))
        return y + bias[None, :, None]

    h = gn(x, p["norm1_g"], p["norm1_b"])
    h = _silu(h)
    h = conv3(h, p["conv1_w"], p["conv1_b"])
    h = h + (_silu(temb) @ p["temb_w"].T + p["temb_b"])[:, :, None]
    h = gn(h, p["norm2_g"], p["norm2_b"])
    h = _silu(h)
    h = conv3(h, p["conv2_w"], p["conv2_b"])
    if "nin_w" in p:
        xs = jnp.einsum("oi,bil->bol", p["nin_w"], x, precision=P) + p["nin_b"][None, :, None]
    else:
        xs = x
    return xs + h


# ----------------------------------- test -------------------------------------

def make_params(key, C_in, C_out, T, with_nin):
    ks = jax.random.split(key, 12)
    p = {
        "norm1_g": 1.0 + 0.1 * jax.random.normal(ks[0], (C_in,), jnp.float32),
        "norm1_b": 0.1 * jax.random.normal(ks[1], (C_in,), jnp.float32),
        "conv1_w": 0.1 * jax.random.normal(ks[2], (C_out, C_in, 3), jnp.float32),
        "conv1_b": 0.1 * jax.random.normal(ks[3], (C_out,), jnp.float32),
        "temb_w": 0.1 * jax.random.normal(ks[4], (C_out, T), jnp.float32),
        "temb_b": 0.1 * jax.random.normal(ks[5], (C_out,), jnp.float32),
        "norm2_g": 1.0 + 0.1 * jax.random.normal(ks[6], (C_out,), jnp.float32),
        "norm2_b": 0.1 * jax.random.normal(ks[7], (C_out,), jnp.float32),
        "conv2_w": 0.1 * jax.random.normal(ks[8], (C_out, C_out, 3), jnp.float32),
        "conv2_b": 0.1 * jax.random.normal(ks[9], (C_out,), jnp.float32),
    }
    if with_nin:
        p["nin_w"] = 0.1 * jax.random.normal(ks[10], (C_out, C_in), jnp.float32)
        p["nin_b"] = 0.1 * jax.random.normal(ks[11], (C_out,), jnp.float32)
    return p


if __name__ == "__main__":
    key = jax.random.PRNGKey(0)
    k1, k2, k3, k4, k5, k6 = jax.random.split(key, 6)

    # --- test 1: channel-changing block (nin shortcut), lane-aligned L,
    #             B=4 -> Bb=2 per step, grid=2 ---
    B, C_in, C_out, L, T = 4, 32, 64, 128, 64
    p = make_params(k1, C_in, C_out, T, with_nin=True)
    x = jax.random.normal(k2, (B, C_in, L), jnp.float32)
    temb = jax.random.normal(k3, (B, T), jnp.float32)
    ref = jax.block_until_ready(ref_forward(x, temb, p))

    out_f32 = jax.block_until_ready(resnet_block(x, temb, p, mxu_dtype=jnp.float32))
    np.testing.assert_allclose(np.asarray(out_f32), np.asarray(ref), rtol=5e-3, atol=1e-3)

    # bf16 MXU operands (f32 accumulation) -> loose tolerance for bf16 rounding.
    out_bf16 = jax.block_until_ready(resnet_block(x, temb, p, mxu_dtype=jnp.bfloat16))
    np.testing.assert_allclose(np.asarray(out_bf16), np.asarray(ref), rtol=5e-2, atol=5e-2)

    # --- test 2: identity shortcut (C_in == C_out) and L not a multiple of 128
    #             (exercises the pad-to-128 + true-length masking path) ---
    B2, C2, L2 = 2, 64, 100
    p2 = make_params(k4, C2, C2, T, with_nin=False)
    x2 = jax.random.normal(k5, (B2, C2, L2), jnp.float32)
    temb2 = jax.random.normal(k6, (B2, T), jnp.float32)
    ref2 = jax.block_until_ready(ref_forward(x2, temb2, p2))
    out2 = jax.block_until_ready(resnet_block(x2, temb2, p2, mxu_dtype=jnp.float32))
    np.testing.assert_allclose(np.asarray(out2), np.asarray(ref2), rtol=5e-3, atol=1e-3)

    print("KERNEL_OK")
</pallas_src>

<mosaic_0001>
module attributes {stable_mosaic.version = 11 : i64} {
  func.func @kernel(%arg0: i32, %arg1: memref<2x32x128xf32, #tpu.memory_space<vmem>>, %arg2: memref<2x64x1xf32, #tpu.memory_space<vmem>>, %arg3: memref<32x1xf32, #tpu.memory_space<vmem>>, %arg4: memref<32x1xf32, #tpu.memory_space<vmem>>, %arg5: memref<64x64xf32, #tpu.memory_space<vmem>>, %arg6: memref<64x96xf32, #tpu.memory_space<vmem>>, %arg7: memref<64x1xf32, #tpu.memory_space<vmem>>, %arg8: memref<64x1xf32, #tpu.memory_space<vmem>>, %arg9: memref<64x1xf32, #tpu.memory_space<vmem>>, %arg10: memref<128x128xf32, #tpu.memory_space<vmem>>, %arg11: memref<64x192xf32, #tpu.memory_space<vmem>>, %arg12: memref<64x1xf32, #tpu.memory_space<vmem>>, %arg13: memref<64x32xf32, #tpu.memory_space<vmem>>, %arg14: memref<64x1xf32, #tpu.memory_space<vmem>>, %arg15: memref<2x64x128xf32, #tpu.memory_space<vmem>>) attributes {dimension_semantics = [#tpu.dimension_semantics<parallel>], iteration_bounds = array<i64: 2>, scalar_prefetch = 0 : i64, scratch_operands = 0 : i64, tpu.core_type = #tpu.core_type<tc>, window_params = [{transform_indices = @transform_0, window_bounds = array<i64: 2, 32, 128>}, {transform_indices = @transform_1, window_bounds = array<i64: 2, 64, 1>}, {pipeline_mode = #tpu.pipeline_mode<synchronous>, transform_indices = @transform_2, window_bounds = array<i64: 32, 1>}, {pipeline_mode = #tpu.pipeline_mode<synchronous>, transform_indices = @transform_3, window_bounds = array<i64: 32, 1>}, {pipeline_mode = #tpu.pipeline_mode<synchronous>, transform_indices = @transform_4, window_bounds = array<i64: 64, 64>}, {pipeline_mode = #tpu.pipeline_mode<synchronous>, transform_indices = @transform_5, window_bounds = array<i64: 64, 96>}, {pipeline_mode = #tpu.pipeline_mode<synchronous>, transform_indices = @transform_6, window_bounds = array<i64: 64, 1>}, {pipeline_mode = #tpu.pipeline_mode<synchronous>, transform_indices = @transform_7, window_bounds = array<i64: 64, 1>}, {pipeline_mode = #tpu.pipeline_mode<synchronous>, transform_indices = @transform_8, window_bounds = array<i64: 64, 1>}, {pipeline_mode = #tpu.pipeline_mode<synchronous>, transform_indices = @transform_9, window_bounds = array<i64: 128, 128>}, {pipeline_mode = #tpu.pipeline_mode<synchronous>, transform_indices = @transform_10, window_bounds = array<i64: 64, 192>}, {pipeline_mode = #tpu.pipeline_mode<synchronous>, transform_indices = @transform_11, window_bounds = array<i64: 64, 1>}, {pipeline_mode = #tpu.pipeline_mode<synchronous>, transform_indices = @transform_12, window_bounds = array<i64: 64, 32>}, {pipeline_mode = #tpu.pipeline_mode<synchronous>, transform_indices = @transform_13, window_bounds = array<i64: 64, 1>}, {transform_indices = @transform_14, window_bounds = array<i64: 2, 64, 128>}]} {
    %0 = tpu.iota {dimensions = array<i32: 1>} : vector<1x128xi32>
    %c1_i32 = arith.constant 1 : i32
    %1 = vector.broadcast %c1_i32 : i32 to vector<1x128xi32>
    %2 = arith.cmpi sge, %0, %1 : vector<1x128xi32>
    %c126_i32 = arith.constant 126 : i32
    %3 = vector.broadcast %c126_i32 : i32 to vector<1x128xi32>
    %4 = arith.cmpi sle, %0, %3 : vector<1x128xi32>
    %c0 = arith.constant 0 : index
    %c0_0 = arith.constant 0 : index
    %5 = vector.load %arg3[%c0, %c0_0] : memref<32x1xf32, #tpu.memory_space<vmem>>, vector<32x1xf32>
    %c0_1 = arith.constant 0 : index
    %c0_2 = arith.constant 0 : index
    %6 = vector.load %arg4[%c0_1, %c0_2] : memref<32x1xf32, #tpu.memory_space<vmem>>, vector<32x1xf32>
    %c0_3 = arith.constant 0 : index
    %c0_4 = arith.constant 0 : index
    %7 = vector.load %arg5[%c0_3, %c0_4] : memref<64x64xf32, #tpu.memory_space<vmem>>, vector<64x64xf32>
    %c0_5 = arith.constant 0 : index
    %c0_6 = arith.constant 0 : index
    %8 = vector.load %arg7[%c0_5, %c0_6] : memref<64x1xf32, #tpu.memory_space<vmem>>, vector<64x1xf32>
    %c0_7 = arith.constant 0 : index
    %c0_8 = arith.constant 0 : index
    %9 = vector.load %arg8[%c0_7, %c0_8] : memref<64x1xf32, #tpu.memory_space<vmem>>, vector<64x1xf32>
    %c0_9 = arith.constant 0 : index
    %c0_10 = arith.constant 0 : index
    %10 = vector.load %arg9[%c0_9, %c0_10] : memref<64x1xf32, #tpu.memory_space<vmem>>, vector<64x1xf32>
    %c0_11 = arith.constant 0 : index
    %c0_12 = arith.constant 0 : index
    %11 = vector.load %arg10[%c0_11, %c0_12] : memref<128x128xf32, #tpu.memory_space<vmem>>, vector<128x128xf32>
    %c0_13 = arith.constant 0 : index
    %c0_14 = arith.constant 0 : index
    %12 = vector.load %arg12[%c0_13, %c0_14] : memref<64x1xf32, #tpu.memory_space<vmem>>, vector<64x1xf32>
    %c0_15 = arith.constant 0 : index
    %c0_16 = arith.constant 0 : index
    %c0_17 = arith.constant 0 : index
    %13 = vector.load %arg1[%c0_15, %c0_16, %c0_17] : memref<2x32x128xf32, #tpu.memory_space<vmem>>, vector<1x32x128xf32>
    %14 = vector.shape_cast %13 : vector<1x32x128xf32> to vector<32x128xf32>
    %cst = arith.constant dense<0.000000e+00> : vector<32xf32>
    %15 = vector.multi_reduction <add>, %14, %cst [1] : vector<32x128xf32> to vector<32xf32>
    %16 = vector.shape_cast %15 : vector<32xf32> to vector<32x1xf32>
    %17 = arith.mulf %14, %14 : vector<32x128xf32>
    %cst_18 = arith.constant dense<0.000000e+00> : vector<32xf32>
    %18 = vector.multi_reduction <add>, %17, %cst_18 [1] : vector<32x128xf32> to vector<32xf32>
    %19 = vector.shape_cast %18 : vector<32xf32> to vector<32x1xf32>
    %20 = tpu.concatenate %16, %19 in 0 : vector<32x1xf32>, vector<32x1xf32> -> vector<64x1xf32>
    %cst_19 = arith.constant dense<0.000000e+00> : vector<64x1xf32>
    %21 = tpu.matmul %7, %20, %cst_19 {dimension_numbers = #tpu.dot_dimension_numbers<[1], [0], [0], [1], [0, 0, 1, 1], [], []>} : vector<64x64xf32>, vector<64x1xf32>, vector<64x1xf32> -> vector<64x1xf32>
    %22 = vector.extract_strided_slice %21 {offsets = [0, 0], sizes = [32, 1], strides = [1, 1]} : vector<64x1xf32> to vector<32x1xf32>
    %cst_20 = arith.constant 1.280000e+02 : f32
    %23 = vector.broadcast %cst_20 : f32 to vector<32x1xf32>
    %24 = arith.divf %22, %23 : vector<32x1xf32>
    %25 = vector.extract_strided_slice %21 {offsets = [32, 0], sizes = [32, 1], strides = [1, 1]} : vector<64x1xf32> to vector<32x1xf32>
    %cst_21 = arith.constant 1.280000e+02 : f32
    %26 = vector.broadcast %cst_21 : f32 to vector<32x1xf32>
    %27 = arith.divf %25, %26 : vector<32x1xf32>
    %28 = arith.mulf %24, %24 : vector<32x1xf32>
    %29 = arith.subf %27, %28 : vector<32x1xf32>
    %cst_22 = arith.constant 9.99999997E-7 : f32
    %30 = vector.broadcast %cst_22 : f32 to vector<32x1xf32>
    %31 = arith.addf %29, %30 : vector<32x1xf32>
    %32 = math.rsqrt %31 : vector<32x1xf32>
    %33 = vector.broadcast %24 : vector<32x1xf32> to vector<32x128xf32>
    %34 = arith.subf %14, %33 : vector<32x128xf32>
    %35 = arith.mulf %32, %5 : vector<32x1xf32>
    %36 = vector.broadcast %35 : vector<32x1xf32> to vector<32x128xf32>
    %37 = arith.mulf %34, %36 : vector<32x128xf32>
    %38 = vector.broadcast %6 : vector<32x1xf32> to vector<32x128xf32>
    %39 = arith.addf %37, %38 : vector<32x128xf32>
    %cst_23 = arith.constant 5.000000e-01 : f32
    %40 = vector.broadcast %cst_23 : f32 to vector<32x128xf32>
    %41 = arith.mulf %40, %39 : vector<32x128xf32>
    %42 = math.tanh %41 : vector<32x128xf32>
    %cst_24 = arith.constant 1.000000e+00 : f32
    %43 = vector.broadcast %cst_24 : f32 to vector<32x128xf32>
    %44 = arith.addf %42, %43 : vector<32x128xf32>
    %cst_25 = arith.constant 5.000000e-01 : f32
    %45 = vector.broadcast %cst_25 : f32 to vector<32x128xf32>
    %46 = arith.mulf %45, %44 : vector<32x128xf32>
    %47 = arith.mulf %39, %46 : vector<32x128xf32>
    %c1_i32_26 = arith.constant 1 : i32
    %48 = tpu.dynamic_rotate %47 by %c1_i32_26 dim 1 : vector<32x128xf32>, i32 -> vector<32x128xf32>
    %cst_27 = arith.constant 0.000000e+00 : f32
    %49 = vector.shape_cast %2 : vector<1x128xi1> to vector<1x128xi1>
    %50 = vector.broadcast %49 : vector<1x128xi1> to vector<32x128xi1>
    %51 = vector.broadcast %cst_27 : f32 to vector<32x128xf32>
    %52 = arith.select %50, %48, %51 : vector<32x128xi1>, vector<32x128xf32>
    %c127_i32 = arith.constant 127 : i32
    %53 = tpu.dynamic_rotate %47 by %c127_i32 dim 1 : vector<32x128xf32>, i32 -> vector<32x128xf32>
    %cst_28 = arith.constant 0.000000e+00 : f32
    %54 = vector.shape_cast %4 : vector<1x128xi1> to vector<1x128xi1>
    %55 = vector.broadcast %54 : vector<1x128xi1> to vector<32x128xi1>
    %56 = vector.broadcast %cst_28 : f32 to vector<32x128xf32>
    %57 = arith.select %55, %53, %56 : vector<32x128xi1>, vector<32x128xf32>
    %58 = tpu.concatenate %52, %47, %57 in 0 : vector<32x128xf32>, vector<32x128xf32>, vector<32x128xf32> -> vector<96x128xf32>
    %c0_29 = arith.constant 0 : index
    %c0_30 = arith.constant 0 : index
    %59 = vector.load %arg6[%c0_29, %c0_30] : memref<64x96xf32, #tpu.memory_space<vmem>>, vector<64x96xf32>
    %cst_31 = arith.constant dense<0.000000e+00> : vector<64x128xf32>
    %60 = tpu.matmul %59, %58, %cst_31 {dimension_numbers = #tpu.dot_dimension_numbers<[1], [0], [0], [1], [0, 0, 1, 1], [], []>} : vector<64x96xf32>, vector<96x128xf32>, vector<64x128xf32> -> vector<64x128xf32>
    %61 = vector.broadcast %8 : vector<64x1xf32> to vector<64x128xf32>
    %62 = arith.addf %60, %61 : vector<64x128xf32>
    %c0_32 = arith.constant 0 : index
    %c0_33 = arith.constant 0 : index
    %c0_34 = arith.constant 0 : index
    %63 = vector.load %arg2[%c0_32, %c0_33, %c0_34] : memref<2x64x1xf32, #tpu.memory_space<vmem>>, vector<1x64x1xf32>
    %64 = vector.shape_cast %63 : vector<1x64x1xf32> to vector<64x1xf32>
    %65 = vector.broadcast %64 : vector<64x1xf32> to vector<64x128xf32>
    %66 = arith.addf %62, %65 : vector<64x128xf32>
    %cst_35 = arith.constant dense<0.000000e+00> : vector<64xf32>
    %67 = vector.multi_reduction <add>, %66, %cst_35 [1] : vector<64x128xf32> to vector<64xf32>
    %68 = vector.shape_cast %67 : vector<64xf32> to vector<64x1xf32>
    %69 = arith.mulf %66, %66 : vector<64x128xf32>
    %cst_36 = arith.constant dense<0.000000e+00> : vector<64xf32>
    %70 = vector.multi_reduction <add>, %69, %cst_36 [1] : vector<64x128xf32> to vector<64xf32>
    %71 = vector.shape_cast %70 : vector<64xf32> to vector<64x1xf32>
    %72 = tpu.concatenate %68, %71 in 0 : vector<64x1xf32>, vector<64x1xf32> -> vector<128x1xf32>
    %cst_37 = arith.constant dense<0.000000e+00> : vector<128x1xf32>
    %73 = tpu.matmul %11, %72, %cst_37 {dimension_numbers = #tpu.dot_dimension_numbers<[1], [0], [0], [1], [0, 0, 1, 1], [], []>} : vector<128x128xf32>, vector<128x1xf32>, vector<128x1xf32> -> vector<128x1xf32>
    %74 = vector.extract_strided_slice %73 {offsets = [0, 0], sizes = [64, 1], strides = [1, 1]} : vector<128x1xf32> to vector<64x1xf32>
    %cst_38 = arith.constant 2.560000e+02 : f32
    %75 = vector.broadcast %cst_38 : f32 to vector<64x1xf32>
    %76 = arith.divf %74, %75 : vector<64x1xf32>
    %77 = vector.extract_strided_slice %73 {offsets = [64, 0], sizes = [64, 1], strides = [1, 1]} : vector<128x1xf32> to vector<64x1xf32>
    %cst_39 = arith.constant 2.560000e+02 : f32
    %78 = vector.broadcast %cst_39 : f32 to vector<64x1xf32>
    %79 = arith.divf %77, %78 : vector<64x1xf32>
    %80 = arith.mulf %76, %76 : vector<64x1xf32>
    %81 = arith.subf %79, %80 : vector<64x1xf32>
    %cst_40 = arith.constant 9.99999997E-7 : f32
    %82 = vector.broadcast %cst_40 : f32 to vector<64x1xf32>
    %83 = arith.addf %81, %82 : vector<64x1xf32>
    %84 = math.rsqrt %83 : vector<64x1xf32>
    %85 = vector.broadcast %76 : vector<64x1xf32> to vector<64x128xf32>
    %86 = arith.subf %66, %85 : vector<64x128xf32>
    %87 = arith.mulf %84, %9 : vector<64x1xf32>
    %88 = vector.broadcast %87 : vector<64x1xf32> to vector<64x128xf32>
    %89 = arith.mulf %86, %88 : vector<64x128xf32>
    %90 = vector.broadcast %10 : vector<64x1xf32> to vector<64x128xf32>
    %91 = arith.addf %89, %90 : vector<64x128xf32>
    %cst_41 = arith.constant 5.000000e-01 : f32
    %92 = vector.broadcast %cst_41 : f32 to vector<64x128xf32>
    %93 = arith.mulf %92, %91 : vector<64x128xf32>
    %94 = math.tanh %93 : vector<64x128xf32>
    %cst_42 = arith.constant 1.000000e+00 : f32
    %95 = vector.broadcast %cst_42 : f32 to vector<64x128xf32>
    %96 = arith.addf %94, %95 : vector<64x128xf32>
    %cst_43 = arith.constant 5.000000e-01 : f32
    %97 = vector.broadcast %cst_43 : f32 to vector<64x128xf32>
    %98 = arith.mulf %97, %96 : vector<64x128xf32>
    %99 = arith.mulf %91, %98 : vector<64x128xf32>
    %c1_i32_44 = arith.constant 1 : i32
    %100 = tpu.dynamic_rotate %99 by %c1_i32_44 dim 1 : vector<64x128xf32>, i32 -> vector<64x128xf32>
    %cst_45 = arith.constant 0.000000e+00 : f32
    %101 = vector.shape_cast %2 : vector<1x128xi1> to vector<1x128xi1>
    %102 = vector.broadcast %101 : vector<1x128xi1> to vector<64x128xi1>
    %103 = vector.broadcast %cst_45 : f32 to vector<64x128xf32>
    %104 = arith.select %102, %100, %103 : vector<64x128xi1>, vector<64x128xf32>
    %c127_i32_46 = arith.constant 127 : i32
    %105 = tpu.dynamic_rotate %99 by %c127_i32_46 dim 1 : vector<64x128xf32>, i32 -> vector<64x128xf32>
    %cst_47 = arith.constant 0.000000e+00 : f32
    %106 = vector.shape_cast %4 : vector<1x128xi1> to vector<1x128xi1>
    %107 = vector.broadcast %106 : vector<1x128xi1> to vector<64x128xi1>
    %108 = vector.broadcast %cst_47 : f32 to vector<64x128xf32>
    %109 = arith.select %107, %105, %108 : vector<64x128xi1>, vector<64x128xf32>
    %110 = tpu.concatenate %104, %99, %109 in 0 : vector<64x128xf32>, vector<64x128xf32>, vector<64x128xf32> -> vector<192x128xf32>
    %c0_48 = arith.constant 0 : index
    %c0_49 = arith.constant 0 : index
    %111 = vector.load %arg11[%c0_48, %c0_49] : memref<64x192xf32, #tpu.memory_space<vmem>>, vector<64x192xf32>
    %cst_50 = arith.constant dense<0.000000e+00> : vector<64x128xf32>
    %112 = tpu.matmul %111, %110, %cst_50 {dimension_numbers = #tpu.dot_dimension_numbers<[1], [0], [0], [1], [0, 0, 1, 1], [], []>} : vector<64x192xf32>, vector<192x128xf32>, vector<64x128xf32> -> vector<64x128xf32>
    %113 = vector.broadcast %12 : vector<64x1xf32> to vector<64x128xf32>
    %114 = arith.addf %112, %113 : vector<64x128xf32>
    %c0_51 = arith.constant 0 : index
    %c0_52 = arith.constant 0 : index
    %115 = vector.load %arg13[%c0_51, %c0_52] : memref<64x32xf32, #tpu.memory_space<vmem>>, vector<64x32xf32>
    %cst_53 = arith.constant dense<0.000000e+00> : vector<64x128xf32>
    %116 = tpu.matmul %115, %14, %cst_53 {dimension_numbers = #tpu.dot_dimension_numbers<[1], [0], [0], [1], [0, 0, 1, 1], [], []>} : vector<64x32xf32>, vector<32x128xf32>, vector<64x128xf32> -> vector<64x128xf32>
    %c0_54 = arith.constant 0 : index
    %c0_55 = arith.constant 0 : index
    %117 = vector.load %arg14[%c0_54, %c0_55] : memref<64x1xf32, #tpu.memory_space<vmem>>, vector<64x1xf32>
    %118 = vector.broadcast %117 : vector<64x1xf32> to vector<64x128xf32>
    %119 = arith.addf %116, %118 : vector<64x128xf32>
    %120 = arith.addf %119, %114 : vector<64x128xf32>
    %c0_56 = arith.constant 0 : index
    %c0_57 = arith.constant 0 : index
    %c0_58 = arith.constant 0 : index
    %121 = vector.load %arg15[%c0_56, %c0_57, %c0_58] : memref<2x64x128xf32, #tpu.memory_space<vmem>>, vector<1x64x128xf32>
    %122 = vector.shape_cast %121 : vector<1x64x128xf32> to vector<64x128xf32>
    %123 = vector.shape_cast %120 : vector<64x128xf32> to vector<1x64x128xf32>
    tpu.vector_store %arg15[%c0_56, %c0_57, %c0_58], %123 {strides = array<i32>} : memref<2x64x128xf32, #tpu.memory_space<vmem>>, vector<1x64x128xf32>,
    %c1 = arith.constant 1 : index
    %c0_59 = arith.constant 0 : index
    %c0_60 = arith.constant 0 : index
    %124 = vector.load %arg1[%c1, %c0_59, %c0_60] : memref<2x32x128xf32, #tpu.memory_space<vmem>>, vector<1x32x128xf32>
    %125 = vector.shape_cast %124 : vector<1x32x128xf32> to vector<32x128xf32>
    %cst_61 = arith.constant dense<0.000000e+00> : vector<32xf32>
    %126 = vector.multi_reduction <add>, %125, %cst_61 [1] : vector<32x128xf32> to vector<32xf32>
    %127 = vector.shape_cast %126 : vector<32xf32> to vector<32x1xf32>
    %128 = arith.mulf %125, %125 : vector<32x128xf32>
    %cst_62 = arith.constant dense<0.000000e+00> : vector<32xf32>
    %129 = vector.multi_reduction <add>, %128, %cst_62 [1] : vector<32x128xf32> to vector<32xf32>
    %130 = vector.shape_cast %129 : vector<32xf32> to vector<32x1xf32>
    %131 = tpu.concatenate %127, %130 in 0 : vector<32x1xf32>, vector<32x1xf32> -> vector<64x1xf32>
    %cst_63 = arith.constant dense<0.000000e+00> : vector<64x1xf32>
    %132 = tpu.matmul %7, %131, %cst_63 {dimension_numbers = #tpu.dot_dimension_numbers<[1], [0], [0], [1], [0, 0, 1, 1], [], []>} : vector<64x64xf32>, vector<64x1xf32>, vector<64x1xf32> -> vector<64x1xf32>
    %133 = vector.extract_strided_slice %132 {offsets = [0, 0], sizes = [32, 1], strides = [1, 1]} : vector<64x1xf32> to vector<32x1xf32>
    %cst_64 = arith.constant 1.280000e+02 : f32
    %134 = vector.broadcast %cst_64 : f32 to vector<32x1xf32>
    %135 = arith.divf %133, %134 : vector<32x1xf32>
    %136 = vector.extract_strided_slice %132 {offsets = [32, 0], sizes = [32, 1], strides = [1, 1]} : vector<64x1xf32> to vector<32x1xf32>
    %cst_65 = arith.constant 1.280000e+02 : f32
    %137 = vector.broadcast %cst_65 : f32 to vector<32x1xf32>
    %138 = arith.divf %136, %137 : vector<32x1xf32>
    %139 = arith.mulf %135, %135 : vector<32x1xf32>
    %140 = arith.subf %138, %139 : vector<32x1xf32>
    %cst_66 = arith.constant 9.99999997E-7 : f32
    %141 = vector.broadcast %cst_66 : f32 to vector<32x1xf32>
    %142 = arith.addf %140, %141 : vector<32x1xf32>
    %143 = math.rsqrt %142 : vector<32x1xf32>
    %144 = vector.broadcast %135 : vector<32x1xf32> to vector<32x128xf32>
    %145 = arith.subf %125, %144 : vector<32x128xf32>
    %146 = arith.mulf %143, %5 : vector<32x1xf32>
    %147 = vector.broadcast %146 : vector<32x1xf32> to vector<32x128xf32>
    %148 = arith.mulf %145, %147 : vector<32x128xf32>
    %149 = vector.broadcast %6 : vector<32x1xf32> to vector<32x128xf32>
    %150 = arith.addf %148, %149 : vector<32x128xf32>
    %cst_67 = arith.constant 5.000000e-01 : f32
    %151 = vector.broadcast %cst_67 : f32 to vector<32x128xf32>
    %152 = arith.mulf %151, %150 : vector<32x128xf32>
    %153 = math.tanh %152 : vector<32x128xf32>
    %cst_68 = arith.constant 1.000000e+00 : f32
    %154 = vector.broadcast %cst_68 : f32 to vector<32x128xf32>
    %155 = arith.addf %153, %154 : vector<32x128xf32>
    %cst_69 = arith.constant 5.000000e-01 : f32
    %156 = vector.broadcast %cst_69 : f32 to vector<32x128xf32>
    %157 = arith.mulf %156, %155 : vector<32x128xf32>
    %158 = arith.mulf %150, %157 : vector<32x128xf32>
    %c1_i32_70 = arith.constant 1 : i32
    %159 = tpu.dynamic_rotate %158 by %c1_i32_70 dim 1 : vector<32x128xf32>, i32 -> vector<32x128xf32>
    %cst_71 = arith.constant 0.000000e+00 : f32
    %160 = vector.shape_cast %2 : vector<1x128xi1> to vector<1x128xi1>
    %161 = vector.broadcast %160 : vector<1x128xi1> to vector<32x128xi1>
    %162 = vector.broadcast %cst_71 : f32 to vector<32x128xf32>
    %163 = arith.select %161, %159, %162 : vector<32x128xi1>, vector<32x128xf32>
    %c127_i32_72 = arith.constant 127 : i32
    %164 = tpu.dynamic_rotate %158 by %c127_i32_72 dim 1 : vector<32x128xf32>, i32 -> vector<32x128xf32>
    %cst_73 = arith.constant 0.000000e+00 : f32
    %165 = vector.shape_cast %4 : vector<1x128xi1> to vector<1x128xi1>
    %166 = vector.broadcast %165 : vector<1x128xi1> to vector<32x128xi1>
    %167 = vector.broadcast %cst_73 : f32 to vector<32x128xf32>
    %168 = arith.select %166, %164, %167 : vector<32x128xi1>, vector<32x128xf32>
    %169 = tpu.concatenate %163, %158, %168 in 0 : vector<32x128xf32>, vector<32x128xf32>, vector<32x128xf32> -> vector<96x128xf32>
    %c0_74 = arith.constant 0 : index
    %c0_75 = arith.constant 0 : index
    %170 = vector.load %arg6[%c0_74, %c0_75] : memref<64x96xf32, #tpu.memory_space<vmem>>, vector<64x96xf32>
    %cst_76 = arith.constant dense<0.000000e+00> : vector<64x128xf32>
    %171 = tpu.matmul %170, %169, %cst_76 {dimension_numbers = #tpu.dot_dimension_numbers<[1], [0], [0], [1], [0, 0, 1, 1], [], []>} : vector<64x96xf32>, vector<96x128xf32>, vector<64x128xf32> -> vector<64x128xf32>
    %172 = vector.broadcast %8 : vector<64x1xf32> to vector<64x128xf32>
    %173 = arith.addf %171, %172 : vector<64x128xf32>
    %c1_77 = arith.constant 1 : index
    %c0_78 = arith.constant 0 : index
    %c0_79 = arith.constant 0 : index
    %174 = vector.load %arg2[%c1_77, %c0_78, %c0_79] : memref<2x64x1xf32, #tpu.memory_space<vmem>>, vector<1x64x1xf32>
    %175 = vector.shape_cast %174 : vector<1x64x1xf32> to vector<64x1xf32>
    %176 = vector.broadcast %175 : vector<64x1xf32> to vector<64x128xf32>
    %177 = arith.addf %173, %176 : vector<64x128xf32>
    %cst_80 = arith.constant dense<0.000000e+00> : vector<64xf32>
    %178 = vector.multi_reduction <add>, %177, %cst_80 [1] : vector<64x128xf32> to vector<64xf32>
    %179 = vector.shape_cast %178 : vector<64xf32> to vector<64x1xf32>
    %180 = arith.mulf %177, %177 : vector<64x128xf32>
    %cst_81 = arith.constant dense<0.000000e+00> : vector<64xf32>
    %181 = vector.multi_reduction <add>, %180, %cst_81 [1] : vector<64x128xf32> to vector<64xf32>
    %182 = vector.shape_cast %181 : vector<64xf32> to vector<64x1xf32>
    %183 = tpu.concatenate %179, %182 in 0 : vector<64x1xf32>, vector<64x1xf32> -> vector<128x1xf32>
    %cst_82 = arith.constant dense<0.000000e+00> : vector<128x1xf32>
    %184 = tpu.matmul %11, %183, %cst_82 {dimension_numbers = #tpu.dot_dimension_numbers<[1], [0], [0], [1], [0, 0, 1, 1], [], []>} : vector<128x128xf32>, vector<128x1xf32>, vector<128x1xf32> -> vector<128x1xf32>
    %185 = vector.extract_strided_slice %184 {offsets = [0, 0], sizes = [64, 1], strides = [1, 1]} : vector<128x1xf32> to vector<64x1xf32>
    %cst_83 = arith.constant 2.560000e+02 : f32
    %186 = vector.broadcast %cst_83 : f32 to vector<64x1xf32>
    %187 = arith.divf %185, %186 : vector<64x1xf32>
    %188 = vector.extract_strided_slice %184 {offsets = [64, 0], sizes = [64, 1], strides = [1, 1]} : vector<128x1xf32> to vector<64x1xf32>
    %cst_84 = arith.constant 2.560000e+02 : f32
    %189 = vector.broadcast %cst_84 : f32 to vector<64x1xf32>
    %190 = arith.divf %188, %189 : vector<64x1xf32>
    %191 = arith.mulf %187, %187 : vector<64x1xf32>
    %192 = arith.subf %190, %191 : vector<64x1xf32>
    %cst_85 = arith.constant 9.99999997E-7 : f32
    %193 = vector.broadcast %cst_85 : f32 to vector<64x1xf32>
    %194 = arith.addf %192, %193 : vector<64x1xf32>
    %195 = math.rsqrt %194 : vector<64x1xf32>
    %196 = vector.broadcast %187 : vector<64x1xf32> to vector<64x128xf32>
    %197 = arith.subf %177, %196 : vector<64x128xf32>
    %198 = arith.mulf %195, %9 : vector<64x1xf32>
    %199 = vector.broadcast %198 : vector<64x1xf32> to vector<64x128xf32>
    %200 = arith.mulf %197, %199 : vector<64x128xf32>
    %201 = vector.broadcast %10 : vector<64x1xf32> to vector<64x128xf32>
    %202 = arith.addf %200, %201 : vector<64x128xf32>
    %cst_86 = arith.constant 5.000000e-01 : f32
    %203 = vector.broadcast %cst_86 : f32 to vector<64x128xf32>
    %204 = arith.mulf %203, %202 : vector<64x128xf32>
    %205 = math.tanh %204 : vector<64x128xf32>
    %cst_87 = arith.constant 1.000000e+00 : f32
    %206 = vector.broadcast %cst_87 : f32 to vector<64x128xf32>
    %207 = arith.addf %205, %206 : vector<64x128xf32>
    %cst_88 = arith.constant 5.000000e-01 : f32
    %208 = vector.broadcast %cst_88 : f32 to vector<64x128xf32>
    %209 = arith.mulf %208, %207 : vector<64x128xf32>
    %210 = arith.mulf %202, %209 : vector<64x128xf32>
    %c1_i32_89 = arith.constant 1 : i32
    %211 = tpu.dynamic_rotate %210 by %c1_i32_89 dim 1 : vector<64x128xf32>, i32 -> vector<64x128xf32>
    %cst_90 = arith.constant 0.000000e+00 : f32
    %212 = vector.shape_cast %2 : vector<1x128xi1> to vector<1x128xi1>
    %213 = vector.broadcast %212 : vector<1x128xi1> to vector<64x128xi1>
    %214 = vector.broadcast %cst_90 : f32 to vector<64x128xf32>
    %215 = arith.select %213, %211, %214 : vector<64x128xi1>, vector<64x128xf32>
    %c127_i32_91 = arith.constant 127 : i32
    %216 = tpu.dynamic_rotate %210 by %c127_i32_91 dim 1 : vector<64x128xf32>, i32 -> vector<64x128xf32>
    %cst_92 = arith.constant 0.000000e+00 : f32
    %217 = vector.shape_cast %4 : vector<1x128xi1> to vector<1x128xi1>
    %218 = vector.broadcast %217 : vector<1x128xi1> to vector<64x128xi1>
    %219 = vector.broadcast %cst_92 : f32 to vector<64x128xf32>
    %220 = arith.select %218, %216, %219 : vector<64x128xi1>, vector<64x128xf32>
    %221 = tpu.concatenate %215, %210, %220 in 0 : vector<64x128xf32>, vector<64x128xf32>, vector<64x128xf32> -> vector<192x128xf32>
    %c0_93 = arith.constant 0 : index
    %c0_94 = arith.constant 0 : index
    %222 = vector.load %arg11[%c0_93, %c0_94] : memref<64x192xf32, #tpu.memory_space<vmem>>, vector<64x192xf32>
    %cst_95 = arith.constant dense<0.000000e+00> : vector<64x128xf32>
    %223 = tpu.matmul %222, %221, %cst_95 {dimension_numbers = #tpu.dot_dimension_numbers<[1], [0], [0], [1], [0, 0, 1, 1], [], []>} : vector<64x192xf32>, vector<192x128xf32>, vector<64x128xf32> -> vector<64x128xf32>
    %224 = vector.broadcast %12 : vector<64x1xf32> to vector<64x128xf32>
    %225 = arith.addf %223, %224 : vector<64x128xf32>
    %c0_96 = arith.constant 0 : index
    %c0_97 = arith.constant 0 : index
    %226 = vector.load %arg13[%c0_96, %c0_97] : memref<64x32xf32, #tpu.memory_space<vmem>>, vector<64x32xf32>
    %cst_98 = arith.constant dense<0.000000e+00> : vector<64x128xf32>
    %227 = tpu.matmul %226, %125, %cst_98 {dimension_numbers = #tpu.dot_dimension_numbers<[1], [0], [0], [1], [0, 0, 1, 1], [], []>} : vector<64x32xf32>, vector<32x128xf32>, vector<64x128xf32> -> vector<64x128xf32>
    %c0_99 = arith.constant 0 : index
    %c0_100 = arith.constant 0 : index
    %228 = vector.load %arg14[%c0_99, %c0_100] : memref<64x1xf32, #tpu.memory_space<vmem>>, vector<64x1xf32>
    %229 = vector.broadcast %228 : vector<64x1xf32> to vector<64x128xf32>
    %230 = arith.addf %227, %229 : vector<64x128xf32>
    %231 = arith.addf %230, %225 : vector<64x128xf32>
    %c1_101 = arith.constant 1 : index
    %c0_102 = arith.constant 0 : index
    %c0_103 = arith.constant 0 : index
    %232 = vector.load %arg15[%c1_101, %c0_102, %c0_103] : memref<2x64x128xf32, #tpu.memory_space<vmem>>, vector<1x64x128xf32>
    %233 = vector.shape_cast %232 : vector<1x64x128xf32> to vector<64x128xf32>
    %234 = vector.shape_cast %231 : vector<64x128xf32> to vector<1x64x128xf32>
    tpu.vector_store %arg15[%c1_101, %c0_102, %c0_103], %234 {strides = array<i32>} : memref<2x64x128xf32, #tpu.memory_space<vmem>>, vector<1x64x128xf32>,
    return
  }
  func.func @transform_0(%arg0: i32) -> (i32, i32, i32) {
    %c0_i32 = arith.constant 0 : i32
    %c0_i32_0 = arith.constant 0 : i32
    %c0_i32_1 = arith.constant 0 : i32
    return %arg0, %c0_i32, %c0_i32_0 : i32, i32, i32
  }
  func.func @transform_1(%arg0: i32) -> (i32, i32, i32) {
    %c0_i32 = arith.constant 0 : i32
    %c0_i32_0 = arith.constant 0 : i32
    %c0_i32_1 = arith.constant 0 : i32
    return %arg0, %c0_i32, %c0_i32_0 : i32, i32, i32
  }
  func.func @transform_2(%arg0: i32) -> (i32, i32) {
    %c0_i32 = arith.constant 0 : i32
    %c0_i32_0 = arith.constant 0 : i32
    %c0_i32_1 = arith.constant 0 : i32
    return %c0_i32, %c0_i32_0 : i32, i32
  }
  func.func @transform_3(%arg0: i32) -> (i32, i32) {
    %c0_i32 = arith.constant 0 : i32
    %c0_i32_0 = arith.constant 0 : i32
    %c0_i32_1 = arith.constant 0 : i32
    return %c0_i32, %c0_i32_0 : i32, i32
  }
  func.func @transform_4(%arg0: i32) -> (i32, i32) {
    %c0_i32 = arith.constant 0 : i32
    %c0_i32_0 = arith.constant 0 : i32
    %c0_i32_1 = arith.constant 0 : i32
    return %c0_i32, %c0_i32_0 : i32, i32
  }
  func.func @transform_5(%arg0: i32) -> (i32, i32) {
    %c0_i32 = arith.constant 0 : i32
    %c0_i32_0 = arith.constant 0 : i32
    %c0_i32_1 = arith.constant 0 : i32
    return %c0_i32, %c0_i32_0 : i32, i32
  }
  func.func @transform_6(%arg0: i32) -> (i32, i32) {
    %c0_i32 = arith.constant 0 : i32
    %c0_i32_0 = arith.constant 0 : i32
    %c0_i32_1 = arith.constant 0 : i32
    return %c0_i32, %c0_i32_0 : i32, i32
  }
  func.func @transform_7(%arg0: i32) -> (i32, i32) {
    %c0_i32 = arith.constant 0 : i32
    %c0_i32_0 = arith.constant 0 : i32
    %c0_i32_1 = arith.constant 0 : i32
    return %c0_i32, %c0_i32_0 : i32, i32
  }
  func.func @transform_8(%arg0: i32) -> (i32, i32) {
    %c0_i32 = arith.constant 0 : i32
    %c0_i32_0 = arith.constant 0 : i32
    %c0_i32_1 = arith.constant 0 : i32
    return %c0_i32, %c0_i32_0 : i32, i32
  }
  func.func @transform_9(%arg0: i32) -> (i32, i32) {
    %c0_i32 = arith.constant 0 : i32
    %c0_i32_0 = arith.constant 0 : i32
    %c0_i32_1 = arith.constant 0 : i32
    return %c0_i32, %c0_i32_0 : i32, i32
  }
  func.func @transform_10(%arg0: i32) -> (i32, i32) {
    %c0_i32 = arith.constant 0 : i32
    %c0_i32_0 = arith.constant 0 : i32
    %c0_i32_1 = arith.constant 0 : i32
    return %c0_i32, %c0_i32_0 : i32, i32
  }
  func.func @transform_11(%arg0: i32) -> (i32, i32) {
    %c0_i32 = arith.constant 0 : i32
    %c0_i32_0 = arith.constant 0 : i32
    %c0_i32_1 = arith.constant 0 : i32
    return %c0_i32, %c0_i32_0 : i32, i32
  }
  func.func @transform_12(%arg0: i32) -> (i32, i32) {
    %c0_i32 = arith.constant 0 : i32
    %c0_i32_0 = arith.constant 0 : i32
    %c0_i32_1 = arith.constant 0 : i32
    return %c0_i32, %c0_i32_0 : i32, i32
  }
  func.func @transform_13(%arg0: i32) -> (i32, i32) {
    %c0_i32 = arith.constant 0 : i32
    %c0_i32_0 = arith.constant 0 : i32
    %c0_i32_1 = arith.constant 0 : i32
    return %c0_i32, %c0_i32_0 : i32, i32
  }
  func.func @transform_14(%arg0: i32) -> (i32, i32, i32) {
    %c0_i32 = arith.constant 0 : i32
    %c0_i32_0 = arith.constant 0 : i32
    %c0_i32_1 = arith.constant 0 : i32
    return %arg0, %c0_i32, %c0_i32_0 : i32, i32, i32
  }
}

</mosaic_0001>

<bundles_post_ra>
// kernel: tpu_custom_call.1
= control target key start
LH: loop header
LB: loop body
LE: loop exit
PB: predicated region body
PF: predicated region fallthrough
CT: control target
= control target key end

     0   :  { %s5589_s0 = inlined_call_operand.vmem [shape: f32[4,32,128], index: 0, kind: input, shape index: {}]   ;;  %s5590_s1 = inlined_call_operand.vmem [shape: f32[4,64,1], index: 1, kind: input, shape index: {}]   ;;  %s5591_s2 = inlined_call_operand.vmem [shape: f32[32,1], index: 2, kind: input, shape index: {}]   ;;  %s5592_s3 = inlined_call_operand.vmem [shape: f32[32,1], index: 3, kind: input, shape index: {}]   ;;  %s5593_s4 = inlined_call_operand.vmem [shape: f32[64,64], index: 4, kind: input, shape index: {}]   ;;  %s5594_s5 = inlined_call_operand.vmem [shape: f32[64,96], index: 5, kind: input, shape index: {}]   ;;  %s5595_s6 = inlined_call_operand.vmem [shape: f32[64,1], index: 6, kind: input, shape index: {}]   ;;  %s5596_s7 = inlined_call_operand.vmem [shape: f32[64,1], index: 7, kind: input, shape index: {}]   ;;  %s5597_s8 = inlined_call_operand.vmem [shape: f32[64,1], index: 8, kind: input, shape index: {}]   ;;  %s5598_s9 = inlined_call_operand.vmem [shape: f32[128,128], index: 9, kind: input, shape index: {}]   ;;  %s5599_s10 = inlined_call_operand.vmem [shape: f32[64,192], index: 10, kind: input, shape index: {}]   ;;  %s5600_s11 = inlined_call_operand.vmem [shape: f32[64,1], index: 11, kind: input, shape index: {}]   ;;  %s5601_s12 = inlined_call_operand.vmem [shape: f32[64,32], index: 12, kind: input, shape index: {}]   ;;  %s5602_s13 = inlined_call_operand.vmem [shape: f32[64,1], index: 13, kind: input, shape index: {}]   ;;  %s5603_s14 = inlined_call_operand.hbm [shape: f32[4,64,128], index: 14, kind: output, shape index: {}]  }
   0x1   :  { %5608 = sst [smem:[#allocation6_spill]] %s5589_s0 }
   0x2   :  { %5609 = sst [smem:[#allocation7_spill]] %s5590_s1 }
   0x3   :  { %5610 = sst [smem:[#allocation8_spill]] %s5592_s3 }
   0x4   :  { %5611 = sst [smem:[#allocation9_spill]] %s5593_s4 }
   0x5   :  { %19 = vsyncpa [#allocation3], 0 }
   0x6   :  { %21 = vsyncpa [#allocation3 + $0x1], 0  ;;  %s4191_s29 = smov 0   ;;  %s4193_s30 = smov 0  }
   0x7   :  { %s4195_s15 = smov 0   ;;  %s4197_s16 = smov 0  }
   0x8 LB: > { %s4212_s17 = sadd.s32 4294967295, %s4107_s16   ;;  %s3280_s18 = sadd.s32 4294967294, %s4107_s16   ;;  %s4107_s16 = sphi %s4197_s16, %s5625_s16   ;;  %s4103_s15 = sphi %s4195_s15, %s5624_s15   ;;  %s4099_s30 = sphi %s4193_s30, %s5623_s30   ;;  %s4095_s29 = sphi %s4191_s29, %s5622_s29  }
   0x9   : > { %s4216_s19 = sadd.s32 1, %s4107_s16   ;;  %s338_s20 = sadd.s32 1, %s4103_s15 }
   0xa   : > { %s335_s21 = ssub.s32 %s4107_s16, %s4216_s19  ;;  %p348_p0 = scmp.ne.s32.totalorder %s4103_s15, %s4099_s30 }
   0xb   : > { %p336_p1 = scmp.eq.s32.totalorder %s335_s21, 0  ;;  %p349_p2 = scmp.eq.s32.totalorder %s4212_s17, 1 }
   0xc   : > { %p354_p3 = scmp.ne.s32.totalorder %s4099_s30, %s4095_s29  ;;  %p355_p4 = scmp.eq.s32.totalorder %s3280_s18, 1 }
   0xd   : > { %s4227_s22 = scalar_select %p336_p1, %s4103_s15, %s338_s20  }
   0xe   : > { %p4229_p5 = por %p349_p2, %p348_p0  ;;  %p4233_p6 = por %p355_p4, %p354_p3 }
   0xf   : > { %5612 = sst [smem:[#allocation5_spill]] %s4227_s22  ;;  %p3283_p7 = scmp.ge.s32.totalorder %s4107_s16, 1 }
  0x10   : > { %p429_p8 = scmp.lt.s32.totalorder %s4107_s16, 3 }
  0x12   : > { %p430_p9 = pnand %p3283_p7, %p429_p8 }
  0x13   : > { %s3285_s25 = sshll.u32 (!%p430_p9), %s4212_s17, 1  ;;  %s5615_s0 = sld [smem:[#allocation6_spill]] (!%p430_p9) }
  0x14   : > { %433 = sbr.rel (%p430_p9) target bundleno = 2833 (0xb11), region = 76  ;;  %p483_p10 = scmp.lt.s32.totalorder (!%p430_p9), %s3285_s25, 3 }
  0x15   : > { %s5616_s4 = sld [smem:[#allocation9_spill]] (!%p430_p9)  ;;  %s5606_s27 = smov (!%p430_p9), 1  }
  0x16   : > { %s5617_s3 = sld [smem:[#allocation8_spill]] (!%p430_p9)  ;;  %s5619_s20 = smov (!%p430_p9), 1  }
  0x17   : > { %s5618_s1 = sld [smem:[#allocation7_spill]] (!%p430_p9)  ;;  %s5620_s21 = smov (!%p430_p9), 127  }
  0x18   : > { %s479_s22 = sand.u32 (!%p430_p9), 1, %s4099_s30  }
  0x19   : > { %s5627_s25 = smov (!%p483_p10, %s3285_s25), 3  ;;  %vm589_vm0 = vcmask 523264   ;;  %v4109_v24 = vmov 0   ;;  %v502_v55 = vld [vmem:[%s5591_s2 + $0x8] sm:$0xff]  ;;  %v501_v57 = vld [vmem:[%s5591_s2] sm:$0xff]  ;;  %v504_v60 = vld [vmem:[%s5591_s2 + $0x18] sm:$0xff] }
  0x1a   : > { %s3429_s26 = sshll.u32 %s5627_s25, 5  ;;  %3919 = vset.pattern.permute.xlu1 %v4109_v24  ;;  %3918 = vset.pattern.permute.xlu0 %v4109_v24  ;;  %vm916_vm1 = vcmask 785408   ;;  %vm1817_vm4 = vcmask 261120   ;;  %s3284_s28 = sshll.u32 %s479_s22, 7 }
  0x1b   : > { %s4246_s18 = scalar_lea.vmem %s5615_s0, %s3429_s26  ;;  %v4275_v8 = vld [vmem:[%s5616_s4] sm:$0xff]  ;;  %v4282_v17 = vld [vmem:[%s5616_s4 + $0x8] sm:$0xff]  ;;  %v4287_v18 = vld [vmem:[%s5616_s4 + $0x10] sm:$0xff]  ;;  %s3430_s0 = sshll.u32 %s5627_s25, 6 }
  0x1c   : > { %v4249_v0 = vld [vmem:[%s4246_s18 + $0x18] sm:$0xff]  ;;  %v4252_v1 = vld [vmem:[%s4246_s18 + $0x10] sm:$0xff]  ;;  %v4255_v2 = vld [vmem:[%s4246_s18 + $0x8] sm:$0xff]  ;;  %3609 = vmatprep.mubr.msk.f32.mxu0 %vm589_vm0, %v4275_v8 }
  0x1d   : > { %v580_v3 = vmul.f32 %v4249_v0, %v4249_v0  ;;  %v578_v4 = vmul.f32 %v4255_v2, %v4255_v2  ;;  %v4262_v5 = vld [vmem:[%s4246_s18] sm:$0xff]  ;;  %v579_v6 = vmul.f32 %v4252_v1, %v4252_v1  ;;  %v4296_v19 = vld [vmem:[%s5616_s4 + $0x18] sm:$0xff]  ;;  %v4310_v21 = vld [vmem:[%s5616_s4 + $0x28] sm:$0xff] }
  0x1e   : > { %v577_v7 = vmul.f32 %v4262_v5, %v4262_v5  ;;  %v4301_v20 = vld [vmem:[%s5616_s4 + $0x20] sm:$0xff]  ;;  %v4315_v22 = vld [vmem:[%s5616_s4 + $0x30] sm:$0xff]  ;;  %v4324_v23 = vld [vmem:[%s5616_s4 + $0x38] sm:$0xff]  ;;  %s5604_s4 = smov 127  }
  0x1f   : > { %587 = vadd.xlane.f32.xlu0 %v580_v3  ;;  %583 = vadd.xlane.f32.xlu1 %v578_v4  ;;  %v508_v29 = vld [vmem:[%s5617_s3 + $0x18] sm:$0xff]  ;;  %v507_v42 = vld [vmem:[%s5617_s3 + $0x10] sm:$0xff]  ;;  %v505_v4 = vld [vmem:[%s5617_s3] sm:$0xff] }
  0x23   : > { %585 = vadd.xlane.f32.xlu0 %v579_v6  ;;  %581 = vadd.xlane.f32.xlu1 %v577_v7  ;;  %v503_v6 = vld [vmem:[%s5591_s2 + $0x10] sm:$0xff] }
  0x27   : > { %575 = vadd.xlane.f32.xlu0 %v4249_v0  ;;  %573 = vadd.xlane.f32.xlu1 %v4252_v1 }
  0x2b   : > { %571 = vadd.xlane.f32.xlu0 %v4255_v2  ;;  %569 = vadd.xlane.f32.xlu1 %v4262_v5 }
  0xa8   : > { %v588_v9 = vpop.xlane.xlu0 %587  ;;  %v584_v10 = vpop.xlane.xlu1 %583 }
  0xa9   : > { %3593 = vmatprep.subr.mxu0 %v588_v9 }
  0xaa   : > { %3594 = vmatpush3.msra.mxu0 %v588_v9  ;;  %v506_v9 = vld [vmem:[%s5617_s3 + $0x8] sm:$0xff]  ;;  %s4401_s3 = scalar_lea.vmem %s5618_s1, %s3430_s0  ;;  %s5498_s0 = scalar_lea.vmem [#allocation2], %s3284_s28 }
  0xab   : > { %s3206_s1 = sshll.u32 %s5498_s0, 4  ;;  %s5544_s1 = int_to_ptr.vmem [resolvable:$true] %s3206_s1 }
  0xac   : > { %v586_v11 = vpop.xlane.xlu0 %585  ;;  %v582_v12 = vpop.xlane.xlu1 %581  ;;  %s4047_s25 = scalar_lea.vmem %s5544_s1, 2048 }
  0xad   : > { %3595 = vmatprep.subr.mxu0 %v586_v11  ;;  %p4048_p11 = scmp.ne.s32.totalorder %s5544_s1, %s4047_s25 }
  0xae   : > { %3596 = vmatpush3.msra.mxu0 %v586_v11 }
  0xaf   : > { %3597 = vmatprep.subr.mxu0 %v584_v10  ;;  %p4049_p12 = pnand %p4048_p11, %p4229_p5 }
  0xb0   : > { %3598 = vmatpush3.msra.mxu0 %v584_v10  ;;  %v576_v13 = vpop.xlane.xlu0 %575  ;;  %v574_v14 = vpop.xlane.xlu1 %573 }
  0xb1   : > { %3599 = vmatprep.subr.mxu0 %v582_v12  ;;  %p4050_p13 = pneg %p4049_p12 }
  0xb2   : > { %3600 = vmatpush3.msra.mxu0 %v582_v12 }
  0xb3   : > { %3601 = vmatprep.subr.mxu0 %v576_v13 }
  0xb4   : > { %3602 = vmatpush3.msra.mxu0 %v576_v13  ;;  %v572_v15 = vpop.xlane.xlu0 %571  ;;  %v570_v16 = vpop.xlane.xlu1 %569 }
  0xb5   : > { %3603 = vmatprep.subr.mxu0 %v574_v14 }
  0xb6   : > { %3604 = vmatpush3.msra.mxu0 %v574_v14 }
  0xb7   : > { %3605 = vmatprep.subr.mxu0 %v572_v15 }
  0xb8   : > { %3606 = vmatpush3.msra.mxu0 %v572_v15 }
  0xb9   : > { %3607 = vmatprep.subr.mxu0 %v570_v16 }
  0xba   : > { %3608 = vmatpush3.msra.mxu0 %v570_v16 }
  0xbb   : > { %3610 = vmatmul.mubr.msk.f32.vlgmr.msra.gmra.mxu0 %vm589_vm0, %v4282_v17 }
  0xbc   : > { %3612 = vmatprep.mubr.msk.f32.mxu0 %vm589_vm0, %v4287_v18 }
  0xbf   : > { %3613 = vmatmul.mubr.msk.f32.gmra.mxu0 %vm589_vm0, %v4296_v19 }
  0xc0   : > { %3615 = vmatprep.mubr.msk.f32.mxu0 %vm589_vm0, %v4301_v20 }
  0xc3   : > { %3616 = vmatmul.mubr.msk.f32.gmra.mxu0 %vm589_vm0, %v4310_v21 }
  0xc4   : > { %3618 = vmatprep.mubr.msk.f32.mxu0 %vm589_vm0, %v4315_v22 }
  0xc7   : > { %3619 = vmatmul.mubr.msk.f32.gmra.mxu0 %vm589_vm0, %v4324_v23 }
 0x17b   : > { %v3611_v25 = vpop.f32.mrf.mxu0 }
 0x17c   : > { %v721_v26 = vmul.f32 0.0078125, %v3611_v25 }
 0x17d   : > { %v680_v27 = vpop.f32.mrf.mxu0 }
 0x17e   : > { %751 = vperm.xlu1 %3919, %v721_v26   ;;  %v720_v32 = vmul.f32 0.0078125, %v680_v27  ;;  %v729_v34 = vmul.f32 %v721_v26, %v721_v26 }
 0x17f   : > { %v3614_v28 = vpop.f32.mrf.mxu0 }
 0x180   : > { %v723_v30 = vmul.f32 0.0078125, %v3614_v28  ;;  %v728_v38 = vmul.f32 %v720_v32, %v720_v32 }
 0x181   : > { %v690_v31 = vpop.f32.mrf.mxu0 }
 0x182   : > { %813 = vperm.xlu1 %3919, %v508_v29   ;;  %761 = vperm.xlu0 %3918, %v723_v30   ;;  %v722_v36 = vmul.f32 0.0078125, %v690_v31  ;;  %v731_v43 = vmul.f32 %v723_v30, %v723_v30 }
 0x183   : > { %v3617_v33 = vpop.f32.mrf.mxu0 }
 0x184   : > { %v725_v35 = vmul.f32 0.0078125, %v3617_v33  ;;  %v730_v47 = vmul.f32 %v722_v36, %v722_v36 }
 0x185   : > { %v700_v37 = vpop.f32.mrf.mxu0 }
 0x186   : > { %v733_v39 = vsub.f32 %v725_v35, %v729_v34  ;;  %v724_v40 = vmul.f32 0.0078125, %v700_v37  ;;  %746 = vperm.xlu1 %3919, %v720_v32  }
 0x187   : > { %v3620_v41 = vpop.f32.mrf.mxu0 }
 0x188   : > { %v737_v44 = vadd.f32 1e-06, %v733_v39  ;;  %v732_v45 = vsub.f32 %v724_v40, %v728_v38  ;;  %v727_v46 = vmul.f32 0.0078125, %v3620_v41 }
 0x189   : > { %v710_v48 = vpop.f32.mrf.mxu0 }
 0x18a   : > { %3920 = vrsqrt.f32 %v737_v44  ;;  %v736_v49 = vadd.f32 1e-06, %v732_v45  ;;  %v735_v50 = vsub.f32 %v727_v46, %v731_v43  ;;  %v726_v51 = vmul.f32 0.0078125, %v710_v48  ;;  %808 = vperm.xlu1 %3919, %v507_v42  }
 0x18c   : > { %3922 = vrsqrt.f32 %v736_v49  ;;  %v739_v52 = vadd.f32 1e-06, %v735_v50  ;;  %v734_v53 = vsub.f32 %v726_v51, %v730_v47 }
 0x18e   : > { %3924 = vrsqrt.f32 %v739_v52  ;;  %v738_v54 = vadd.f32 1e-06, %v734_v53  ;;  %756 = vperm.xlu1 %3919, %v722_v36  }
 0x190   : > { %3926 = vrsqrt.f32 %v738_v54 }
 0x197   : > { %v3921_v56 = vpop.eup %3920 }
 0x198   : > { %v769_v58 = vmul.f32 %v3921_v56, %v502_v55 }
 0x199   : > { %v3923_v59 = vpop.eup %3922 }
 0x19a   : > { %779 = vperm.xlu1 %3919, %v769_v58   ;;  %v768_v61 = vmul.f32 %v3923_v59, %v501_v57 }
 0x19b   : > { %v3925_v62 = vpop.eup %3924 }
 0x19c   : > { %774 = vperm.xlu0 %3918, %v768_v61   ;;  %v771_v63 = vmul.f32 %v3925_v62, %v504_v60  ;;  %v868_v61 = vld [vmem:[%s5594_s5] sm:$0xff]  ;;  %v524_v62 = vld [vmem:[%s5595_s6 + $0x38] sm:$0xff] }
 0x19d   : > { %v3927_v3 = vpop.eup %3926  ;;  %3645 = vmatprep.mubr.msk.f32.mxu1 %vm916_vm1, %v868_v61 }
 0x19e   : > { %789 = vperm.xlu1 %3919, %v771_v63   ;;  %v770_v7 = vmul.f32 %v3927_v3, %v503_v6  ;;  %v523_v63 = vld [vmem:[%s5595_s6 + $0x30] sm:$0xff]  ;;  %v1053_v3 = vld [vmem:[%s4401_s3 + $0x38] sm:$0xff] }
 0x19f   : > { %v1052_v6 = vld [vmem:[%s4401_s3 + $0x30] sm:$0xff] }
 0x1a0   : > { %798 = vperm.xlu0 %3918, %v505_v4   ;;  %v522_v4 = vld [vmem:[%s5595_s6 + $0x28] sm:$0xff] }
 0x1a2   : > { %784 = vperm.xlu1 %3919, %v770_v7   ;;  %v521_v7 = vld [vmem:[%s5595_s6 + $0x20] sm:$0xff] }
 0x1a6   : > { %803 = vperm.xlu1 %3919, %v506_v9   ;;  %v1051_v9 = vld [vmem:[%s4401_s3 + $0x28] sm:$0xff] }
 0x1f9   : > { %v752_v10 = vpop.permute.xlu1 %751 }
 0x1fa   : > { %v765_v35 = vsub.f32 %v4255_v2, %v752_v10  ;;  %v520_v10 = vld [vmem:[%s5595_s6 + $0x18] sm:$0xff] }
 0x1fd   : > { %v4352_v11 = vpop.permute.xlu1 %813  ;;  %v762_v15 = vpop.permute.xlu0 %761 }
 0x1fe   : > { %v767_v25 = vsub.f32 %v4249_v0, %v762_v15  ;;  %v1049_v15 = vld [vmem:[%s4401_s3 + $0x18] sm:$0xff] }
 0x201   : > { %v747_v12 = vpop.permute.xlu1 %746 }
 0x202   : > { %v764_v26 = vsub.f32 %v4262_v5, %v747_v12  ;;  %v1050_v12 = vld [vmem:[%s4401_s3 + $0x20] sm:$0xff] }
 0x205   : > { %v4354_v13 = vpop.permute.xlu1 %808 }
 0x209   : > { %v757_v14 = vpop.permute.xlu1 %756 }
 0x20a   : > { %v766_v31 = vsub.f32 %v4252_v1, %v757_v14  ;;  %v519_v14 = vld [vmem:[%s5595_s6 + $0x10] sm:$0xff] }
 0x215   : > { %v780_v16 = vpop.permute.xlu1 %779 }
 0x216   : > { %v793_v39 = vmul.f32 %v780_v16, %v765_v35  ;;  %v518_v16 = vld [vmem:[%s5595_s6 + $0x8] sm:$0xff] }
 0x217   : > { %v775_v24 = vpop.permute.xlu0 %774 }
 0x218   : > { %v792_v28 = vmul.f32 %v775_v24, %v764_v26  ;;  %v1048_v24 = vld [vmem:[%s4401_s3 + $0x10] sm:$0xff]  ;;  %v1047_v26 = vld [vmem:[%s4401_s3 + $0x8] sm:$0xff] }
 0x219   : > { %v790_v27 = vpop.permute.xlu1 %789 }
 0x21a   : > { %v795_v29 = vmul.f32 %v790_v27, %v767_v25  ;;  %v517_v25 = vld [vmem:[%s5595_s6] sm:$0xff] }
 0x21b   : > { %v4358_v30 = vpop.permute.xlu0 %798  ;;  %v1046_v27 = vld [vmem:[%s4401_s3] sm:$0xff] }
 0x21c   : > { %v819_v32 = vadd.f32 %v4352_v11, %v795_v29  ;;  %v816_v33 = vadd.f32 %v4358_v30, %v792_v28  ;;  %v497_v28 = vlaneseq }
 0x21d   : > { %v785_v34 = vpop.permute.xlu1 %784 }
 0x21e   : > { %v823_v36 = vmul.f32 0.5, %v819_v32  ;;  %v820_v37 = vmul.f32 0.5, %v816_v33  ;;  %v794_v38 = vmul.f32 %v785_v34, %v766_v31  ;;  %v4434_v29 = vand.u32 127, %v497_v28 }
 0x220   : > { %3928 = vtanh.f32 %v823_v36  ;;  %v818_v40 = vadd.f32 %v4354_v13, %v794_v38  ;;  %vm500_vm2 = vcmp.le.s32.totalorder %v4434_v29, 126  ;;  %vm499_vm3 = vcmp.ge.s32.totalorder %v4434_v29, 1  ;;  %v2851_v29 = vld [vmem:[%s5599_s10 + $0x38] sm:$0xff] }
 0x221   : > { %v4365_v41 = vpop.permute.xlu1 %803  ;;  %3930 = vtanh.f32 %v820_v37 }
 0x222   : > { %v822_v42 = vmul.f32 0.5, %v818_v40  ;;  %v817_v43 = vadd.f32 %v4365_v41, %v793_v39  ;;  %v869_v39 = vld [vmem:[%s5594_s5 + $0x8] sm:$0xff] }
 0x224   : > { %3932 = vtanh.f32 %v822_v42  ;;  %v821_v44 = vmul.f32 0.5, %v817_v43  ;;  %v871_v42 = vld [vmem:[%s5594_s5 + $0x18] sm:$0xff] }
 0x226   : > { %3934 = vtanh.f32 %v821_v44  ;;  %v873_v44 = vld [vmem:[%s5594_s5 + $0x28] sm:$0xff] }
 0x22d   : > { %v3929_v45 = vpop.eup %3928 }
 0x22e   : > { %v831_v46 = vadd.f32 1.0, %v3929_v45  ;;  %v3931_v47 = vpop.eup %3930  ;;  %v874_v45 = vld [vmem:[%s5594_s5 + $0x30] sm:$0xff] }
 0x22f   : > { %v828_v51 = vadd.f32 1.0, %v3931_v47 }
 0x230   : > { %v835_v48 = vmul.f32 0.5, %v831_v46  ;;  %v875_v46 = vld [vmem:[%s5594_s5 + $0x38] sm:$0xff] }
 0x231   : > { %v3933_v49 = vpop.eup %3932  ;;  %v832_v56 = vmul.f32 0.5, %v828_v51 }
 0x232   : > { %v4368_v50 = vmul.f32 %v835_v48, %v819_v32  ;;  %v830_v52 = vadd.f32 1.0, %v3933_v49 }
 0x233   : > { %v3935_v53 = vpop.eup %3934  ;;  %v4378_v60 = vmul.f32 %v832_v56, %v816_v33 }
 0x234   : > { %v834_v54 = vmul.f32 0.5, %v830_v52  ;;  %v829_v55 = vadd.f32 1.0, %v3935_v53  ;;  %860 = vrot.lane.b32.xlu1 %v4368_v50, %s5604_s4 }
 0x236   : > { %v4372_v57 = vmul.f32 %v834_v54, %v818_v40  ;;  %v833_v58 = vmul.f32 0.5, %v829_v55  ;;  %v870_v40 = vld [vmem:[%s5594_s5 + $0x10] sm:$0xff] }
 0x238   : > { %v4374_v59 = vmul.f32 %v833_v58, %v817_v43  ;;  %858 = vrot.lane.b32.xlu0 %v4372_v57, %s5604_s4  ;;  %v872_v43 = vld [vmem:[%s5594_s5 + $0x20] sm:$0xff] }
 0x23a   : > { %856 = vrot.lane.b32.xlu1 %v4374_v59, %s5604_s4 }
 0x23c   : > { %854 = vrot.lane.b32.xlu0 %v4378_v60, %s5604_s4 }
 0x23e   : > { %846 = vrot.lane.b32.xlu1 %v4368_v50, %s5606_s27 }
 0x240   : > { %844 = vrot.lane.b32.xlu0 %v4372_v57, %s5606_s27 }
 0x242   : > { %842 = vrot.lane.b32.xlu1 %v4374_v59, %s5606_s27 }
 0x244   : > { %840 = vrot.lane.b32.xlu0 %v4378_v60, %s5606_s27 }
 0x246   : > { %913 = vperm.xlu1 %3919, %v524_v62  }
 0x248   : > { %908 = vperm.xlu0 %3918, %v523_v63  }
 0x24a   : > { %1091 = vperm.xlu1 %3919, %v1053_v3  }
 0x24c   : > { %903 = vperm.xlu0 %3918, %v522_v4  }
 0x24e   : > { %1086 = vperm.xlu1 %3919, %v1052_v6  }
 0x250   : > { %898 = vperm.xlu0 %3918, %v521_v7  }
 0x252   : > { %1081 = vperm.xlu1 %3919, %v1051_v9  }
 0x254   : > { %893 = vperm.xlu0 %3918, %v520_v10  }
 0x256   : > { %1076 = vperm.xlu1 %3919, %v1050_v12  }
 0x258   : > { %888 = vperm.xlu0 %3918, %v519_v14  }
 0x25a   : > { %1071 = vperm.xlu1 %3919, %v1049_v15  }
 0x25c   : > { %883 = vperm.xlu0 %3918, %v518_v16  }
 0x25e   : > { %1066 = vperm.xlu1 %3919, %v1048_v24  }
 0x260   : > { %878 = vperm.xlu0 %3918, %v517_v25  }
 0x262   : > { %1061 = vperm.xlu1 %3919, %v1047_v26  }
 0x264   : > { %1056 = vperm.xlu0 %3918, %v1046_v27  }
 0x2a6   : > { %v861_v31 = vpop.permute.xlu1 %860 }
 0x2a7   : > { %3621 = vmatprep.subr.msk.mxu1 %vm500_vm2, %v861_v31 }
 0x2a8   : > { %3622 = vmatpush3.msk.msra.mxu1 %vm500_vm2, %v861_v31 }
 0x2aa   : > { %v859_v32 = vpop.permute.xlu0 %858 }
 0x2ab   : > { %3623 = vmatprep.subr.msk.mxu1 %vm500_vm2, %v859_v32 }
 0x2ac   : > { %3624 = vmatpush3.msk.msra.mxu1 %vm500_vm2, %v859_v32  ;;  %v857_v33 = vpop.permute.xlu1 %856 }
 0x2ad   : > { %3625 = vmatprep.subr.msk.mxu1 %vm500_vm2, %v857_v33 }
 0x2ae   : > { %v855_v34 = vpop.permute.xlu0 %854  ;;  %3626 = vmatpush3.msk.msra.mxu1 %vm500_vm2, %v857_v33 }
 0x2af   : > { %3627 = vmatprep.subr.msk.mxu1 %vm500_vm2, %v855_v34 }
 0x2b0   : > { %3628 = vmatpush3.msk.msra.mxu1 %vm500_vm2, %v855_v34  ;;  %v847_v35 = vpop.permute.xlu1 %846 }
 0x2b1   : > { %3629 = vmatprep.subr.mxu1 %v4368_v50 }
 0x2b2   : > { %3630 = vmatpush3.msra.mxu1 %v4368_v50  ;;  %v845_v36 = vpop.permute.xlu0 %844 }
 0x2b3   : > { %3631 = vmatprep.subr.mxu1 %v4372_v57 }
 0x2b4   : > { %3632 = vmatpush3.msra.mxu1 %v4372_v57  ;;  %v843_v37 = vpop.permute.xlu1 %842 }
 0x2b5   : > { %3633 = vmatprep.subr.mxu1 %v4374_v59 }
 0x2b6   : > { %3634 = vmatpush3.msra.mxu1 %v4374_v59  ;;  %v841_v38 = vpop.permute.xlu0 %840 }
 0x2b7   : > { %3635 = vmatprep.subr.mxu1 %v4378_v60 }
 0x2b8   : > { %3636 = vmatpush3.msra.mxu1 %v4378_v60 }
 0x2b9   : > { %3637 = vmatprep.subr.msk.mxu1 %vm499_vm3, %v847_v35 }
 0x2ba   : > { %3638 = vmatpush3.msk.msra.mxu1 %vm499_vm3, %v847_v35 }
 0x2bb   : > { %3639 = vmatprep.subr.msk.mxu1 %vm499_vm3, %v845_v36 }
 0x2bc   : > { %3640 = vmatpush3.msk.msra.mxu1 %vm499_vm3, %v845_v36 }
 0x2bd   : > { %3641 = vmatprep.subr.msk.mxu1 %vm499_vm3, %v843_v37 }
 0x2be   : > { %3642 = vmatpush3.msk.msra.mxu1 %vm499_vm3, %v843_v37 }
 0x2bf   : > { %3643 = vmatprep.subr.msk.mxu1 %vm499_vm3, %v841_v38 }
 0x2c0   : > { %3644 = vmatpush3.msk.msra.mxu1 %vm499_vm3, %v841_v38 }
 0x2c1   : > { %3646 = vmatmul.mubr.msk.f32.vlgmr.msra.gmra.mxu1 %vm916_vm1, %v869_v39  ;;  %v4508_v48 = vpop.permute.xlu1 %913 }
 0x2c2   : > { %3648 = vmatprep.mubr.msk.f32.mxu1 %vm916_vm1, %v870_v40 }
 0x2c3   : > { %v4506_v47 = vpop.permute.xlu0 %908 }
 0x2c5   : > { %3649 = vmatmul.mubr.msk.f32.gmra.mxu1 %vm916_vm1, %v871_v42  ;;  %v1092_v50 = vpop.permute.xlu1 %1091 }
 0x2c6   : > { %3651 = vmatprep.mubr.msk.f32.mxu1 %vm916_vm1, %v872_v43 }
 0x2c7   : > { %v4510_v49 = vpop.permute.xlu0 %903 }
 0x2c9   : > { %3652 = vmatmul.mubr.msk.f32.gmra.mxu1 %vm916_vm1, %v873_v44  ;;  %v1087_v52 = vpop.permute.xlu1 %1086 }
 0x2ca   : > { %3654 = vmatprep.mubr.msk.f32.mxu1 %vm916_vm1, %v874_v45 }
 0x2cb   : > { %v4512_v51 = vpop.permute.xlu0 %898 }
 0x2cd   : > { %3655 = vmatmul.mubr.msk.f32.gmra.mxu1 %vm916_vm1, %v875_v46  ;;  %v1082_v55 = vpop.permute.xlu1 %1081 }
 0x2cf   : > { %v4514_v53 = vpop.permute.xlu0 %893 }
 0x2d1   : > { %v1077_v60 = vpop.permute.xlu1 %1076 }
 0x2d3   : > { %v4516_v58 = vpop.permute.xlu0 %888 }
 0x2d5   : > { %v1072_v7 = vpop.permute.xlu1 %1071 }
 0x2d7   : > { %v4518_v63 = vpop.permute.xlu0 %883 }
 0x2d9   : > { %v1067_v32 = vpop.permute.xlu1 %1066 }
 0x2db   : > { %v4533_v26 = vpop.permute.xlu0 %878 }
 0x2dd   : > { %v1062_v43 = vpop.permute.xlu1 %1061 }
 0x2df   : > { %v1057_v39 = vpop.permute.xlu0 %1056 }
 0x381   : > { %v3647_v54 = vpop.f32.mrf.mxu1 }
 0x382   : > { %v1013_v36 = vadd.f32 %v3647_v54, %v4518_v63  ;;  %v4572_v54 = vld [vmem:[%s4246_s18 + $0x38] sm:$0xff] }
 0x383   : > { %v1007_v56 = vpop.f32.mrf.mxu1 }
 0x384   : > { %v1008_v33 = vadd.f32 %v1007_v56, %v4533_v26  ;;  %v4554_v44 = vadd.f32 %v1062_v43, %v1013_v36  ;;  %v4578_v56 = vld [vmem:[%s4246_s18 + $0x20] sm:$0xff] }
 0x385   : > { %v3650_v57 = vpop.f32.mrf.mxu1 }
 0x386   : > { %v1023_v27 = vadd.f32 %v3650_v57, %v4514_v53  ;;  %v4550_v40 = vadd.f32 %v1057_v39, %v1008_v33  ;;  %v1979_v57 = vmul.f32 %v4572_v54, %v4572_v54 }
 0x387   : > { %v1017_v59 = vpop.f32.mrf.mxu1 }
 0x388   : > { %v1018_v15 = vadd.f32 %v1017_v59, %v4516_v58  ;;  %v4546_v37 = vadd.f32 %v1072_v7, %v1023_v27  ;;  %v1118_v46 = vmul.f32 %v4550_v40, %v4550_v40  ;;  %v4584_v59 = vld [vmem:[%s4246_s18 + $0x28] sm:$0xff] }
 0x389   : > { %v3653_v61 = vpop.f32.mrf.mxu1  ;;  %v538_v7 = vld [vmem:[%s5597_s8 + $0x28] sm:$0xff] }
 0x38a   : > { %v1033_v10 = vadd.f32 %v3653_v61, %v4510_v49  ;;  %v4541_v34 = vadd.f32 %v1067_v32, %v1018_v15  ;;  %v1121_v45 = vmul.f32 %v4546_v37, %v4546_v37  ;;  %v1977_v61 = vmul.f32 %v4584_v59, %v4584_v59 }
 0x38b   : > { %v1027_v62 = vpop.f32.mrf.mxu1 }
 0x38c   : > { %v1028_v4 = vadd.f32 %v1027_v62, %v4512_v51  ;;  %v4536_v28 = vadd.f32 %v1082_v55, %v1033_v10  ;;  %v1120_v42 = vmul.f32 %v4541_v34, %v4541_v34  ;;  %v4595_v62 = vld [vmem:[%s5598_s9] sm:$0xff] }
 0x38d   : > { %v3656_v3 = vpop.f32.mrf.mxu1  ;;  %3689 = vmatprep.mubr.f32.mxu0 %v4595_v62 }
 0x38e   : > { %v1043_v6 = vadd.f32 %v3656_v3, %v4508_v48  ;;  %v4527_v16 = vadd.f32 %v1077_v60, %v1028_v4  ;;  %v1123_v38 = vmul.f32 %v4536_v28, %v4536_v28  ;;  %v1976_v60 = vmul.f32 %v4578_v56, %v4578_v56  ;;  %v539_v3 = vld [vmem:[%s5597_s8 + $0x30] sm:$0xff]  ;;  %v537_v4 = vld [vmem:[%s5597_s8 + $0x20] sm:$0xff] }
 0x38f   : > { %v1037_v9 = vpop.f32.mrf.mxu1 }
 0x390   : > { %v4523_v12 = vadd.f32 %v1092_v50, %v1043_v6  ;;  %v1038_v14 = vadd.f32 %v1037_v9, %v4506_v47  ;;  %v1122_v35 = vmul.f32 %v4527_v16, %v4527_v16  ;;  %v1119_v50 = vmul.f32 %v4554_v44, %v4554_v44  ;;  %v540_v6 = vld [vmem:[%s5597_s8 + $0x38] sm:$0xff] }
 0x391   : > { %v536_v9 = vld [vmem:[%s5597_s8 + $0x18] sm:$0xff] }
 0x392   : > { %v4529_v24 = vadd.f32 %v1087_v52, %v1038_v14  ;;  %v1125_v25 = vmul.f32 %v4523_v12, %v4523_v12  ;;  %v4568_v52 = vld [vmem:[%s4246_s18 + $0x30] sm:$0xff] }
 0x393   : > { %v1978_v55 = vmul.f32 %v4568_v52, %v4568_v52 }
 0x394   : > { %1140 = vadd.xlane.f32.xlu1 %v1125_v25  ;;  %v1124_v31 = vmul.f32 %v4529_v24, %v4529_v24 }
 0x396   : > { %1138 = vadd.xlane.f32.xlu0 %v1124_v31 }
 0x398   : > { %1134 = vadd.xlane.f32.xlu1 %v1122_v35 }
 0x39a   : > { %1136 = vadd.xlane.f32.xlu0 %v1123_v38 }
 0x39c   : > { %1130 = vadd.xlane.f32.xlu1 %v1120_v42 }
 0x39e   : > { %1132 = vadd.xlane.f32.xlu0 %v1121_v45 }
 0x3a0   : > { %1126 = vadd.xlane.f32.xlu1 %v1118_v46 }
 0x3a2   : > { %1128 = vadd.xlane.f32.xlu0 %v1119_v50  ;;  %v542_v50 = vld [vmem:[%s5598_s9 + $0x8] sm:$0xff] }
 0x3a4   : > { %1114 = vadd.xlane.f32.xlu1 %v4529_v24 }
 0x3a6   : > { %1116 = vadd.xlane.f32.xlu0 %v4523_v12 }
 0x3a8   : > { %1110 = vadd.xlane.f32.xlu1 %v4527_v16 }
 0x3aa   : > { %1112 = vadd.xlane.f32.xlu0 %v4536_v28 }
 0x3ac   : > { %1106 = vadd.xlane.f32.xlu1 %v4541_v34 }
 0x3ae   : > { %1108 = vadd.xlane.f32.xlu0 %v4546_v37 }
 0x3b0   : > { %1102 = vadd.xlane.f32.xlu1 %v4550_v40 }
 0x3b2   : > { %1104 = vadd.xlane.f32.xlu0 %v4554_v44 }
 0x3b4   : > { %1984 = vadd.xlane.f32.xlu1 %v1978_v55  ;;  %v543_v55 = vld [vmem:[%s5598_s9 + $0x10] sm:$0xff] }
 0x3b6   : > { %1986 = vadd.xlane.f32.xlu0 %v1979_v57  ;;  %v544_v57 = vld [vmem:[%s5598_s9 + $0x18] sm:$0xff] }
 0x3b8   : > { %1980 = vadd.xlane.f32.xlu1 %v1976_v60  ;;  %v545_v60 = vld [vmem:[%s5598_s9 + $0x20] sm:$0xff] }
 0x3ba   : > { %1982 = vadd.xlane.f32.xlu0 %v1977_v61  ;;  %v546_v61 = vld [vmem:[%s5598_s9 + $0x28] sm:$0xff] }
 0x3bc   : > { %1972 = vadd.xlane.f32.xlu1 %v4568_v52 }
 0x3be   : > { %1974 = vadd.xlane.f32.xlu0 %v4572_v54 }
 0x3c0   : > { %1968 = vadd.xlane.f32.xlu1 %v4578_v56 }
 0x3c2   : > { %1970 = vadd.xlane.f32.xlu0 %v4584_v59 }
 0x3d1   : > { %1472 = vperm.xlu1 %3919, %v539_v3  }
 0x3d5   : > { %1462 = vperm.xlu1 %3919, %v537_v4   ;;  %v550_v4 = vld [vmem:[%s5598_s9 + $0x48] sm:$0xff] }
 0x3d8   : > { %1477 = vperm.xlu0 %3918, %v540_v6   ;;  %v552_v6 = vld [vmem:[%s5598_s9 + $0x58] sm:$0xff] }
 0x3dc   : > { %1467 = vperm.xlu0 %3918, %v538_v7   ;;  %v553_v7 = vld [vmem:[%s5598_s9 + $0x60] sm:$0xff] }
 0x3e0   : > { %1457 = vperm.xlu0 %3918, %v536_v9   ;;  %v554_v9 = vld [vmem:[%s5598_s9 + $0x68] sm:$0xff] }
 0x41d   : > { %v1141_v10 = vpop.xlane.xlu1 %1140 }
 0x41e   : > { %3657 = vmatprep.subr.mxu0 %v1141_v10 }
 0x41f   : > { %v1139_v14 = vpop.xlane.xlu0 %1138  ;;  %3658 = vmatpush3.msra.mxu0 %v1141_v10  ;;  %v555_v10 = vld [vmem:[%s5598_s9 + $0x70] sm:$0xff] }
 0x420   : > { %3659 = vmatprep.subr.mxu0 %v1139_v14 }
 0x421   : > { %3660 = vmatpush3.msra.mxu0 %v1139_v14  ;;  %v1135_v15 = vpop.xlane.xlu1 %1134  ;;  %v556_v14 = vld [vmem:[%s5598_s9 + $0x78] sm:$0xff] }
 0x423   : > { %v1137_v25 = vpop.xlane.xlu0 %1136 }
 0x424   : > { %3661 = vmatprep.subr.mxu0 %v1137_v25 }
 0x425   : > { %3662 = vmatpush3.msra.mxu0 %v1137_v25  ;;  %v1131_v27 = vpop.xlane.xlu1 %1130 }
 0x426   : > { %3663 = vmatprep.subr.mxu0 %v1135_v15 }
 0x427   : > { %v1133_v31 = vpop.xlane.xlu0 %1132  ;;  %3664 = vmatpush3.msra.mxu0 %v1135_v15  ;;  %v1761_v15 = vld [vmem:[%s5601_s12] sm:$0xff] }
 0x428   : > { %3665 = vmatprep.subr.mxu0 %v1133_v31 }
 0x429   : > { %3666 = vmatpush3.msra.mxu0 %v1133_v31  ;;  %v1127_v32 = vpop.xlane.xlu1 %1126  ;;  %v1763_v31 = vld [vmem:[%s5601_s12 + $0x10] sm:$0xff] }
 0x42a   : > { %3667 = vmatprep.subr.mxu0 %v1131_v27 }
 0x42b   : > { %v1129_v33 = vpop.xlane.xlu0 %1128  ;;  %3668 = vmatpush3.msra.mxu0 %v1131_v27  ;;  %v1762_v27 = vld [vmem:[%s5601_s12 + $0x8] sm:$0xff] }
 0x42c   : > { %3669 = vmatprep.subr.mxu0 %v1129_v33 }
 0x42d   : > { %3670 = vmatpush3.msra.mxu0 %v1129_v33  ;;  %v1115_v35 = vpop.xlane.xlu1 %1114 }
 0x42e   : > { %3671 = vmatprep.subr.mxu0 %v1127_v32 }
 0x42f   : > { %v1117_v36 = vpop.xlane.xlu0 %1116  ;;  %3672 = vmatpush3.msra.mxu0 %v1127_v32 }
 0x430   : > { %3673 = vmatprep.subr.mxu0 %v1117_v36 }
 0x431   : > { %3674 = vmatpush3.msra.mxu0 %v1117_v36  ;;  %v1111_v38 = vpop.xlane.xlu1 %1110  ;;  %v1765_v36 = vld [vmem:[%s5601_s12 + $0x20] sm:$0xff] }
 0x432   : > { %3675 = vmatprep.subr.mxu0 %v1115_v35 }
 0x433   : > { %v1113_v39 = vpop.xlane.xlu0 %1112  ;;  %3676 = vmatpush3.msra.mxu0 %v1115_v35  ;;  %v1764_v35 = vld [vmem:[%s5601_s12 + $0x18] sm:$0xff] }
 0x434   : > { %3677 = vmatprep.subr.mxu0 %v1113_v39 }
 0x435   : > { %3678 = vmatpush3.msra.mxu0 %v1113_v39  ;;  %v1107_v42 = vpop.xlane.xlu1 %1106  ;;  %v1766_v39 = vld [vmem:[%s5601_s12 + $0x28] sm:$0xff] }
 0x436   : > { %3679 = vmatprep.subr.mxu0 %v1111_v38 }
 0x437   : > { %v1109_v43 = vpop.xlane.xlu0 %1108  ;;  %3680 = vmatpush3.msra.mxu0 %v1111_v38 }
 0x438   : > { %3681 = vmatprep.subr.mxu0 %v1109_v43 }
 0x439   : > { %3682 = vmatpush3.msra.mxu0 %v1109_v43  ;;  %v1103_v46 = vpop.xlane.xlu1 %1102 }
 0x43a   : > { %3683 = vmatprep.subr.mxu0 %v1107_v42 }
 0x43b   : > { %v1105_v45 = vpop.xlane.xlu0 %1104  ;;  %3684 = vmatpush3.msra.mxu0 %v1107_v42  ;;  %v1767_v42 = vld [vmem:[%s5601_s12 + $0x30] sm:$0xff] }
 0x43c   : > { %3685 = vmatprep.subr.mxu0 %v1105_v45 }
 0x43d   : > { %3686 = vmatpush3.msra.mxu0 %v1105_v45  ;;  %v1985_v25 = vpop.xlane.xlu1 %1984  ;;  %v1768_v45 = vld [vmem:[%s5601_s12 + $0x38] sm:$0xff] }
 0x43e   : > { %3687 = vmatprep.subr.mxu0 %v1103_v46 }
 0x43f   : > { %3688 = vmatpush3.msra.mxu0 %v1103_v46  ;;  %v1987_v3 = vpop.xlane.xlu0 %1986 }
 0x440   : > { %3690 = vmatmul.mubr.f32.vlgmr.msra.gmra.mxu0 %v542_v50  ;;  %3713 = vmatprep.subr.mxu0 %v4249_v0 }
 0x441   : > { %3692 = vmatprep.mubr.f32.mxu0 %v543_v55  ;;  %3714 = vmatpush3.msra.mxu0 %v4249_v0  ;;  %v547_v0 = vld [vmem:[%s5598_s9 + $0x30] sm:$0xff]  ;;  %v1981_v33 = vpop.xlane.xlu1 %1980 }
 0x442   : > { %3715 = vmatprep.subr.mxu0 %v4252_v1 }
 0x443   : > { %3716 = vmatpush3.msra.mxu0 %v4252_v1  ;;  %v548_v1 = vld [vmem:[%s5598_s9 + $0x38] sm:$0xff]  ;;  %v1983_v32 = vpop.xlane.xlu0 %1982 }
 0x444   : > { %3693 = vmatmul.mubr.f32.gmra.mxu0 %v544_v57  ;;  %3717 = vmatprep.subr.mxu0 %v4255_v2 }
 0x445   : > { %3695 = vmatprep.mubr.f32.mxu0 %v545_v60  ;;  %3718 = vmatpush3.msra.mxu0 %v4255_v2  ;;  %v549_v2 = vld [vmem:[%s5598_s9 + $0x40] sm:$0xff]  ;;  %v1973_v43 = vpop.xlane.xlu1 %1972 }
 0x446   : > { %3719 = vmatprep.subr.mxu0 %v4262_v5 }
 0x447   : > { %3720 = vmatpush3.msra.mxu0 %v4262_v5  ;;  %v551_v5 = vld [vmem:[%s5598_s9 + $0x50] sm:$0xff]  ;;  %v1975_v38 = vpop.xlane.xlu0 %1974 }
 0x448   : > { %3696 = vmatmul.mubr.f32.gmra.mxu0 %v546_v61  ;;  %3733 = vmatprep.subr.mxu0 %v1987_v3 }
 0x449   : > { %3698 = vmatprep.mubr.f32.mxu0 %v547_v0  ;;  %v1969_v50 = vpop.xlane.xlu1 %1968 }
 0x44b   : > { %v1971_v46 = vpop.xlane.xlu0 %1970 }
 0x44c   : > { %3699 = vmatmul.mubr.f32.gmra.mxu0 %v548_v1 }
 0x44d   : > { %3701 = vmatprep.mubr.f32.mxu0 %v549_v2 }
 0x450   : > { %3702 = vmatmul.mubr.f32.gmra.mxu0 %v550_v4 }
 0x451   : > { %3704 = vmatprep.mubr.f32.mxu0 %v551_v5 }
 0x454   : > { %3705 = vmatmul.mubr.f32.gmra.mxu0 %v552_v6 }
 0x455   : > { %3707 = vmatprep.mubr.f32.mxu0 %v553_v7 }
 0x458   : > { %3708 = vmatmul.mubr.f32.gmra.mxu0 %v554_v9 }
 0x459   : > { %3710 = vmatprep.mubr.f32.mxu0 %v555_v10 }
 0x45c   : > { %3711 = vmatmul.mubr.f32.gmra.mxu0 %v556_v14 }
 0x45d   : > { %3721 = vmatprep.mubr.msk.f32.mxu0 %vm1817_vm4, %v1761_v15 }
 0x460   : > { %3722 = vmatmul.mubr.msk.f32.vlgmr.msra.gmra.mxu0 %vm1817_vm4, %v1762_v27 }
 0x461   : > { %3734 = vmatpush3.msra.mxu0 %v1987_v3  ;;  %3724 = vmatprep.mubr.msk.f32.mxu0 %vm1817_vm4, %v1763_v31 }
 0x462   : > { %3735 = vmatprep.subr.mxu0 %v1985_v25 }
 0x463   : > { %3736 = vmatpush3.msra.mxu0 %v1985_v25 }
 0x464   : > { %3725 = vmatmul.mubr.msk.f32.gmra.mxu0 %vm1817_vm4, %v1764_v35  ;;  %3737 = vmatprep.subr.mxu0 %v1983_v32 }
 0x465   : > { %3738 = vmatpush3.msra.mxu0 %v1983_v32  ;;  %3727 = vmatprep.mubr.msk.f32.mxu0 %vm1817_vm4, %v1765_v36 }
 0x466   : > { %3739 = vmatprep.subr.mxu0 %v1981_v33 }
 0x467   : > { %3740 = vmatpush3.msra.mxu0 %v1981_v33 }
 0x468   : > { %3728 = vmatmul.mubr.msk.f32.gmra.mxu0 %vm1817_vm4, %v1766_v39  ;;  %3741 = vmatprep.subr.mxu0 %v1975_v38 }
 0x469   : > { %3742 = vmatpush3.msra.mxu0 %v1975_v38  ;;  %3730 = vmatprep.mubr.msk.f32.mxu0 %vm1817_vm4, %v1767_v42 }
 0x46a   : > { %3743 = vmatprep.subr.mxu0 %v1973_v43 }
 0x46b   : > { %3744 = vmatpush3.msra.mxu0 %v1973_v43 }
 0x46c   : > { %3731 = vmatmul.mubr.msk.f32.gmra.mxu0 %vm1817_vm4, %v1768_v45  ;;  %3745 = vmatprep.subr.mxu0 %v1971_v46 }
 0x46d   : > { %3746 = vmatpush3.msra.mxu0 %v1971_v46  ;;  %3749 = vmatprep.mubr.msk.f32.mxu0 %vm589_vm0, %v4275_v8 }
 0x46e   : > { %3747 = vmatprep.subr.mxu0 %v1969_v50 }
 0x46f   : > { %3748 = vmatpush3.msra.mxu0 %v1969_v50 }
 0x470   : > { %3750 = vmatmul.mubr.msk.f32.vlgmr.msra.gmra.mxu0 %vm589_vm0, %v4282_v17 }
 0x471   : > { %3752 = vmatprep.mubr.msk.f32.mxu0 %vm589_vm0, %v4287_v18 }
 0x474   : > { %3753 = vmatmul.mubr.msk.f32.gmra.mxu0 %vm589_vm0, %v4296_v19 }
 0x475   : > { %3755 = vmatprep.mubr.msk.f32.mxu0 %vm589_vm0, %v4301_v20 }
 0x478   : > { %3756 = vmatmul.mubr.msk.f32.gmra.mxu0 %vm589_vm0, %v4310_v21 }
 0x479   : > { %3758 = vmatprep.mubr.msk.f32.mxu0 %vm589_vm0, %v4315_v22 }
 0x47c   : > { %3759 = vmatmul.mubr.msk.f32.gmra.mxu0 %vm589_vm0, %v4324_v23 }
 0x47d   : > { %3829 = vmatprep.mubr.f32.mxu0 %v4595_v62 }
 0x500   : > { %v3691_v8 = vpop.f32.mrf.mxu0 }
 0x501   : > { %v1289_v17 = vmul.f32 0.00390625, %v3691_v8 }
 0x502   : > { %v1208_v18 = vpop.f32.mrf.mxu0 }
 0x503   : > { %1343 = vperm.xlu0 %3918, %v1289_v17   ;;  %v1305_v9 = vmul.f32 %v1289_v17, %v1289_v17  ;;  %v4717_v10 = vmul.f32 0.00390625, %v1208_v18 }
 0x504   : > { %v3694_v55 = vpop.f32.mrf.mxu0 }
 0x505   : > { %v1291_v19 = vmul.f32 0.00390625, %v3694_v55  ;;  %v1304_v42 = vmul.f32 %v4717_v10, %v4717_v10 }
 0x506   : > { %v1218_v57 = vpop.f32.mrf.mxu0 }
 0x507   : > { %v1290_v60 = vmul.f32 0.00390625, %v1218_v57  ;;  %1353 = vperm.xlu0 %3918, %v1291_v19   ;;  %v1307_v6 = vmul.f32 %v1291_v19, %v1291_v19 }
 0x508   : > { %v3697_v20 = vpop.f32.mrf.mxu0 }
 0x509   : > { %v1293_v61 = vmul.f32 0.00390625, %v3697_v20  ;;  %1348 = vperm.xlu1 %3919, %v1290_v60   ;;  %v1306_v15 = vmul.f32 %v1290_v60, %v1290_v60 }
 0x50a   : > { %v1228_v21 = vpop.f32.mrf.mxu0 }
 0x50b   : > { %v1292_v0 = vmul.f32 0.00390625, %v1228_v21  ;;  %1363 = vperm.xlu0 %3918, %v1293_v61   ;;  %v1309_v35 = vmul.f32 %v1293_v61, %v1293_v61 }
 0x50c   : > { %v3700_v22 = vpop.f32.mrf.mxu0 }
 0x50d   : > { %v1295_v3 = vmul.f32 0.00390625, %v3700_v22  ;;  %1358 = vperm.xlu1 %3919, %v1292_v0   ;;  %v1308_v43 = vmul.f32 %v1292_v0, %v1292_v0 }
 0x50e   : > { %v1238_v23 = vpop.f32.mrf.mxu0 }
 0x50f   : > { %v1294_v62 = vmul.f32 0.00390625, %v1238_v23  ;;  %1373 = vperm.xlu0 %3918, %v1295_v3   ;;  %v1311_v17 = vmul.f32 %v1295_v3, %v1295_v3 }
 0x510   : > { %v3703_v1 = vpop.f32.mrf.mxu0 }
 0x511   : > { %1368 = vperm.xlu1 %3919, %v1294_v62   ;;  %v1297_v4 = vmul.f32 0.00390625, %v3703_v1  ;;  %v1310_v61 = vmul.f32 %v1294_v62, %v1294_v62 }
 0x512   : > { %v1248_v2 = vpop.f32.mrf.mxu0 }
 0x513   : > { %v1313_v31 = vsub.f32 %v1297_v4, %v1305_v9  ;;  %v1296_v32 = vmul.f32 0.00390625, %v1248_v2  ;;  %v528_v9 = vld [vmem:[%s5596_s7 + $0x18] sm:$0xff] }
 0x514   : > { %v3706_v5 = vpop.f32.mrf.mxu0 }
 0x515   : > { %v1299_v7 = vmul.f32 0.00390625, %v3706_v5  ;;  %v1321_v18 = vadd.f32 1e-06, %v1313_v31  ;;  %v1312_v55 = vsub.f32 %v1296_v32, %v1304_v42 }
 0x516   : > { %v1258_v14 = vpop.f32.mrf.mxu0 }
 0x517   : > { %v1315_v25 = vsub.f32 %v1299_v7, %v1307_v6  ;;  %v1298_v27 = vmul.f32 0.00390625, %v1258_v14  ;;  %v1320_v2 = vadd.f32 1e-06, %v1312_v55  ;;  %v532_v55 = vld [vmem:[%s5596_s7 + $0x38] sm:$0xff] }
 0x518   : > { %v3709_v33 = vpop.f32.mrf.mxu0 }
 0x519   : > { %v1323_v36 = vadd.f32 1e-06, %v1315_v25  ;;  %v1314_v38 = vsub.f32 %v1298_v27, %v1306_v15  ;;  %v1301_v39 = vmul.f32 0.00390625, %v3709_v33  ;;  %v527_v25 = vld [vmem:[%s5596_s7 + $0x10] sm:$0xff]  ;;  %v530_v33 = vld [vmem:[%s5596_s7 + $0x28] sm:$0xff] }
 0x51a   : > { %v1268_v45 = vpop.f32.mrf.mxu0 }
 0x51b   : > { %3936 = vrsqrt.f32 %v1323_v36  ;;  %v1322_v46 = vadd.f32 1e-06, %v1314_v38  ;;  %v1317_v50 = vsub.f32 %v1301_v39, %v1309_v35  ;;  %v1300_v8 = vmul.f32 0.00390625, %v1268_v45  ;;  %v529_v39 = vld [vmem:[%s5596_s7 + $0x20] sm:$0xff] }
 0x51c   : > { %v3712_v19 = vpop.f32.mrf.mxu0 }
 0x51d   : > { %3938 = vrsqrt.f32 %v1322_v46  ;;  %v1325_v57 = vadd.f32 1e-06, %v1317_v50  ;;  %v1316_v60 = vsub.f32 %v1300_v8, %v1308_v43  ;;  %v1303_v20 = vmul.f32 0.00390625, %v3712_v19  ;;  %v526_v50 = vld [vmem:[%s5596_s7 + $0x8] sm:$0xff] }
 0x51e   : > { %v1278_v21 = vpop.f32.mrf.mxu0 }
 0x51f   : > { %3940 = vrsqrt.f32 %v1325_v57  ;;  %v1324_v22 = vadd.f32 1e-06, %v1316_v60  ;;  %v1319_v23 = vsub.f32 %v1303_v20, %v1311_v17  ;;  %v1302_v1 = vmul.f32 0.00390625, %v1278_v21  ;;  %v525_v20 = vld [vmem:[%s5596_s7] sm:$0xff] }
 0x520   : > { %3942 = vrsqrt.f32 %v1321_v18  ;;  %v4721_v0 = vpop.f32.mrf.mxu0 }
 0x521   : > { %3944 = vrsqrt.f32 %v1324_v22  ;;  %v1327_v4 = vadd.f32 1e-06, %v1319_v23  ;;  %v1318_v3 = vsub.f32 %v1302_v1, %v1310_v61  ;;  %v531_v23 = vld [vmem:[%s5596_s7 + $0x30] sm:$0xff] }
 0x522   : > { %v4723_v5 = vpop.f32.mrf.mxu0 }
 0x523   : > { %3946 = vrsqrt.f32 %v1327_v4  ;;  %v1326_v6 = vadd.f32 1e-06, %v1318_v3 }
 0x524   : > { %v4725_v7 = vpop.f32.mrf.mxu0  ;;  %3948 = vrsqrt.f32 %v1320_v2 }
 0x525   : > { %3950 = vrsqrt.f32 %v1326_v6 }
 0x526   : > { %v4727_v62 = vpop.f32.mrf.mxu0 }
 0x528   : > { %v3937_v14 = vpop.eup %3936  ;;  %v4732_v15 = vpop.f32.mrf.mxu0 }
 0x529   : > { %v1387_v27 = vmul.f32 %v3937_v14, %v528_v9 }
 0x52a   : > { %v3939_v31 = vpop.eup %3938  ;;  %v4737_v32 = vpop.f32.mrf.mxu0 }
 0x52b   : > { %1409 = vperm.xlu0 %3918, %v1387_v27   ;;  %v1386_v35 = vmul.f32 %v3939_v31, %v527_v25  ;;  %v533_v25 = vld [vmem:[%s5597_s8] sm:$0xff] }
 0x52c   : > { %v3941_v36 = vpop.eup %3940  ;;  %v4742_v38 = vpop.f32.mrf.mxu0 }
 0x52d   : > { %v3943_v42 = vpop.eup %3942  ;;  %1404 = vperm.xlu1 %3919, %v1386_v35   ;;  %v1389_v43 = vmul.f32 %v3941_v36, %v530_v33 }
 0x52e   : > { %v3945_v45 = vpop.eup %3944  ;;  %v4747_v46 = vpop.f32.mrf.mxu0  ;;  %v1385_v19 = vmul.f32 %v3943_v42, %v526_v50 }
 0x52f   : > { %1419 = vperm.xlu0 %3918, %v1389_v43   ;;  %v1388_v8 = vmul.f32 %v3945_v45, %v529_v39 }
 0x530   : > { %v3947_v17 = vpop.eup %3946  ;;  %v3751_v18 = vpop.f32.mrf.mxu0 }
 0x531   : > { %1414 = vperm.xlu1 %3919, %v1388_v8   ;;  %v3949_v57 = vpop.eup %3948  ;;  %v1391_v61 = vmul.f32 %v3947_v17, %v532_v55  ;;  %v2094_v9 = vmul.f32 0.0078125, %v3751_v18  ;;  %v535_v18 = vld [vmem:[%s5597_s8 + $0x10] sm:$0xff] }
 0x532   : > { %v2054_v60 = vpop.f32.mrf.mxu0  ;;  %v3951_v21 = vpop.eup %3950  ;;  %v1384_v2 = vmul.f32 %v3949_v57, %v525_v20 }
 0x533   : > { %1399 = vperm.xlu0 %3918, %v1385_v19   ;;  %v2093_v1 = vmul.f32 0.0078125, %v2054_v60  ;;  %v1390_v6 = vmul.f32 %v3951_v21, %v531_v23  ;;  %v2102_v39 = vmul.f32 %v2094_v9, %v2094_v9  ;;  %v534_v21 = vld [vmem:[%s5597_s8 + $0x8] sm:$0xff]  ;;  %v4112_v23 = vmov 0.0  }
 0x534   : > { %v3754_v22 = vpop.f32.mrf.mxu0  ;;  %1656 = vmatprep.subr.mxu1 %v4112_v23 }
 0x535   : > { %1429 = vperm.xlu1 %3919, %v1391_v61   ;;  %v2096_v3 = vmul.f32 0.0078125, %v3754_v22  ;;  %v2101_v27 = vmul.f32 %v2093_v1, %v2093_v1 }
 0x536   : > { %v2064_v4 = vpop.f32.mrf.mxu0 }
 0x537   : > { %1394 = vperm.xlu0 %3918, %v1384_v2   ;;  %v2095_v31 = vmul.f32 0.0078125, %v2064_v4  ;;  %v2104_v35 = vmul.f32 %v2096_v3, %v2096_v3  ;;  %v4016_v4 = vld [vmem:[%s5591_s2] sm:$0xff] }
 0x538   : > { %v3757_v14 = vpop.f32.mrf.mxu0 }
 0x539   : > { %1424 = vperm.xlu1 %3919, %v1390_v6   ;;  %v2103_v43 = vmul.f32 %v2095_v31, %v2095_v31  ;;  %v2098_v45 = vmul.f32 0.0078125, %v3757_v14  ;;  %v4017_v14 = vld [vmem:[%s5591_s2 + $0x18] sm:$0xff] }
 0x53a   : > { %v2074_v33 = vpop.f32.mrf.mxu0 }
 0x53b   : > { %v2097_v36 = vmul.f32 0.0078125, %v2074_v33  ;;  %1442 = vperm.xlu0 %3918, %v533_v25   ;;  %v2106_v60 = vsub.f32 %v2098_v45, %v2102_v39  ;;  %v4019_v33 = vld [vmem:[%s5591_s2 + $0x8] sm:$0xff] }
 0x53c   : > { %v3760_v42 = vpop.f32.mrf.mxu0 }
 0x53d   : > { %v2105_v50 = vsub.f32 %v2097_v36, %v2101_v27  ;;  %v2100_v8 = vmul.f32 0.0078125, %v3760_v42  ;;  %1338 = vperm.xlu1 %3919, %v4717_v10   ;;  %v2110_v22 = vadd.f32 1e-06, %v2106_v60  ;;  %v4784_v36 = vpop.permute.xlu0 %1477 }
 0x53e   : > { %v2084_v17 = vpop.f32.mrf.mxu0 }
 0x53f   : > { %v2109_v55 = vadd.f32 1e-06, %v2105_v50  ;;  %v2108_v19 = vsub.f32 %v2100_v8, %v2104_v35  ;;  %v2099_v57 = vmul.f32 0.0078125, %v2084_v17  ;;  %2124 = vperm.xlu0 %3918, %v2094_v9  }
 0x541   : > { %3952 = vrsqrt.f32 %v2109_v55  ;;  %v2112_v20 = vadd.f32 1e-06, %v2108_v19  ;;  %v2107_v61 = vsub.f32 %v2099_v57, %v2103_v43  ;;  %1452 = vperm.xlu1 %3919, %v535_v18   ;;  %v4786_v39 = vpop.permute.xlu0 %1467  ;;  %v4790_v43 = vpop.permute.xlu1 %1472 }
 0x543   : > { %3954 = vrsqrt.f32 %v2112_v20  ;;  %v2111_v10 = vadd.f32 1e-06, %v2107_v61  ;;  %2129 = vperm.xlu0 %3918, %v2095_v31  }
 0x545   : > { %3956 = vrsqrt.f32 %v2111_v10  ;;  %1447 = vperm.xlu1 %3919, %v534_v21   ;;  %v4788_v42 = vpop.permute.xlu0 %1457  ;;  %v4792_v50 = vpop.permute.xlu1 %1462 }
 0x546   : > { %3958 = vrsqrt.f32 %v2110_v22 }
 0x547   : > { %2119 = vperm.xlu0 %3918, %v2093_v1   ;;  %v4018_v1 = vld [vmem:[%s5591_s2 + $0x10] sm:$0xff] }
 0x549   : > { %2134 = vperm.xlu1 %3919, %v2096_v3  }
 0x54e   : > { %v3953_v2 = vpop.eup %3952 }
 0x54f   : > { %v2141_v6 = vmul.f32 %v4016_v4, %v3953_v2 }
 0x550   : > { %v3955_v9 = vpop.eup %3954 }
 0x551   : > { %2147 = vperm.xlu0 %3918, %v2141_v6   ;;  %v2144_v25 = vmul.f32 %v4017_v14, %v3955_v9 }
 0x552   : > { %v3957_v27 = vpop.eup %3956 }
 0x553   : > { %2162 = vperm.xlu1 %3919, %v2144_v25   ;;  %v2143_v3 = vmul.f32 %v4018_v1, %v3957_v27  ;;  %v3959_v31 = vpop.eup %3958 }
 0x554   : > { %v2142_v35 = vmul.f32 %v4019_v33, %v3959_v31 }
 0x557   : > { %2157 = vperm.xlu1 %3919, %v2143_v3  }
 0x55b   : > { %2152 = vperm.xlu1 %3919, %v2142_v35  }
 0x57e   : > { %v1344_v45 = vpop.permute.xlu0 %1343 }
 0x582   : > { %v1354_v8 = vpop.permute.xlu0 %1353 }
 0x583   : > { %v1379_v10 = vsub.f32 %v4546_v37, %v1354_v8 }
 0x584   : > { %v1349_v17 = vpop.permute.xlu1 %1348 }
 0x586   : > { %v1364_v18 = vpop.permute.xlu0 %1363 }
 0x587   : > { %v1381_v61 = vsub.f32 %v4536_v28, %v1364_v18 }
 0x588   : > { %v1359_v55 = vpop.permute.xlu1 %1358 }
 0x589   : > { %v1380_v2 = vsub.f32 %v4527_v16, %v1359_v55 }
 0x58a   : > { %v1374_v19 = vpop.permute.xlu0 %1373 }
 0x58b   : > { %v1383_v27 = vsub.f32 %v4523_v12, %v1374_v19 }
 0x58c   : > { %v1369_v57 = vpop.permute.xlu1 %1368 }
 0x58d   : > { %v1382_v33 = vsub.f32 %v4529_v24, %v1369_v57 }
 0x5a6   : > { %v1410_v60 = vpop.permute.xlu0 %1409 }
 0x5a7   : > { %v1435_v6 = vmul.f32 %v1410_v60, %v1379_v10  ;;  %v1378_v10 = vsub.f32 %v4541_v34, %v1349_v17 }
 0x5a8   : > { %v1405_v20 = vpop.permute.xlu1 %1404 }
 0x5a9   : > { %v4802_v3 = vadd.f32 %v4788_v42, %v1435_v6 }
 0x5aa   : > { %v1420_v21 = vpop.permute.xlu0 %1419 }
 0x5ab   : > { %v1437_v22 = vmul.f32 %v1420_v21, %v1381_v61  ;;  %v1491_v18 = vmul.f32 0.5, %v4802_v3 }
 0x5ac   : > { %v1415_v4 = vpop.permute.xlu1 %1414 }
 0x5ad   : > { %v4798_v9 = vadd.f32 %v4786_v39, %v1437_v22  ;;  %v1436_v14 = vmul.f32 %v1415_v4, %v1380_v2  ;;  %v1434_v22 = vmul.f32 %v1405_v20, %v1378_v10 }
 0x5ae   : > { %v1400_v25 = vpop.permute.xlu0 %1399 }
 0x5af   : > { %v1493_v28 = vmul.f32 0.5, %v4798_v9  ;;  %v4806_v37 = vadd.f32 %v4792_v50, %v1436_v14  ;;  %v1377_v14 = vsub.f32 %v4554_v44, %v1344_v45 }
 0x5b0   : > { %v1430_v1 = vpop.permute.xlu1 %1429 }
 0x5b1   : > { %v1439_v31 = vmul.f32 %v1430_v1, %v1383_v27  ;;  %3960 = vtanh.f32 %v1493_v28  ;;  %v1492_v19 = vmul.f32 0.5, %v4806_v37  ;;  %v1433_v34 = vmul.f32 %v1400_v25, %v1377_v14 }
 0x5b2   : > { %v1395_v16 = vpop.permute.xlu0 %1394 }
 0x5b3   : > { %v1487_v35 = vadd.f32 %v4784_v36, %v1439_v31 }
 0x5b4   : > { %v1425_v8 = vpop.permute.xlu1 %1424 }
 0x5b5   : > { %v1495_v12 = vmul.f32 0.5, %v1487_v35  ;;  %v1438_v55 = vmul.f32 %v1425_v8, %v1382_v33 }
 0x5b6   : > { %v4812_v60 = vpop.permute.xlu0 %1442 }
 0x5b7   : > { %3962 = vtanh.f32 %v1495_v12  ;;  %v1486_v61 = vadd.f32 %v4790_v43, %v1438_v55 }
 0x5b8   : > { %v1339_v21 = vpop.permute.xlu1 %1338  ;;  %3964 = vtanh.f32 %v1491_v18 }
 0x5b9   : > { %v1494_v24 = vmul.f32 0.5, %v1486_v61  ;;  %v1376_v57 = vsub.f32 %v4550_v40, %v1339_v21  ;;  %3966 = vtanh.f32 %v1492_v19 }
 0x5ba   : > { %v4817_v4 = vpop.permute.xlu0 %2124 }
 0x5bb   : > { %3968 = vtanh.f32 %v1494_v24  ;;  %v1432_v2 = vmul.f32 %v1395_v16, %v1376_v57 }
 0x5bc   : > { %v4819_v6 = vpop.permute.xlu1 %1452 }
 0x5bd   : > { %v4823_v27 = vadd.f32 %v4812_v60, %v1432_v2  ;;  %v4826_v1 = vadd.f32 %v4819_v6, %v1434_v22 }
 0x5be   : > { %v3961_v31 = vpop.eup %3960  ;;  %v2130_v44 = vpop.permute.xlu0 %2129 }
 0x5bf   : > { %v1488_v17 = vmul.f32 0.5, %v4823_v27  ;;  %v1490_v40 = vmul.f32 0.5, %v4826_v1  ;;  %v1509_v33 = vadd.f32 1.0, %v3961_v31 }
 0x5c0   : > { %v4830_v20 = vpop.permute.xlu1 %1447 }
 0x5c1   : > { %3970 = vtanh.f32 %v1488_v17  ;;  %v4833_v28 = vadd.f32 %v4830_v20, %v1433_v34  ;;  %v1517_v10 = vmul.f32 0.5, %v1509_v33 }
 0x5c2   : > { %3972 = vtanh.f32 %v1490_v40  ;;  %v2120_v19 = vpop.permute.xlu0 %2119 }
 0x5c3   : > { %v1489_v45 = vmul.f32 0.5, %v4833_v28  ;;  %v2137_v34 = vsub.f32 %v4578_v56, %v2120_v19  ;;  %v4844_v31 = vmul.f32 %v1517_v10, %v4798_v9  ;;  %v2139_v9 = vsub.f32 %v4568_v52, %v2130_v44 }
 0x5c4   : > { %v3963_v16 = vpop.eup %3962  ;;  %v2135_v22 = vpop.permute.xlu1 %2134 }
 0x5c5   : > { %v1511_v8 = vadd.f32 1.0, %v3963_v16  ;;  %3974 = vtanh.f32 %v1489_v45  ;;  %v3965_v25 = vpop.eup %3964 }
 0x5c6   : > { %v3967_v18 = vpop.eup %3966  ;;  %v1507_v21 = vadd.f32 1.0, %v3965_v25 }
 0x5c7   : > { %v1519_v12 = vmul.f32 0.5, %v1511_v8  ;;  %v1508_v2 = vadd.f32 1.0, %v3967_v18 }
 0x5c8   : > { %v3969_v55 = vpop.eup %3968  ;;  %v1515_v40 = vmul.f32 0.5, %v1507_v21 }
 0x5c9   : > { %v4836_v24 = vmul.f32 %v1519_v12, %v1487_v35  ;;  %v1510_v57 = vadd.f32 1.0, %v3969_v55  ;;  %v2140_v35 = vsub.f32 %v4572_v54, %v2135_v22  ;;  %v1516_v25 = vmul.f32 0.5, %v1508_v2 }
 0x5ca   : > { %v1523_v55 = vmul.f32 %v1515_v40, %v4802_v3 }
 0x5cb   : > { %1542 = vrot.lane.b32.xlu1 %v4836_v24, %s5619_s20  ;;  %1657 = vmatpush1.msra.mxu1 %v4836_v24  ;;  %v1518_v14 = vmul.f32 0.5, %v1510_v57  ;;  %v1524_v57 = vmul.f32 %v1516_v25, %v4806_v37 }
 0x5cc   : > { %v2148_v17 = vpop.permute.xlu0 %2147  ;;  %1658 = vmatprep.subr.mxu1 %v4112_v23 }
 0x5cd   : > { %v1526_v45 = vmul.f32 %v1518_v14, %v1486_v61  ;;  %v2165_v33 = vmul.f32 %v2148_v17, %v2137_v34 }
 0x5ce   : > { %v3971_v16 = vpop.eup %3970  ;;  %v2163_v8 = vpop.permute.xlu1 %2162 }
 0x5cf   : > { %v3973_v18 = vpop.eup %3972  ;;  %v2168_v12 = vmul.f32 %v2163_v8, %v2140_v35  ;;  %1538 = vrot.lane.b32.xlu1 %v4844_v31, %s5619_s20  ;;  %1540 = vrot.lane.b32.xlu0 %v1526_v45, %s5619_s20  ;;  %v4857_v21 = vadd.f32 %v2165_v33, %v4358_v30  ;;  %v1504_v22 = vadd.f32 1.0, %v3971_v16  ;;  %v2138_v30 = vsub.f32 %v4584_v59, %v4817_v4 }
 0x5d0   : > { %v1506_v56 = vadd.f32 1.0, %v3973_v18  ;;  %1659 = vmatpush1.msra.mxu1 %v1526_v45 }
 0x5d1   : > { %v4853_v54 = vadd.f32 %v2168_v12, %v4352_v11  ;;  %1660 = vmatprep.subr.mxu1 %v4112_v23  ;;  %v2173_v14 = vmul.f32 0.5, %v4857_v21  ;;  %v1512_v17 = vmul.f32 0.5, %v1504_v22  ;;  %v3378_v22 = vld [vmem:[%s4401_s3 + $0x58] sm:$0xff] }
 0x5d2   : > { %v3975_v61 = vpop.eup %3974  ;;  %v1514_v19 = vmul.f32 0.5, %v1506_v56  ;;  %1661 = vmatpush1.msra.mxu1 %v4844_v31  ;;  %v2158_v10 = vpop.permute.xlu1 %2157 }
 0x5d3   : > { %v1505_v2 = vadd.f32 1.0, %v3975_v61  ;;  %v2176_v3 = vmul.f32 0.5, %v4853_v54  ;;  %1662 = vmatprep.subr.mxu1 %v4112_v23  ;;  %v2167_v11 = vmul.f32 %v2158_v10, %v2139_v9  ;;  %1534 = vrot.lane.b32.xlu1 %v1523_v55, %s5619_s20  ;;  %v1520_v59 = vmul.f32 %v1512_v17, %v4823_v27  ;;  %v3380_v10 = vld [vmem:[%s4401_s3 + $0x68] sm:$0xff] }
 0x5d4   : > { %1536 = vrot.lane.b32.xlu0 %v1524_v57, %s5619_s20  ;;  %1663 = vmatpush1.msra.mxu1 %v1524_v57  ;;  %v1522_v37 = vmul.f32 %v1514_v19, %v4826_v1  ;;  %v3382_v19 = vld [vmem:[%s4401_s3 + $0x78] sm:$0xff] }
 0x5d5   : > { %v1513_v52 = vmul.f32 0.5, %v1505_v2  ;;  %3976 = vtanh.f32 %v2176_v3  ;;  %v2171_v44 = vadd.f32 %v2167_v11, %v4354_v13  ;;  %1664 = vmatprep.subr.mxu1 %v4112_v23  ;;  %v3377_v2 = vld [vmem:[%s4401_s3 + $0x50] sm:$0xff]  ;;  %v3376_v3 = vld [vmem:[%s4401_s3 + $0x48] sm:$0xff]  ;;  %v3375_v11 = vld [vmem:[%s4401_s3 + $0x40] sm:$0xff] }
 0x5d6   : > { %1665 = vmatpush1.msra.mxu1 %v1523_v55  ;;  %v2153_v34 = vpop.permute.xlu1 %2152 }
 0x5d7   : > { %v1521_v40 = vmul.f32 %v1513_v52, %v4833_v28  ;;  %v2175_v35 = vmul.f32 0.5, %v2171_v44  ;;  %1666 = vmatprep.subr.mxu1 %v4112_v23  ;;  %v2166_v16 = vmul.f32 %v2153_v34, %v2138_v30 }
 0x5d8   : > { %1532 = vrot.lane.b32.xlu0 %v1522_v37, %s5619_s20  ;;  %1667 = vmatpush1.msra.mxu1 %v1522_v37 }
 0x5d9   : > { %3978 = vtanh.f32 %v2175_v35  ;;  %v2170_v13 = vadd.f32 %v2166_v16, %v4365_v41  ;;  %1668 = vmatprep.subr.mxu1 %v4112_v23  ;;  %1530 = vrot.lane.b32.xlu1 %v1521_v40, %s5619_s20  ;;  %v1577_v41 = vld [vmem:[%s5599_s10 + $0x8] sm:$0xff] }
 0x5da   : > { %3980 = vtanh.f32 %v2173_v14  ;;  %1669 = vmatpush1.msra.mxu1 %v1521_v40  ;;  %3331 = vmatprep.mubr.msk.f32.mxu1 %vm589_vm0, %v1577_v41 }
 0x5db   : > { %v2174_v4 = vmul.f32 0.5, %v2170_v13  ;;  %1670 = vmatprep.subr.mxu1 %v4112_v23 }
 0x5dc   : > { %1528 = vrot.lane.b32.xlu0 %v1520_v59, %s5619_s20  ;;  %1671 = vmatpush1.msra.mxu1 %v1520_v59 }
 0x5dd   : > { %3982 = vtanh.f32 %v2174_v4  ;;  %1566 = vrot.lane.b32.xlu1 %v4836_v24, %s5620_s21  ;;  %1672 = vmatprep.subr.mxu1 %v4112_v23 }
 0x5e0   : > { %1564 = vrot.lane.b32.xlu0 %v1526_v45, %s5620_s21 }
 0x5e1   : > { %1562 = vrot.lane.b32.xlu1 %v4844_v31, %s5620_s21 }
 0x5e2   : > { %v3977_v27 = vpop.eup %3976 }
 0x5e3   : > { %v2184_v1 = vadd.f32 1.0, %v3977_v27 }
 0x5e4   : > { %1560 = vrot.lane.b32.xlu0 %v1524_v57, %s5620_s21  ;;  %v3379_v57 = vld [vmem:[%s4401_s3 + $0x60] sm:$0xff] }
 0x5e5   : > { %1558 = vrot.lane.b32.xlu1 %v1523_v55, %s5620_s21  ;;  %v2188_v33 = vmul.f32 0.5, %v2184_v1  ;;  %v1576_v1 = vld [vmem:[%s5599_s10] sm:$0xff] }
 0x5e6   : > { %v3979_v28 = vpop.eup %3978 }
 0x5e7   : > { %v3981_v24 = vpop.eup %3980  ;;  %v2183_v8 = vadd.f32 1.0, %v3979_v28  ;;  %v4895_v31 = vmul.f32 %v2188_v33, %v4853_v54 }
 0x5e8   : > { %1556 = vrot.lane.b32.xlu0 %v1522_v37, %s5620_s21  ;;  %v2181_v18 = vadd.f32 1.0, %v3981_v24  ;;  %v1579_v24 = vld [vmem:[%s5599_s10 + $0x18] sm:$0xff] }
 0x5e9   : > { %1554 = vrot.lane.b32.xlu1 %v1521_v40, %s5620_s21  ;;  %v2187_v45 = vmul.f32 0.5, %v2183_v8  ;;  %v1578_v8 = vld [vmem:[%s5599_s10 + $0x10] sm:$0xff] }
 0x5ea   : > { %v3983_v25 = vpop.eup %3982  ;;  %v2185_v55 = vmul.f32 0.5, %v2181_v18  ;;  %v1581_v18 = vld [vmem:[%s5599_s10 + $0x28] sm:$0xff] }
 0x5eb   : > { %v2182_v12 = vadd.f32 1.0, %v3983_v25  ;;  %v4900_v9 = vmul.f32 %v2187_v45, %v2171_v44 }
 0x5ec   : > { %1552 = vrot.lane.b32.xlu0 %v1520_v59, %s5620_s21  ;;  %v4909_v54 = vmul.f32 %v2185_v55, %v4857_v21  ;;  %v3381_v21 = vld [vmem:[%s4401_s3 + $0x70] sm:$0xff]  ;;  %v1583_v55 = vld [vmem:[%s5599_s10 + $0x38] sm:$0xff]  ;;  %s3432_s3 = sshll.u32 %s4212_s17, 11  ;;  %s5549_s17 = scalar_lea.sflag [#allocation3], %s479_s22 }
 0x5ed   : > { %v2186_v56 = vmul.f32 0.5, %v2182_v12  ;;  %2211 = vrot.lane.b32.xlu1 %v4895_v31, %s5620_s21  ;;  %v1580_v12 = vld [vmem:[%s5599_s10 + $0x20] sm:$0xff]  ;;  %s5542_s26 = scalar_lea.hbm %s5603_s14, %s3432_s3 }
 0x5ef   : > { %v4902_v61 = vmul.f32 %v2186_v56, %v2170_v13 }
 0x5f0   : > { %2209 = vrot.lane.b32.xlu0 %v4900_v9, %s5620_s21 }
 0x5f1   : > { %2207 = vrot.lane.b32.xlu1 %v4902_v61, %s5620_s21 }
 0x5f4   : > { %2205 = vrot.lane.b32.xlu0 %v4909_v54, %s5620_s21 }
 0x5f5   : > { %2199 = vrot.lane.b32.xlu1 %v4895_v31, %s5619_s20 }
 0x5f8   : > { %2197 = vrot.lane.b32.xlu0 %v4900_v9, %s5619_s20 }
 0x5f9   : > { %2195 = vrot.lane.b32.xlu1 %v4902_v61, %s5619_s20 }
 0x5fc   : > { %2193 = vrot.lane.b32.xlu0 %v4909_v54, %s5619_s20 }
 0x5fd   : > { %2400 = vperm.xlu1 %3919, %v3382_v19   ;;  %v1582_v19 = vld [vmem:[%s5599_s10 + $0x30] sm:$0xff] }
 0x600   : > { %2395 = vperm.xlu0 %3918, %v3381_v21   ;;  %v1585_v21 = vld [vmem:[%s5599_s10 + $0x48] sm:$0xff] }
 0x601   : > { %2390 = vperm.xlu1 %3919, %v3380_v10   ;;  %v1584_v10 = vld [vmem:[%s5599_s10 + $0x40] sm:$0xff] }
 0x604   : > { %2385 = vperm.xlu0 %3918, %v3379_v57   ;;  %v1587_v57 = vld [vmem:[%s5599_s10 + $0x58] sm:$0xff] }
 0x605   : > { %2380 = vperm.xlu1 %3919, %v3378_v22  }
 0x608   : > { %2375 = vperm.xlu0 %3918, %v3377_v2   ;;  %v1589_v2 = vld [vmem:[%s5599_s10 + $0x68] sm:$0xff] }
 0x609   : > { %2370 = vperm.xlu1 %3919, %v3376_v3   ;;  %v1591_v3 = vld [vmem:[%s5599_s10 + $0x78] sm:$0xff] }
 0x60c   : > { %2365 = vperm.xlu0 %3918, %v3375_v11  }
 0x63d   : > { %v1543_v30 = vpop.permute.xlu1 %1542 }
 0x63e   : > { %3315 = vmatpush1.msk.msra.mxu1 %vm499_vm3, %v1543_v30  ;;  %v1590_v30 = vld [vmem:[%s5599_s10 + $0x70] sm:$0xff] }
 0x63f   : > { %1674 = vmatprep.subr.mxu1 %v4112_v23 }
 0x641   : > { %v1541_v52 = vpop.permute.xlu0 %1540  ;;  %v1539_v44 = vpop.permute.xlu1 %1538 }
 0x642   : > { %3316 = vmatpush1.msk.msra.mxu1 %vm499_vm3, %v1541_v52  ;;  %v2217_v52 = vld [vmem:[%s5594_s5] sm:$0xff] }
 0x643   : > { %1676 = vmatprep.subr.mxu1 %v4112_v23 }
 0x644   : > { %3317 = vmatpush1.msk.msra.mxu1 %vm499_vm3, %v1539_v44  ;;  %v2218_v44 = vld [vmem:[%s5594_s5 + $0x8] sm:$0xff] }
 0x645   : > { %1678 = vmatprep.subr.mxu1 %v4112_v23  ;;  %v1535_v14 = vpop.permute.xlu1 %1534 }
 0x646   : > { %v1537_v37 = vpop.permute.xlu0 %1536 }
 0x647   : > { %3318 = vmatpush1.msk.msra.mxu1 %vm499_vm3, %v1537_v37  ;;  %v2219_v37 = vld [vmem:[%s5594_s5 + $0x10] sm:$0xff] }
 0x648   : > { %1680 = vmatprep.subr.mxu1 %v4112_v23 }
 0x649   : > { %3319 = vmatpush1.msk.msra.mxu1 %vm499_vm3, %v1535_v14  ;;  %v2220_v14 = vld [vmem:[%s5594_s5 + $0x18] sm:$0xff] }
 0x64a   : > { %v1533_v34 = vpop.permute.xlu0 %1532  ;;  %1682 = vmatprep.subr.mxu1 %v4112_v23 }
 0x64b   : > { %3320 = vmatpush1.msk.msra.mxu1 %vm499_vm3, %v1533_v34  ;;  %v1531_v17 = vpop.permute.xlu1 %1530  ;;  %v2221_v34 = vld [vmem:[%s5594_s5 + $0x20] sm:$0xff] }
 0x64c   : > { %1684 = vmatprep.subr.mxu1 %v4112_v23 }
 0x64d   : > { %3321 = vmatpush1.msk.msra.mxu1 %vm499_vm3, %v1531_v17  ;;  %v2222_v17 = vld [vmem:[%s5594_s5 + $0x28] sm:$0xff] }
 0x64e   : > { %v1529_v40 = vpop.permute.xlu0 %1528  ;;  %1686 = vmatprep.subr.mxu1 %v4112_v23 }
 0x64f   : > { %3322 = vmatpush1.msk.msra.mxu1 %vm499_vm3, %v1529_v40  ;;  %v1567_v35 = vpop.permute.xlu1 %1566  ;;  %v2223_v40 = vld [vmem:[%s5594_s5 + $0x30] sm:$0xff] }
 0x650   : > { %1704 = vmatprep.subr.mxu1 %v4112_v23 }
 0x651   : > { %3323 = vmatpush2.msk.msra.mxu1 %vm500_vm2, %v1567_v35  ;;  %v2224_v35 = vld [vmem:[%s5594_s5 + $0x38] sm:$0xff] }
 0x652   : > { %v1565_v16 = vpop.permute.xlu0 %1564  ;;  %1706 = vmatprep.subr.mxu1 %v4112_v23 }
 0x653   : > { %3324 = vmatpush2.msk.msra.mxu1 %vm500_vm2, %v1565_v16  ;;  %v1563_v13 = vpop.permute.xlu1 %1562 }
 0x654   : > { %1708 = vmatprep.subr.mxu1 %v4112_v23 }
 0x655   : > { %3325 = vmatpush2.msk.msra.mxu1 %vm500_vm2, %v1563_v13 }
 0x656   : > { %v1561_v59 = vpop.permute.xlu0 %1560  ;;  %1710 = vmatprep.subr.mxu1 %v4112_v23 }
 0x657   : > { %3326 = vmatpush2.msk.msra.mxu1 %vm500_vm2, %v1561_v59  ;;  %v1559_v4 = vpop.permute.xlu1 %1558 }
 0x658   : > { %1712 = vmatprep.subr.mxu1 %v4112_v23 }
 0x659   : > { %3327 = vmatpush2.msk.msra.mxu1 %vm500_vm2, %v1559_v4 }
 0x65a   : > { %v1557_v41 = vpop.permute.xlu0 %1556  ;;  %1714 = vmatprep.subr.mxu1 %v4112_v23 }
 0x65b   : > { %3328 = vmatpush2.msk.msra.mxu1 %vm500_vm2, %v1557_v41  ;;  %v1555_v27 = vpop.permute.xlu1 %1554 }
 0x65c   : > { %1716 = vmatprep.subr.mxu1 %v4112_v23 }
 0x65d   : > { %3329 = vmatpush2.msk.msra.mxu1 %vm500_vm2, %v1555_v27 }
 0x65e   : > { %v1553_v28 = vpop.permute.xlu0 %1552  ;;  %1718 = vmatprep.subr.mxu1 %v4112_v23 }
 0x65f   : > { %3330 = vmatpush2.msk.msra.mxu1 %vm500_vm2, %v1553_v28  ;;  %v2212_v33 = vpop.permute.xlu1 %2211 }
 0x660   : > { %1721 = vmatmul.mubr.f32.vlgmr.msra.gmra.mxu1 %v1576_v1  ;;  %3761 = vmatprep.subr.msk.mxu1 %vm500_vm2, %v2212_v33 }
 0x661   : > { %3762 = vmatpush3.msk.msra.mxu1 %vm500_vm2, %v2212_v33  ;;  %3332 = vmatprep.mubr.msk.f32.mxu1 %vm589_vm0, %v1579_v24 }
 0x662   : > { %v2210_v25 = vpop.permute.xlu0 %2209 }
 0x663   : > { %3763 = vmatprep.subr.msk.mxu1 %vm500_vm2, %v2210_v25  ;;  %v2208_v45 = vpop.permute.xlu1 %2207 }
 0x664   : > { %1726 = vmatmul.mubr.f32.gmra.mxu1 %v1578_v8 }
 0x665   : > { %3764 = vmatpush3.msk.msra.mxu1 %vm500_vm2, %v2210_v25  ;;  %3333 = vmatprep.mubr.msk.f32.mxu1 %vm589_vm0, %v1581_v18 }
 0x666   : > { %3765 = vmatprep.subr.msk.mxu1 %vm500_vm2, %v2208_v45  ;;  %v2206_v56 = vpop.permute.xlu0 %2205 }
 0x667   : > { %3766 = vmatpush3.msk.msra.mxu1 %vm500_vm2, %v2208_v45  ;;  %v2200_v22 = vpop.permute.xlu1 %2199 }
 0x668   : > { %3767 = vmatprep.subr.msk.mxu1 %vm500_vm2, %v2206_v56  ;;  %1731 = vmatmul.mubr.f32.gmra.mxu1 %v1580_v12 }
 0x669   : > { %3768 = vmatpush3.msk.msra.mxu1 %vm500_vm2, %v2206_v56  ;;  %3334 = vmatprep.mubr.msk.f32.mxu1 %vm589_vm0, %v1583_v55 }
 0x66a   : > { %3769 = vmatprep.subr.mxu1 %v4895_v31 }
 0x66b   : > { %3770 = vmatpush3.msra.mxu1 %v4895_v31  ;;  %v2198_v31 = vpop.permute.xlu0 %2197 }
 0x66c   : > { %3771 = vmatprep.subr.mxu1 %v4900_v9  ;;  %1736 = vmatmul.mubr.f32.gmra.mxu1 %v1582_v19 }
 0x66d   : > { %3772 = vmatpush3.msra.mxu1 %v4900_v9  ;;  %3335 = vmatprep.mubr.msk.f32.mxu1 %vm589_vm0, %v1585_v21  ;;  %v1586_v9 = vld [vmem:[%s5599_s10 + $0x50] sm:$0xff] }
 0x66e   : > { %3773 = vmatprep.subr.mxu1 %v4902_v61 }
 0x66f   : > { %3774 = vmatpush3.msra.mxu1 %v4902_v61  ;;  %v2196_v61 = vpop.permute.xlu1 %2195  ;;  %v2194_v11 = vpop.permute.xlu0 %2193 }
 0x670   : > { %3775 = vmatprep.subr.mxu1 %v4909_v54  ;;  %1741 = vmatmul.mubr.f32.gmra.mxu1 %v1584_v10 }
 0x671   : > { %3776 = vmatpush3.msra.mxu1 %v4909_v54  ;;  %3336 = vmatprep.mubr.msk.f32.mxu1 %vm589_vm0, %v1587_v57  ;;  %v1588_v54 = vld [vmem:[%s5599_s10 + $0x60] sm:$0xff] }
 0x672   : > { %3777 = vmatprep.subr.msk.mxu1 %vm499_vm3, %v2200_v22 }
 0x673   : > { %3778 = vmatpush3.msk.msra.mxu1 %vm499_vm3, %v2200_v22 }
 0x674   : > { %3779 = vmatprep.subr.msk.mxu1 %vm499_vm3, %v2198_v31  ;;  %1746 = vmatmul.mubr.f32.gmra.mxu1 %v1586_v9 }
 0x675   : > { %3780 = vmatpush3.msk.msra.mxu1 %vm499_vm3, %v2198_v31  ;;  %3337 = vmatprep.mubr.msk.f32.mxu1 %vm589_vm0, %v1589_v2 }
 0x676   : > { %3781 = vmatprep.subr.msk.mxu1 %vm499_vm3, %v2196_v61 }
 0x677   : > { %3782 = vmatpush3.msk.msra.mxu1 %vm499_vm3, %v2196_v61 }
 0x678   : > { %3783 = vmatprep.subr.msk.mxu1 %vm499_vm3, %v2194_v11  ;;  %1751 = vmatmul.mubr.f32.gmra.mxu1 %v1588_v54  ;;  %v2401_v22 = vpop.permute.xlu1 %2400 }
 0x679   : > { %3784 = vmatpush3.msk.msra.mxu1 %vm499_vm3, %v2194_v11  ;;  %3338 = vmatprep.mubr.msk.f32.mxu1 %vm589_vm0, %v1591_v3 }
 0x67a   : > { %2884 = vmatprep.subr.mxu1 %v4112_v23 }
 0x67b   : > { %v2396_v10 = vpop.permute.xlu0 %2395 }
 0x67c   : > { %1756 = vmatmul.mubr.f32.gmra.mxu1 %v1590_v30  ;;  %v2391_v11 = vpop.permute.xlu1 %2390 }
 0x67d   : > { %3785 = vmatprep.mubr.msk.f32.mxu1 %vm916_vm1, %v2217_v52 }
 0x67f   : > { %v2386_v2 = vpop.permute.xlu0 %2385 }
 0x680   : > { %3786 = vmatmul.mubr.msk.f32.vlgmr.msra.gmra.mxu1 %vm916_vm1, %v2218_v44 }
 0x681   : > { %3788 = vmatprep.mubr.msk.f32.mxu1 %vm916_vm1, %v2219_v37 }
 0x684   : > { %3789 = vmatmul.mubr.msk.f32.gmra.mxu1 %vm916_vm1, %v2220_v14 }
 0x685   : > { %3791 = vmatprep.mubr.msk.f32.mxu1 %vm916_vm1, %v2221_v34 }
 0x688   : > { %3792 = vmatmul.mubr.msk.f32.gmra.mxu1 %vm916_vm1, %v2222_v17 }
 0x689   : > { %3794 = vmatprep.mubr.msk.f32.mxu1 %vm916_vm1, %v2223_v40 }
 0x68c   : > { %3795 = vmatmul.mubr.msk.f32.gmra.mxu1 %vm916_vm1, %v2224_v35 }
 0x720   : > { %v5101_v16 = vpop.f32.mrf.mxu1 }
 0x722   : > { %v1724_v13 = vpop.f32.mrf.mxu1 }
 0x723   : > { %v2381_v13 = vpop.permute.xlu1 %2380 }
 0x724   : > { %v5103_v59 = vpop.f32.mrf.mxu1 }
 0x726   : > { %v1729_v4 = vpop.f32.mrf.mxu1 }
 0x728   : > { %v5105_v41 = vpop.f32.mrf.mxu1 }
 0x72a   : > { %v1734_v27 = vpop.f32.mrf.mxu1 }
 0x72c   : > { %v5107_v1 = vpop.f32.mrf.mxu1 }
 0x72e   : > { %v1739_v28 = vpop.f32.mrf.mxu1 }
 0x730   : > { %v5109_v24 = vpop.f32.mrf.mxu1 }
 0x732   : > { %v1744_v33 = vpop.f32.mrf.mxu1 }
 0x734   : > { %v5111_v8 = vpop.f32.mrf.mxu1 }
 0x736   : > { %v1749_v25 = vpop.f32.mrf.mxu1 }
 0x738   : > { %v5113_v18 = vpop.f32.mrf.mxu1 }
 0x73a   : > { %v1754_v45 = vpop.f32.mrf.mxu1 }
 0x73b   : > { %v2371_v45 = vpop.permute.xlu1 %2370 }
 0x73c   : > { %v5115_v12 = vpop.f32.mrf.mxu1 }
 0x73e   : > { %v1759_v56 = vpop.f32.mrf.mxu1 }
 0x740   : > { %v3787_v55 = vpop.f32.mrf.mxu1 }
 0x741   : > { %v2321_v27 = vadd.f32 %v3787_v55, %v4518_v63 }
 0x742   : > { %v2315_v19 = vpop.f32.mrf.mxu1 }
 0x743   : > { %v5149_v56 = vadd.f32 %v2371_v45, %v2321_v27  ;;  %v4026_v27 = vld [vmem:[%s5598_s9 + $0x20] sm:$0xff]  ;;  %v4030_v45 = vld [vmem:[%s5598_s9 + $0x38] sm:$0xff] }
 0x744   : > { %v3790_v21 = vpop.f32.mrf.mxu1 }
 0x746   : > { %v2325_v57 = vpop.f32.mrf.mxu1 }
 0x747   : > { %v2326_v14 = vadd.f32 %v2325_v57, %v4516_v58 }
 0x748   : > { %v3793_v31 = vpop.f32.mrf.mxu1 }
 0x749   : > { %v2341_v52 = vadd.f32 %v3793_v31, %v4510_v49 }
 0x74a   : > { %v2335_v9 = vpop.f32.mrf.mxu1 }
 0x74b   : > { %v2336_v54 = vadd.f32 %v2335_v9, %v4512_v51  ;;  %v2376_v51 = vpop.permute.xlu0 %2375  ;;  %v5131_v35 = vadd.f32 %v2391_v11, %v2341_v52 }
 0x74c   : > { %v3796_v61 = vpop.f32.mrf.mxu1  ;;  %v5136_v58 = vadd.f32 %v2376_v51, %v2326_v14  ;;  %v4020_v51 = vld [vmem:[%s5598_s9 + $0x8] sm:$0xff] }
 0x74d   : > { %v2351_v3 = vadd.f32 %v3796_v61, %v4508_v48  ;;  %v5124_v34 = vadd.f32 %v2386_v2, %v2336_v54  ;;  %v2331_v48 = vadd.f32 %v3790_v21, %v4514_v53  ;;  %v2432_v53 = vmul.f32 %v5131_v35, %v5131_v35 }
 0x74e   : > { %v2345_v30 = vpop.f32.mrf.mxu1 }
 0x74f   : > { %v5120_v44 = vadd.f32 %v2401_v22, %v2351_v3  ;;  %v2346_v37 = vadd.f32 %v2345_v30, %v4506_v47  ;;  %v2316_v47 = vadd.f32 %v2315_v19, %v4533_v26  ;;  %v2431_v4 = vmul.f32 %v5124_v34, %v5124_v34  ;;  %v2366_v33 = vpop.permute.xlu0 %2365 }
 0x750   : > { %v5141_v28 = vadd.f32 %v2381_v13, %v2331_v48  ;;  %v2429_v26 = vmul.f32 %v5136_v58, %v5136_v58  ;;  %v2428_v19 = vmul.f32 %v5149_v56, %v5149_v56  ;;  %v4021_v48 = vld [vmem:[%s4246_s18 + $0x38] sm:$0xff]  ;;  %v4023_v13 = vld [vmem:[%s4246_s18 + $0x30] sm:$0xff] }
 0x751   : > { %v5126_v17 = vadd.f32 %v2396_v10, %v2346_v37  ;;  %v2434_v40 = vmul.f32 %v5120_v44, %v5120_v44  ;;  %v5145_v25 = vadd.f32 %v2366_v33, %v2316_v47  ;;  %v4024_v47 = vld [vmem:[%s5598_s9 + $0x18] sm:$0xff]  ;;  %v4028_v33 = vld [vmem:[%s5598_s9 + $0x28] sm:$0xff] }
 0x752   : > { %v2430_v63 = vmul.f32 %v5141_v28, %v5141_v28 }
 0x753   : > { %2449 = vadd.xlane.f32.xlu1 %v2434_v40  ;;  %v2433_v49 = vmul.f32 %v5126_v17, %v5126_v17  ;;  %v2427_v55 = vmul.f32 %v5145_v25, %v5145_v25 }
 0x755   : > { %2447 = vadd.xlane.f32.xlu0 %v2433_v49  ;;  %v4022_v49 = vld [vmem:[%s5598_s9 + $0x10] sm:$0xff] }
 0x757   : > { %2443 = vadd.xlane.f32.xlu1 %v2431_v4  ;;  %v4025_v4 = vld [vmem:[%s4246_s18 + $0x28] sm:$0xff] }
 0x759   : > { %2445 = vadd.xlane.f32.xlu0 %v2432_v53  ;;  %v4027_v53 = vld [vmem:[%s4246_s18 + $0x20] sm:$0xff] }
 0x75b   : > { %2439 = vadd.xlane.f32.xlu1 %v2429_v26  ;;  %v4029_v26 = vld [vmem:[%s5598_s9 + $0x30] sm:$0xff] }
 0x75d   : > { %2441 = vadd.xlane.f32.xlu0 %v2430_v63  ;;  %v4031_v63 = vld [vmem:[%s5598_s9 + $0x40] sm:$0xff] }
 0x75f   : > { %2435 = vadd.xlane.f32.xlu1 %v2427_v55  ;;  %v4032_v55 = vld [vmem:[%s5598_s9 + $0x48] sm:$0xff] }
 0x761   : > { %2437 = vadd.xlane.f32.xlu0 %v2428_v19  ;;  %v4033_v19 = vld [vmem:[%s5598_s9 + $0x50] sm:$0xff] }
 0x763   : > { %2423 = vadd.xlane.f32.xlu1 %v5126_v17 }
 0x765   : > { %2425 = vadd.xlane.f32.xlu0 %v5120_v44 }
 0x767   : > { %2419 = vadd.xlane.f32.xlu1 %v5124_v34 }
 0x769   : > { %2421 = vadd.xlane.f32.xlu0 %v5131_v35 }
 0x76b   : > { %2415 = vadd.xlane.f32.xlu1 %v5136_v58 }
 0x76d   : > { %2417 = vadd.xlane.f32.xlu0 %v5141_v28 }
 0x76f   : > { %2411 = vadd.xlane.f32.xlu1 %v5145_v25 }
 0x771   : > { %2413 = vadd.xlane.f32.xlu0 %v5149_v56 }
 0x7dc   : > { %v2450_v21 = vpop.xlane.xlu1 %2449 }
 0x7dd   : > { %3797 = vmatprep.subr.mxu0 %v2450_v21 }
 0x7de   : > { %v2448_v10 = vpop.xlane.xlu0 %2447  ;;  %3798 = vmatpush3.msra.mxu0 %v2450_v21  ;;  %v4034_v21 = vld [vmem:[%s5598_s9 + $0x58] sm:$0xff] }
 0x7df   : > { %3799 = vmatprep.subr.mxu0 %v2448_v10 }
 0x7e0   : > { %3800 = vmatpush3.msra.mxu0 %v2448_v10  ;;  %v2444_v57 = vpop.xlane.xlu1 %2443  ;;  %v4035_v10 = vld [vmem:[%s5598_s9 + $0x60] sm:$0xff] }
 0x7e2   : > { %v2446_v22 = vpop.xlane.xlu0 %2445 }
 0x7e3   : > { %3801 = vmatprep.subr.mxu0 %v2446_v22 }
 0x7e4   : > { %3802 = vmatpush3.msra.mxu0 %v2446_v22  ;;  %v2440_v31 = vpop.xlane.xlu1 %2439  ;;  %v4037_v22 = vld [vmem:[%s5598_s9 + $0x70] sm:$0xff] }
 0x7e5   : > { %3803 = vmatprep.subr.mxu0 %v2444_v57 }
 0x7e6   : > { %v2442_v9 = vpop.xlane.xlu0 %2441  ;;  %3804 = vmatpush3.msra.mxu0 %v2444_v57  ;;  %v4036_v57 = vld [vmem:[%s5598_s9 + $0x68] sm:$0xff] }
 0x7e7   : > { %3805 = vmatprep.subr.mxu0 %v2442_v9 }
 0x7e8   : > { %3806 = vmatpush3.msra.mxu0 %v2442_v9  ;;  %v2436_v2 = vpop.xlane.xlu1 %2435 }
 0x7e9   : > { %3807 = vmatprep.subr.mxu0 %v2440_v31 }
 0x7ea   : > { %v2438_v61 = vpop.xlane.xlu0 %2437  ;;  %3808 = vmatpush3.msra.mxu0 %v2440_v31  ;;  %v4038_v31 = vld [vmem:[%s5598_s9 + $0x78] sm:$0xff] }
 0x7eb   : > { %3809 = vmatprep.subr.mxu0 %v2438_v61 }
 0x7ec   : > { %3810 = vmatpush3.msra.mxu0 %v2438_v61  ;;  %v2424_v54 = vpop.xlane.xlu1 %2423 }
 0x7ed   : > { %3811 = vmatprep.subr.mxu0 %v2436_v2 }
 0x7ee   : > { %v2426_v3 = vpop.xlane.xlu0 %2425  ;;  %3812 = vmatpush3.msra.mxu0 %v2436_v2 }
 0x7ef   : > { %3813 = vmatprep.subr.mxu0 %v2426_v3 }
 0x7f0   : > { %3814 = vmatpush3.msra.mxu0 %v2426_v3  ;;  %v2420_v11 = vpop.xlane.xlu1 %2419 }
 0x7f1   : > { %3815 = vmatprep.subr.mxu0 %v2424_v54 }
 0x7f2   : > { %v2422_v30 = vpop.xlane.xlu0 %2421  ;;  %3816 = vmatpush3.msra.mxu0 %v2424_v54 }
 0x7f3   : > { %3817 = vmatprep.subr.mxu0 %v2422_v30 }
 0x7f4   : > { %3818 = vmatpush3.msra.mxu0 %v2422_v30  ;;  %v2416_v52 = vpop.xlane.xlu1 %2415 }
 0x7f5   : > { %3819 = vmatprep.subr.mxu0 %v2420_v11 }
 0x7f6   : > { %v2418_v37 = vpop.xlane.xlu0 %2417  ;;  %3820 = vmatpush3.msra.mxu0 %v2420_v11 }
 0x7f7   : > { %3821 = vmatprep.subr.mxu0 %v2418_v37 }
 0x7f8   : > { %3822 = vmatpush3.msra.mxu0 %v2418_v37  ;;  %v2412_v40 = vpop.xlane.xlu1 %2411 }
 0x7f9   : > { %3823 = vmatprep.subr.mxu0 %v2416_v52 }
 0x7fa   : > { %v2414_v14 = vpop.xlane.xlu0 %2413  ;;  %3824 = vmatpush3.msra.mxu0 %v2416_v52 }
 0x7fb   : > { %3825 = vmatprep.subr.mxu0 %v2414_v14 }
 0x7fc   : > { %3826 = vmatpush3.msra.mxu0 %v2414_v14 }
 0x7fd   : > { %3827 = vmatprep.subr.mxu0 %v2412_v40 }
 0x7fe   : > { %3828 = vmatpush3.msra.mxu0 %v2412_v40 }
 0x7ff   : > { %3830 = vmatmul.mubr.f32.vlgmr.msra.gmra.mxu0 %v4020_v51  ;;  %3853 = vmatprep.subr.mxu0 %v4021_v48 }
 0x800   : > { %3832 = vmatprep.mubr.f32.mxu0 %v4022_v49  ;;  %3854 = vmatpush3.msra.mxu0 %v4021_v48 }
 0x801   : > { %3855 = vmatprep.subr.mxu0 %v4023_v13 }
 0x802   : > { %3856 = vmatpush3.msra.mxu0 %v4023_v13 }
 0x803   : > { %3833 = vmatmul.mubr.f32.gmra.mxu0 %v4024_v47  ;;  %3857 = vmatprep.subr.mxu0 %v4025_v4 }
 0x804   : > { %3835 = vmatprep.mubr.f32.mxu0 %v4026_v27  ;;  %3858 = vmatpush3.msra.mxu0 %v4025_v4 }
 0x805   : > { %3859 = vmatprep.subr.mxu0 %v4027_v53 }
 0x806   : > { %3860 = vmatpush3.msra.mxu0 %v4027_v53 }
 0x807   : > { %3836 = vmatmul.mubr.f32.gmra.mxu0 %v4028_v33 }
 0x808   : > { %3838 = vmatprep.mubr.f32.mxu0 %v4029_v26 }
 0x80b   : > { %3839 = vmatmul.mubr.f32.gmra.mxu0 %v4030_v45 }
 0x80c   : > { %3841 = vmatprep.mubr.f32.mxu0 %v4031_v63 }
 0x80f   : > { %3842 = vmatmul.mubr.f32.gmra.mxu0 %v4032_v55 }
 0x810   : > { %3844 = vmatprep.mubr.f32.mxu0 %v4033_v19 }
 0x813   : > { %3845 = vmatmul.mubr.f32.gmra.mxu0 %v4034_v21 }
 0x814   : > { %3847 = vmatprep.mubr.f32.mxu0 %v4035_v10 }
 0x817   : > { %3848 = vmatmul.mubr.f32.gmra.mxu0 %v4036_v57 }
 0x818   : > { %3850 = vmatprep.mubr.f32.mxu0 %v4037_v22 }
 0x81b   : > { %3851 = vmatmul.mubr.f32.gmra.mxu0 %v4038_v31 }
 0x8bf   : > { %v3831_v9 = vpop.f32.mrf.mxu0 }
 0x8c0   : > { %v2597_v19 = vmul.f32 0.00390625, %v3831_v9 }
 0x8c1   : > { %v2517_v2 = vpop.f32.mrf.mxu0 }
 0x8c2   : > { %v2596_v51 = vmul.f32 0.00390625, %v2517_v2 }
 0x8c3   : > { %v3834_v61 = vpop.f32.mrf.mxu0 }
 0x8c4   : > { %v2599_v54 = vmul.f32 0.00390625, %v3834_v61  ;;  %v2612_v4 = vmul.f32 %v2596_v51, %v2596_v51 }
 0x8c5   : > { %v2527_v3 = vpop.f32.mrf.mxu0 }
 0x8c6   : > { %2661 = vperm.xlu0 %3918, %v2599_v54   ;;  %v2598_v33 = vmul.f32 0.00390625, %v2527_v3 }
 0x8c7   : > { %v3837_v11 = vpop.f32.mrf.mxu0 }
 0x8c8   : > { %v2601_v30 = vmul.f32 0.00390625, %v3837_v11 }
 0x8c9   : > { %v2537_v52 = vpop.f32.mrf.mxu0 }
 0x8ca   : > { %2671 = vperm.xlu0 %3918, %v2601_v30   ;;  %v2600_v14 = vmul.f32 0.00390625, %v2537_v52  ;;  %v2617_v21 = vmul.f32 %v2601_v30, %v2601_v30 }
 0x8cb   : > { %v3840_v37 = vpop.f32.mrf.mxu0 }
 0x8cc   : > { %v2603_v13 = vmul.f32 0.00390625, %v3840_v37  ;;  %v2616_v22 = vmul.f32 %v2600_v14, %v2600_v14 }
 0x8cd   : > { %v2547_v40 = vpop.f32.mrf.mxu0 }
 0x8ce   : > { %v2602_v48 = vmul.f32 0.00390625, %v2547_v40  ;;  %2666 = vperm.xlu0 %3918, %v2600_v14   ;;  %v2619_v11 = vmul.f32 %v2603_v13, %v2603_v13  ;;  %v2615_v14 = vmul.f32 %v2599_v54, %v2599_v54 }
 0x8cf   : > { %v3843_v49 = vpop.f32.mrf.mxu0 }
 0x8d0   : > { %2676 = vperm.xlu1 %3919, %v2602_v48   ;;  %v2618_v3 = vmul.f32 %v2602_v48, %v2602_v48  ;;  %v4039_v48 = vld [vmem:[%s5596_s7] sm:$0xff] }
 0x8d1   : > { %v2557_v47 = vpop.f32.mrf.mxu0 }
 0x8d2   : > { %v2604_v27 = vmul.f32 0.00390625, %v2557_v47  ;;  %2681 = vperm.xlu0 %3918, %v2603_v13  }
 0x8d3   : > { %v3846_v53 = vpop.f32.mrf.mxu0 }
 0x8d4   : > { %v2620_v26 = vsub.f32 %v2604_v27, %v2612_v4  ;;  %v2607_v9 = vmul.f32 0.00390625, %v3846_v53 }
 0x8d5   : > { %v2567_v45 = vpop.f32.mrf.mxu0 }
 0x8d6   : > { %v2628_v63 = vadd.f32 1e-06, %v2620_v26  ;;  %2656 = vperm.xlu0 %3918, %v2598_v33  }
 0x8d7   : > { %v3849_v55 = vpop.f32.mrf.mxu0 }
 0x8d8   : > { %3984 = vrsqrt.f32 %v2628_v63  ;;  %v2609_v10 = vmul.f32 0.00390625, %v3849_v55  ;;  %v2623_v55 = vsub.f32 %v2607_v9, %v2615_v14 }
 0x8d9   : > { %v2577_v57 = vpop.f32.mrf.mxu0 }
 0x8da   : > { %v2625_v31 = vsub.f32 %v2609_v10, %v2617_v21  ;;  %v2608_v2 = vmul.f32 0.00390625, %v2577_v57  ;;  %2651 = vperm.xlu0 %3918, %v2597_v19   ;;  %v2606_v21 = vmul.f32 0.00390625, %v2567_v45  ;;  %v2614_v57 = vmul.f32 %v2598_v33, %v2598_v33  ;;  %v4040_v45 = vld [vmem:[%s5596_s7 + $0x28] sm:$0xff] }
 0x8db   : > { %v3852_v61 = vpop.f32.mrf.mxu0 }
 0x8dc   : > { %v2633_v52 = vadd.f32 1e-06, %v2625_v31  ;;  %v2624_v37 = vsub.f32 %v2608_v2, %v2616_v22  ;;  %v2611_v40 = vmul.f32 0.00390625, %v3852_v61  ;;  %v2605_v31 = vmul.f32 0.00390625, %v3843_v49  ;;  %v4041_v49 = vld [vmem:[%s5596_s7 + $0x20] sm:$0xff] }
 0x8dd   : > { %v2587_v47 = vpop.f32.mrf.mxu0  ;;  %v2631_v2 = vadd.f32 1e-06, %v2623_v55  ;;  %v2622_v61 = vsub.f32 %v2606_v21, %v2614_v57  ;;  %v4045_v55 = vld [vmem:[%s5596_s7 + $0x10] sm:$0xff] }
 0x8de   : > { %3986 = vrsqrt.f32 %v2633_v52  ;;  %v2632_v4 = vadd.f32 1e-06, %v2624_v37  ;;  %v2627_v27 = vsub.f32 %v2611_v40, %v2619_v11  ;;  %v2610_v26 = vmul.f32 0.00390625, %v2587_v47  ;;  %2646 = vperm.xlu0 %3918, %v2596_v51  }
 0x8df   : > { %v2613_v51 = vmul.f32 %v2597_v19, %v2597_v19  ;;  %v2630_v54 = vadd.f32 1e-06, %v2622_v61  ;;  %v4042_v19 = vld [vmem:[%s5596_s7 + $0x38] sm:$0xff]  ;;  %v2993_v61 = vld [vmem:[%s5601_s12 + $0x20] sm:$0xff] }
 0x8e0   : > { %3988 = vrsqrt.f32 %v2632_v4  ;;  %v2635_v30 = vadd.f32 1e-06, %v2627_v27  ;;  %v2626_v63 = vsub.f32 %v2610_v26, %v2618_v3  ;;  %v4043_v27 = vld [vmem:[%s5596_s7 + $0x30] sm:$0xff] }
 0x8e1   : > { %v2621_v11 = vsub.f32 %v2605_v31, %v2613_v51  ;;  %v2991_v31 = vld [vmem:[%s5601_s12 + $0x10] sm:$0xff]  ;;  %v2994_v51 = vld [vmem:[%s5601_s12 + $0x28] sm:$0xff] }
 0x8e2   : > { %3990 = vrsqrt.f32 %v2635_v30  ;;  %v2634_v10 = vadd.f32 1e-06, %v2626_v63  ;;  %v4044_v30 = vld [vmem:[%s5596_s7 + $0x18] sm:$0xff] }
 0x8e3   : > { %v2629_v37 = vadd.f32 1e-06, %v2621_v11  ;;  %v2996_v11 = vld [vmem:[%s5601_s12 + $0x38] sm:$0xff] }
 0x8e4   : > { %3992 = vrsqrt.f32 %v2634_v10 }
 0x8e5   : > { %v3985_v13 = vpop.eup %3984  ;;  %3994 = vrsqrt.f32 %v2631_v2  ;;  %v2992_v2 = vld [vmem:[%s5601_s12 + $0x18] sm:$0xff] }
 0x8e6   : > { %v2692_v22 = vmul.f32 %v4039_v48, %v3985_v13  ;;  %3996 = vrsqrt.f32 %v2630_v54  ;;  %v4046_v13 = vld [vmem:[%s5596_s7 + $0x8] sm:$0xff]  ;;  %v2989_v48 = vld [vmem:[%s5601_s12] sm:$0xff] }
 0x8e7   : > { %3998 = vrsqrt.f32 %v2629_v37  ;;  %3861 = vmatprep.mubr.msk.f32.mxu0 %vm1817_vm4, %v2989_v48 }
 0x8e8   : > { %2702 = vperm.xlu0 %3918, %v2692_v22   ;;  %v2990_v22 = vld [vmem:[%s5601_s12 + $0x8] sm:$0xff] }
 0x8e9   : > { %3862 = vmatmul.mubr.msk.f32.vlgmr.msra.gmra.mxu0 %vm1817_vm4, %v2990_v22 }
 0x8ea   : > { %3864 = vmatprep.mubr.msk.f32.mxu0 %vm1817_vm4, %v2991_v31 }
 0x8eb   : > { %v3987_v53 = vpop.eup %3986 }
 0x8ec   : > { %v2697_v33 = vmul.f32 %v4040_v45, %v3987_v53  ;;  %v2995_v53 = vld [vmem:[%s5601_s12 + $0x30] sm:$0xff] }
 0x8ed   : > { %v3989_v52 = vpop.eup %3988  ;;  %3865 = vmatmul.mubr.msk.f32.gmra.mxu0 %vm1817_vm4, %v2992_v2 }
 0x8ee   : > { %2727 = vperm.xlu1 %3919, %v2697_v33   ;;  %v2696_v40 = vmul.f32 %v4041_v49, %v3989_v52  ;;  %3867 = vmatprep.mubr.msk.f32.mxu0 %vm1817_vm4, %v2993_v61 }
 0x8ef   : > { %v3991_v3 = vpop.eup %3990 }
 0x8f0   : > { %v2699_v47 = vmul.f32 %v4042_v19, %v3991_v3 }
 0x8f1   : > { %v3993_v4 = vpop.eup %3992  ;;  %3868 = vmatmul.mubr.msk.f32.gmra.mxu0 %vm1817_vm4, %v2994_v51 }
 0x8f2   : > { %2722 = vperm.xlu1 %3919, %v2696_v40   ;;  %v2698_v26 = vmul.f32 %v4043_v27, %v3993_v4  ;;  %v3995_v9 = vpop.eup %3994  ;;  %3870 = vmatprep.mubr.msk.f32.mxu0 %vm1817_vm4, %v2995_v53 }
 0x8f3   : > { %v2695_v63 = vmul.f32 %v4044_v30, %v3995_v9  ;;  %v3997_v14 = vpop.eup %3996 }
 0x8f4   : > { %v2694_v21 = vmul.f32 %v4045_v55, %v3997_v14  ;;  %v3999_v10 = vpop.eup %3998 }
 0x8f5   : > { %v2693_v57 = vmul.f32 %v4046_v13, %v3999_v10  ;;  %3871 = vmatmul.mubr.msk.f32.gmra.mxu0 %vm1817_vm4, %v2996_v11 }
 0x8f6   : > { %2737 = vperm.xlu1 %3919, %v2699_v47  }
 0x8fa   : > { %2732 = vperm.xlu1 %3919, %v2698_v26  }
 0x8fe   : > { %2717 = vperm.xlu1 %3919, %v2695_v63  }
 0x902   : > { %2712 = vperm.xlu1 %3919, %v2694_v21  }
 0x906   : > { %2707 = vperm.xlu1 %3919, %v2693_v57  }
 0x941   : > { %v2662_v54 = vpop.permute.xlu0 %2661 }
 0x942   : > { %v2687_v2 = vsub.f32 %v5141_v28, %v2662_v54 }
 0x945   : > { %v2672_v45 = vpop.permute.xlu0 %2671 }
 0x946   : > { %v2689_v40 = vsub.f32 %v5131_v35, %v2672_v45 }
 0x949   : > { %v2667_v33 = vpop.permute.xlu0 %2666 }
 0x94a   : > { %v2688_v4 = vsub.f32 %v5124_v34, %v2667_v33 }
 0x94b   : > { %v2677_v49 = vpop.permute.xlu1 %2676 }
 0x94c   : > { %v2690_v57 = vsub.f32 %v5126_v17, %v2677_v49 }
 0x94d   : > { %v2682_v52 = vpop.permute.xlu0 %2681 }
 0x94e   : > { %v2691_v63 = vsub.f32 %v5120_v44, %v2682_v52 }
 0x951   : > { %v2657_v37 = vpop.permute.xlu0 %2656 }
 0x955   : > { %v2652_v3 = vpop.permute.xlu0 %2651 }
 0x956   : > { %v2685_v54 = vsub.f32 %v5149_v56, %v2652_v3 }
 0x959   : > { %v2647_v26 = vpop.permute.xlu0 %2646 }
 0x95a   : > { %v2684_v35 = vsub.f32 %v5145_v25, %v2647_v26 }
 0x963   : > { %v2703_v55 = vpop.permute.xlu0 %2702 }
 0x964   : > { %v2740_v48 = vmul.f32 %v2703_v55, %v2684_v35 }
 0x966   : > { %v5284_v51 = vadd.f32 %v2740_v48, %v4812_v60 }
 0x968   : > { %v2756_v45 = vmul.f32 0.5, %v5284_v51 }
 0x969   : > { %v2728_v19 = vpop.permute.xlu1 %2727 }
 0x96a   : > { %v2745_v47 = vmul.f32 %v2728_v19, %v2689_v40 }
 0x96c   : > { %v2753_v9 = vadd.f32 %v2745_v47, %v4786_v39 }
 0x96d   : > { %v2723_v27 = vpop.permute.xlu1 %2722 }
 0x96e   : > { %v2744_v30 = vmul.f32 %v2723_v27, %v2688_v4  ;;  %v2761_v21 = vmul.f32 0.5, %v2753_v9 }
 0x970   : > { %v5275_v10 = vadd.f32 %v2744_v30, %v4792_v50  ;;  %4000 = vtanh.f32 %v2761_v21 }
 0x971   : > { %v2738_v14 = vpop.permute.xlu1 %2737 }
 0x972   : > { %v2747_v13 = vmul.f32 %v2738_v14, %v2691_v63  ;;  %v2760_v39 = vmul.f32 0.5, %v5275_v10 }
 0x974   : > { %v2755_v34 = vadd.f32 %v2747_v13, %v4784_v36  ;;  %v2686_v36 = vsub.f32 %v5136_v58, %v2657_v37 }
 0x975   : > { %v2733_v22 = vpop.permute.xlu1 %2732 }
 0x976   : > { %v2763_v31 = vmul.f32 0.5, %v2755_v34  ;;  %v2746_v44 = vmul.f32 %v2733_v22, %v2690_v57 }
 0x978   : > { %4002 = vtanh.f32 %v2763_v31  ;;  %v2754_v50 = vadd.f32 %v2746_v44, %v4790_v43 }
 0x979   : > { %v2718_v61 = vpop.permute.xlu1 %2717  ;;  %4004 = vtanh.f32 %v2760_v39 }
 0x97a   : > { %v2762_v17 = vmul.f32 0.5, %v2754_v50  ;;  %v2743_v25 = vmul.f32 %v2718_v61, %v2687_v2 }
 0x97c   : > { %4006 = vtanh.f32 %v2762_v17  ;;  %v2751_v53 = vadd.f32 %v2743_v25, %v4788_v42 }
 0x97d   : > { %v2713_v11 = vpop.permute.xlu1 %2712  ;;  %v4001_v40 = vpop.eup %4000 }
 0x97e   : > { %v2759_v33 = vmul.f32 0.5, %v2751_v53  ;;  %v2742_v28 = vmul.f32 %v2713_v11, %v2686_v36  ;;  %v2777_v42 = vadd.f32 1.0, %v4001_v40  ;;  %v558_v36 = vld [vmem:[%s5600_s11 + $0x8] sm:$0xff]  ;;  %v560_v11 = vld [vmem:[%s5600_s11 + $0x18] sm:$0xff]  ;;  %v1771_v40 = vld [vmem:[%s5602_s13 + $0x10] sm:$0xff] }
 0x980   : > { %4008 = vtanh.f32 %v2759_v33  ;;  %v2750_v43 = vadd.f32 %v2742_v28, %v4819_v6  ;;  %v2785_v56 = vmul.f32 0.5, %v2777_v42  ;;  %v562_v33 = vld [vmem:[%s5600_s11 + $0x28] sm:$0xff]  ;;  %v561_v28 = vld [vmem:[%s5600_s11 + $0x20] sm:$0xff]  ;;  %v1776_v42 = vld [vmem:[%s5602_s13 + $0x38] sm:$0xff] }
 0x981   : > { %v2708_v60 = vpop.permute.xlu1 %2707  ;;  %4010 = vtanh.f32 %v2756_v45  ;;  %v559_v45 = vld [vmem:[%s5600_s11 + $0x10] sm:$0xff] }
 0x982   : > { %v2758_v52 = vmul.f32 0.5, %v2750_v43  ;;  %v2741_v49 = vmul.f32 %v2708_v60, %v2685_v54  ;;  %v564_v54 = vld [vmem:[%s5600_s11 + $0x38] sm:$0xff]  ;;  %v1770_v60 = vld [vmem:[%s5602_s13 + $0x8] sm:$0xff] }
 0x984   : > { %4012 = vtanh.f32 %v2758_v52  ;;  %v2749_v58 = vadd.f32 %v2741_v49, %v4830_v20  ;;  %v2793_v20 = vmul.f32 %v2785_v56, %v2753_v9  ;;  %v1769_v52 = vld [vmem:[%s5602_s13] sm:$0xff]  ;;  %v1772_v49 = vld [vmem:[%s5602_s13 + $0x18] sm:$0xff] }
 0x985   : > { %v4003_v37 = vpop.eup %4002 }
 0x986   : > { %v2779_v19 = vadd.f32 1.0, %v4003_v37  ;;  %v2757_v47 = vmul.f32 0.5, %v2749_v58  ;;  %v4005_v4 = vpop.eup %4004  ;;  %v1773_v37 = vld [vmem:[%s5602_s13 + $0x20] sm:$0xff] }
 0x987   : > { %v2776_v3 = vadd.f32 1.0, %v4005_v4 }
 0x988   : > { %v2787_v27 = vmul.f32 0.5, %v2779_v19  ;;  %4014 = vtanh.f32 %v2757_v47  ;;  %v1775_v19 = vld [vmem:[%s5602_s13 + $0x30] sm:$0xff] }
 0x989   : > { %v4007_v26 = vpop.eup %4006  ;;  %v2784_v55 = vmul.f32 0.5, %v2776_v3 }
 0x98a   : > { %v2795_v30 = vmul.f32 %v2787_v27, %v2755_v34  ;;  %v2778_v6 = vadd.f32 1.0, %v4007_v26 }
 0x98b   : > { %v2792_v22 = vmul.f32 %v2784_v55, %v5275_v10 }
 0x98c   : > { %v2786_v63 = vmul.f32 0.5, %v2778_v6  ;;  %2885 = vmatpush1.msra.mxu1 %v2795_v30  ;;  %2810 = vrot.lane.b32.xlu1 %v2795_v30, %s5619_s20 }
 0x98d   : > { %v4009_v14 = vpop.eup %4008  ;;  %2886 = vmatprep.subr.mxu1 %v4112_v23 }
 0x98e   : > { %v2794_v21 = vmul.f32 %v2786_v63, %v2754_v50  ;;  %v2775_v13 = vadd.f32 1.0, %v4009_v14  ;;  %v4011_v35 = vpop.eup %4010 }
 0x98f   : > { %v2772_v34 = vadd.f32 1.0, %v4011_v35 }
 0x990   : > { %v2783_v57 = vmul.f32 0.5, %v2775_v13  ;;  %2806 = vrot.lane.b32.xlu1 %v2793_v20, %s5619_s20  ;;  %2808 = vrot.lane.b32.xlu0 %v2794_v21, %s5619_s20 }
 0x991   : > { %v4013_v48 = vpop.eup %4012  ;;  %2887 = vmatpush1.msra.mxu1 %v2794_v21  ;;  %v2780_v2 = vmul.f32 0.5, %v2772_v34  ;;  %v2847_v34 = vld [vmem:[%s5599_s10 + $0x18] sm:$0xff] }
 0x992   : > { %v2791_v39 = vmul.f32 %v2783_v57, %v2751_v53  ;;  %v2774_v31 = vadd.f32 1.0, %v4013_v48  ;;  %2888 = vmatprep.subr.mxu1 %v4112_v23  ;;  %v557_v53 = vld [vmem:[%s5600_s11] sm:$0xff] }
 0x993   : > { %2889 = vmatpush1.msra.mxu1 %v2793_v20  ;;  %v2788_v17 = vmul.f32 %v2780_v2, %v5284_v51  ;;  %v2845_v51 = vld [vmem:[%s5599_s10 + $0x8] sm:$0xff]  ;;  %v2844_v57 = vld [vmem:[%s5599_s10] sm:$0xff] }
 0x994   : > { %v2782_v9 = vmul.f32 0.5, %v2774_v31  ;;  %2890 = vmatprep.subr.mxu1 %v4112_v23  ;;  %2804 = vrot.lane.b32.xlu0 %v2792_v22, %s5619_s20  ;;  %v2853_v2 = vld [vmem:[%s5599_s10 + $0x48] sm:$0xff] }
 0x995   : > { %v4015_v44 = vpop.eup %4014  ;;  %2891 = vmatpush1.msra.mxu1 %v2792_v22  ;;  %2802 = vrot.lane.b32.xlu1 %v2791_v39, %s5619_s20 }
 0x996   : > { %v2790_v50 = vmul.f32 %v2782_v9, %v2750_v43  ;;  %v2773_v61 = vadd.f32 1.0, %v4015_v44  ;;  %2892 = vmatprep.subr.mxu1 %v4112_v23  ;;  %3399 = vmatprep.mubr.msk.f32.mxu1 %vm589_vm0, %v2845_v51  ;;  %v563_v43 = vld [vmem:[%s5600_s11 + $0x30] sm:$0xff] }
 0x997   : > { %2893 = vmatpush1.msra.mxu1 %v2791_v39  ;;  %v2850_v44 = vld [vmem:[%s5599_s10 + $0x30] sm:$0xff] }
 0x998   : > { %v2781_v10 = vmul.f32 0.5, %v2773_v61  ;;  %2894 = vmatprep.subr.mxu1 %v4112_v23  ;;  %2800 = vrot.lane.b32.xlu0 %v2790_v50, %s5619_s20 }
 0x999   : > { %2895 = vmatpush1.msra.mxu1 %v2790_v50 }
 0x99a   : > { %v2789_v25 = vmul.f32 %v2781_v10, %v2749_v58  ;;  %2896 = vmatprep.subr.mxu1 %v4112_v23  ;;  %v1774_v58 = vld [vmem:[%s5602_s13 + $0x28] sm:$0xff]  ;;  %v2852_v10 = vld [vmem:[%s5599_s10 + $0x40] sm:$0xff] }
 0x99c   : > { %2796 = vrot.lane.b32.xlu0 %v2788_v17, %s5619_s20  ;;  %2798 = vrot.lane.b32.xlu1 %v2789_v25, %s5619_s20  ;;  %s4113_s20 = smov [#allocation2]  }
 0x99d   : > { %2897 = vmatpush1.msra.mxu1 %v2789_v25  ;;  %s4051_s28 = sshll.u32 %s4113_s20, 4  ;;  %s4052_s28 = int_to_ptr.vmem [resolvable:$false] %s4051_s28 }
 0x99e   : > { %2898 = vmatprep.subr.mxu1 %v4112_v23  ;;  %s4053_s4 = scalar_lea.vmem %s4052_s28, 4096  ;;  %p4054_p0 = scmp.lt.s32.totalorder %s5544_s1, %s4052_s28 }
 0x99f   : > { %2899 = vmatpush1.msra.mxu1 %v2788_v17  ;;  %p4055_p1 = scmp.lt.s32.totalorder %s4053_s4, %s4047_s25 }
 0x9a0   : > { %2832 = vrot.lane.b32.xlu0 %v2794_v21, %s5620_s21  ;;  %2834 = vrot.lane.b32.xlu1 %v2795_v30, %s5620_s21 }
 0x9a1   : > { %2900 = vmatprep.subr.mxu1 %v4112_v23  ;;  %p4056_p2 = por %p4055_p1, %p4054_p0 }
 0x9a3   : > { %p4057_p3 = pnand %p4056_p2, %p4050_p13 }
 0x9a4   : > { %2828 = vrot.lane.b32.xlu0 %v2792_v22, %s5620_s21  ;;  %2830 = vrot.lane.b32.xlu1 %v2793_v20, %s5620_s21  ;;  %v2846_v22 = vld [vmem:[%s5599_s10 + $0x10] sm:$0xff] }
 0x9a8   : > { %2824 = vrot.lane.b32.xlu0 %v2790_v50, %s5620_s21  ;;  %2826 = vrot.lane.b32.xlu1 %v2791_v39, %s5620_s21  ;;  %v2849_v39 = vld [vmem:[%s5599_s10 + $0x28] sm:$0xff] }
 0x9ac   : > { %2820 = vrot.lane.b32.xlu0 %v2788_v17, %s5620_s21  ;;  %2822 = vrot.lane.b32.xlu1 %v2789_v25, %s5620_s21  ;;  %v2855_v17 = vld [vmem:[%s5599_s10 + $0x58] sm:$0xff] }
 0x9b0   : > { %1599 = vperm.xlu0 %3918, %v558_v36   ;;  %1594 = vperm.xlu1 %3919, %v557_v53   ;;  %v2854_v36 = vld [vmem:[%s5599_s10 + $0x50] sm:$0xff]  ;;  %v2857_v53 = vld [vmem:[%s5599_s10 + $0x68] sm:$0xff] }
 0x9b4   : > { %1609 = vperm.xlu0 %3918, %v560_v11   ;;  %1604 = vperm.xlu1 %3919, %v559_v45  }
 0x9b8   : > { %1619 = vperm.xlu0 %3918, %v562_v33   ;;  %1614 = vperm.xlu1 %3919, %v561_v28   ;;  %v2856_v33 = vld [vmem:[%s5599_s10 + $0x60] sm:$0xff]  ;;  %v2859_v28 = vld [vmem:[%s5599_s10 + $0x78] sm:$0xff] }
 0x9bc   : > { %1629 = vperm.xlu0 %3918, %v564_v54   ;;  %1624 = vperm.xlu1 %3919, %v563_v43  }
 0x9c0   : > { %1784 = vperm.xlu0 %3918, %v1770_v60   ;;  %1779 = vperm.xlu1 %3919, %v1769_v52  }
 0x9c4   : > { %1794 = vperm.xlu0 %3918, %v1772_v49   ;;  %1789 = vperm.xlu1 %3919, %v1771_v40  }
 0x9c8   : > { %1804 = vperm.xlu0 %3918, %v1774_v58   ;;  %1799 = vperm.xlu1 %3919, %v1773_v37  }
 0x9cc   : > { %1814 = vperm.xlu0 %3918, %v1776_v42   ;;  %1809 = vperm.xlu1 %3919, %v1775_v19  }
 0x9d0   : > { %3012 = vperm.xlu0 %3918, %v1770_v60   ;;  %3007 = vperm.xlu1 %3919, %v1769_v52   ;;  %v2858_v60 = vld [vmem:[%s5599_s10 + $0x70] sm:$0xff] }
 0x9d4   : > { %3022 = vperm.xlu0 %3918, %v1772_v49   ;;  %3017 = vperm.xlu1 %3919, %v1771_v40  }
 0x9d8   : > { %3032 = vperm.xlu0 %3918, %v1774_v58   ;;  %3027 = vperm.xlu1 %3919, %v1773_v37  }
 0x9dc   : > { %3042 = vperm.xlu0 %3918, %v1776_v42   ;;  %3037 = vperm.xlu1 %3919, %v1775_v19  }
 0x9fe   : > { %v2811_v47 = vpop.permute.xlu1 %2810 }
 0x9ff   : > { %3383 = vmatpush1.msk.msra.mxu1 %vm499_vm3, %v2811_v47 }
 0xa00   : > { %2902 = vmatprep.subr.mxu1 %v4112_v23 }
 0xa02   : > { %v2809_v4 = vpop.permute.xlu0 %2808  ;;  %v2807_v27 = vpop.permute.xlu1 %2806 }
 0xa03   : > { %3384 = vmatpush1.msk.msra.mxu1 %vm499_vm3, %v2809_v4 }
 0xa04   : > { %2904 = vmatprep.subr.mxu1 %v4112_v23 }
 0xa05   : > { %3385 = vmatpush1.msk.msra.mxu1 %vm499_vm3, %v2807_v27 }
 0xa06   : > { %v2805_v26 = vpop.permute.xlu0 %2804  ;;  %2906 = vmatprep.subr.mxu1 %v4112_v23 }
 0xa07   : > { %3386 = vmatpush1.msk.msra.mxu1 %vm499_vm3, %v2805_v26  ;;  %v2803_v56 = vpop.permute.xlu1 %2802 }
 0xa08   : > { %2908 = vmatprep.subr.mxu1 %v4112_v23 }
 0xa09   : > { %3387 = vmatpush1.msk.msra.mxu1 %vm499_vm3, %v2803_v56 }
 0xa0a   : > { %v2801_v3 = vpop.permute.xlu0 %2800  ;;  %2910 = vmatprep.subr.mxu1 %v4112_v23 }
 0xa0b   : > { %3388 = vmatpush1.msk.msra.mxu1 %vm499_vm3, %v2801_v3 }
 0xa0c   : > { %2912 = vmatprep.subr.mxu1 %v4112_v23 }
 0xa0e   : > { %v2797_v30 = vpop.permute.xlu0 %2796  ;;  %v2799_v6 = vpop.permute.xlu1 %2798 }
 0xa0f   : > { %3389 = vmatpush1.msk.msra.mxu1 %vm499_vm3, %v2799_v6 }
 0xa10   : > { %2914 = vmatprep.subr.mxu1 %v4112_v23 }
 0xa11   : > { %3390 = vmatpush1.msk.msra.mxu1 %vm499_vm3, %v2797_v30 }
 0xa12   : > { %v2833_v63 = vpop.permute.xlu0 %2832  ;;  %2932 = vmatprep.subr.mxu1 %v4112_v23  ;;  %v2835_v14 = vpop.permute.xlu1 %2834 }
 0xa13   : > { %3391 = vmatpush2.msk.msra.mxu1 %vm500_vm2, %v2835_v14 }
 0xa14   : > { %2934 = vmatprep.subr.mxu1 %v4112_v23 }
 0xa15   : > { %3392 = vmatpush2.msk.msra.mxu1 %vm500_vm2, %v2833_v63 }
 0xa16   : > { %v2829_v20 = vpop.permute.xlu0 %2828  ;;  %2936 = vmatprep.subr.mxu1 %v4112_v23  ;;  %v2831_v55 = vpop.permute.xlu1 %2830 }
 0xa17   : > { %3393 = vmatpush2.msk.msra.mxu1 %vm500_vm2, %v2831_v55 }
 0xa18   : > { %2938 = vmatprep.subr.mxu1 %v4112_v23 }
 0xa19   : > { %3394 = vmatpush2.msk.msra.mxu1 %vm500_vm2, %v2829_v20 }
 0xa1a   : > { %v2825_v21 = vpop.permute.xlu0 %2824  ;;  %2940 = vmatprep.subr.mxu1 %v4112_v23  ;;  %v2827_v13 = vpop.permute.xlu1 %2826 }
 0xa1b   : > { %3395 = vmatpush2.msk.msra.mxu1 %vm500_vm2, %v2827_v13 }
 0xa1c   : > { %2942 = vmatprep.subr.mxu1 %v4112_v23 }
 0xa1d   : > { %3396 = vmatpush2.msk.msra.mxu1 %vm500_vm2, %v2825_v21 }
 0xa1e   : > { %2944 = vmatprep.subr.mxu1 %v4112_v23  ;;  %v2823_v35 = vpop.permute.xlu1 %2822  ;;  %v2821_v48 = vpop.permute.xlu0 %2820 }
 0xa1f   : > { %3397 = vmatpush2.msk.msra.mxu1 %vm500_vm2, %v2823_v35 }
 0xa20   : > { %2946 = vmatprep.subr.mxu1 %v4112_v23  ;;  %v2848_v23 = vld [vmem:[%s5599_s10 + $0x20] sm:$0xff] }
 0xa21   : > { %3398 = vmatpush2.msk.msra.mxu1 %vm500_vm2, %v2821_v48 }
 0xa22   : > { %2949 = vmatmul.mubr.f32.vlgmr.msra.gmra.mxu1 %v2844_v57 }
 0xa23   : > { %3400 = vmatprep.mubr.msk.f32.mxu1 %vm589_vm0, %v2847_v34 }
 0xa26   : > { %2954 = vmatmul.mubr.f32.gmra.mxu1 %v2846_v22 }
 0xa27   : > { %3401 = vmatprep.mubr.msk.f32.mxu1 %vm589_vm0, %v2849_v39 }
 0xa2a   : > { %2959 = vmatmul.mubr.f32.gmra.mxu1 %v2848_v23 }
 0xa2b   : > { %v5437_v31 = vpop.permute.xlu0 %1599  ;;  %v5439_v9 = vpop.permute.xlu1 %1594  ;;  %3402 = vmatprep.mubr.msk.f32.mxu1 %vm589_vm0, %v2851_v29 }
 0xa2c   : > { %v1728_v52 = vadd.f32 %v5103_v59, %v5437_v31  ;;  %v1723_v49 = vadd.f32 %v5101_v16, %v5439_v9 }
 0xa2e   : > { %2964 = vmatmul.mubr.f32.gmra.mxu1 %v2850_v44 }
 0xa2f   : > { %v5448_v50 = vpop.permute.xlu0 %1609  ;;  %v5450_v61 = vpop.permute.xlu1 %1604  ;;  %3403 = vmatprep.mubr.msk.f32.mxu1 %vm589_vm0, %v2853_v2 }
 0xa30   : > { %v1738_v4 = vadd.f32 %v5107_v1, %v5448_v50  ;;  %v1733_v27 = vadd.f32 %v5105_v41, %v5450_v61 }
 0xa32   : > { %2969 = vmatmul.mubr.f32.gmra.mxu1 %v2852_v10 }
 0xa33   : > { %v5459_v25 = vpop.permute.xlu0 %1619  ;;  %v5461_v51 = vpop.permute.xlu1 %1614  ;;  %3404 = vmatprep.mubr.msk.f32.mxu1 %vm589_vm0, %v2855_v17 }
 0xa34   : > { %v1748_v41 = vadd.f32 %v5111_v8, %v5459_v25  ;;  %v1743_v56 = vadd.f32 %v5109_v24, %v5461_v51 }
 0xa36   : > { %2974 = vmatmul.mubr.f32.gmra.mxu1 %v2854_v36 }
 0xa37   : > { %v5470_v11 = vpop.permute.xlu0 %1629  ;;  %v5472_v45 = vpop.permute.xlu1 %1624  ;;  %3405 = vmatprep.mubr.msk.f32.mxu1 %vm589_vm0, %v2857_v53 }
 0xa38   : > { %v1758_v14 = vadd.f32 %v5115_v12, %v5470_v11  ;;  %v1753_v8 = vadd.f32 %v5113_v18, %v5472_v45 }
 0xa3a   : > { %2979 = vmatmul.mubr.f32.gmra.mxu1 %v2856_v33 }
 0xa3b   : > { %v1785_v54 = vpop.permute.xlu0 %1784  ;;  %v1780_v43 = vpop.permute.xlu1 %1779  ;;  %3406 = vmatprep.mubr.msk.f32.mxu1 %vm589_vm0, %v2859_v28 }
 0xa3c   : > { %v1914_v40 = vadd.f32 %v4721_v0, %v1785_v54  ;;  %v1909_v58 = vadd.f32 %v4723_v5, %v1780_v43 }
 0xa3e   : > { %v1948_v37 = vadd.f32 %v1914_v40, %v1728_v52  ;;  %v1947_v42 = vadd.f32 %v1909_v58, %v1723_v49  ;;  %2984 = vmatmul.mubr.f32.gmra.mxu1 %v2858_v60 }
 0xa3f   : > { %v1795_v19 = vpop.permute.xlu0 %1794  ;;  %v1790_v47 = vpop.permute.xlu1 %1789 }
 0xa40   : > { %1956 = vst [vmem:[%s5498_s0 + $0x8] sm:$0xff] %v1948_v37  ;;  %1955 = vst [vmem:[%s5498_s0] sm:$0xff] %v1947_v42  ;;  %v1924_v0 = vadd.f32 %v4725_v7, %v1795_v19  ;;  %v1919_v5 = vadd.f32 %v4727_v62, %v1790_v47 }
 0xa42   : > { %v1950_v16 = vadd.f32 %v1924_v0, %v1738_v4  ;;  %v1949_v59 = vadd.f32 %v1919_v5, %v1733_v27 }
 0xa43   : > { %v1805_v1 = vpop.permute.xlu0 %1804  ;;  %v1800_v26 = vpop.permute.xlu1 %1799 }
 0xa44   : > { %1958 = vst [vmem:[%s5498_s0 + $0x18] sm:$0xff] %v1950_v16  ;;  %1957 = vst [vmem:[%s5498_s0 + $0x10] sm:$0xff] %v1949_v59  ;;  %v1934_v7 = vadd.f32 %v4732_v15, %v1805_v1  ;;  %v1929_v62 = vadd.f32 %v4737_v32, %v1800_v26  ;;  %v3863_v32 = vpop.f32.mrf.mxu0 }
 0xa46   : > { %v1952_v3 = vadd.f32 %v1934_v7, %v1748_v41  ;;  %v1951_v30 = vadd.f32 %v1929_v62, %v1743_v56  ;;  %v3135_v21 = vpop.f32.mrf.mxu0 }
 0xa47   : > { %v1815_v6 = vpop.permute.xlu0 %1814  ;;  %v1810_v63 = vpop.permute.xlu1 %1809 }
 0xa48   : > { %1960 = vst [vmem:[%s5498_s0 + $0x28] sm:$0xff] %v1952_v3  ;;  %1959 = vst [vmem:[%s5498_s0 + $0x20] sm:$0xff] %v1951_v30  ;;  %v1944_v24 = vadd.f32 %v4742_v38, %v1815_v6  ;;  %v1939_v20 = vadd.f32 %v4747_v46, %v1810_v63  ;;  %v3866_v12 = vpop.f32.mrf.mxu0 }
 0xa4a   : > { %v1954_v55 = vadd.f32 %v1944_v24, %v1758_v14  ;;  %v1953_v15 = vadd.f32 %v1939_v20, %v1753_v8  ;;  %v3145_v46 = vpop.f32.mrf.mxu0 }
 0xa4b   : > { %v3008_v13 = vpop.permute.xlu1 %3007  ;;  %v3013_v48 = vpop.permute.xlu0 %3012 }
 0xa4c   : > { %1962 = vst [vmem:[%s5498_s0 + $0x38] sm:$0xff] %v1954_v55  ;;  %1961 = vst [vmem:[%s5498_s0 + $0x30] sm:$0xff] %v1953_v15  ;;  %v3136_v57 = vadd.f32 %v3135_v21, %v3008_v13  ;;  %v3141_v39 = vadd.f32 %v3863_v32, %v3013_v48  ;;  %v3869_v36 = vpop.f32.mrf.mxu0 }
 0xa4e   : > { %v3155_v60 = vpop.f32.mrf.mxu0 }
 0xa4f   : > { %v3018_v29 = vpop.permute.xlu1 %3017  ;;  %v3023_v53 = vpop.permute.xlu0 %3022 }
 0xa50   : > { %v3146_v17 = vadd.f32 %v3145_v46, %v3018_v29  ;;  %v3151_v43 = vadd.f32 %v3866_v12, %v3023_v53  ;;  %v3872_v42 = vpop.f32.mrf.mxu0 }
 0xa52   : > { %v3165_v5 = vpop.f32.mrf.mxu0 }
 0xa53   : > { %v3028_v52 = vpop.permute.xlu1 %3027  ;;  %v3033_v19 = vpop.permute.xlu0 %3032 }
 0xa54   : > { %v3156_v37 = vadd.f32 %v3155_v60, %v3028_v52  ;;  %v3161_v0 = vadd.f32 %v3869_v36, %v3033_v19 }
 0xa57   : > { %v3038_v16 = vpop.permute.xlu1 %3037  ;;  %v3043_v56 = vpop.permute.xlu0 %3042 }
 0xa58   : > { %v3166_v41 = vadd.f32 %v3165_v5, %v3038_v16  ;;  %v3171_v30 = vadd.f32 %v3872_v42, %v3043_v56 }
 0xae2   : > { %v2950_v35 = vpop.f32.mrf.mxu1 }
 0xae3   : > { %v2951_v18 = vadd.f32 %v2950_v35, %v5439_v9 }
 0xae4   : > { %v2952_v34 = vpop.f32.mrf.mxu1 }
 0xae5   : > { %v3174_v22 = vadd.f32 %v3136_v57, %v2951_v18 }
 0xae6   : > { %v2955_v38 = vpop.f32.mrf.mxu1 }
 0xae7   : > { %3415 = vst [vmem:[%s5498_s0 + $0x40] sm:$0xff] %v3174_v22  ;;  %v2956_v23 = vadd.f32 %v2955_v38, %v5437_v31 }
 0xae8   : > { %v2957_v44 = vpop.f32.mrf.mxu1 }
 0xae9   : > { %v3175_v2 = vadd.f32 %v3141_v39, %v2956_v23 }
 0xaea   : > { %v2960_v10 = vpop.f32.mrf.mxu1 }
 0xaeb   : > { %3416 = vst [vmem:[%s5498_s0 + $0x48] sm:$0xff] %v3175_v2  ;;  %v2961_v9 = vadd.f32 %v2960_v10, %v5450_v61 }
 0xaec   : > { %v2962_v33 = vpop.f32.mrf.mxu1 }
 0xaed   : > { %v3176_v28 = vadd.f32 %v3146_v17, %v2961_v9 }
 0xaee   : > { %v2965_v54 = vpop.f32.mrf.mxu1 }
 0xaef   : > { %3417 = vst [vmem:[%s5498_s0 + $0x50] sm:$0xff] %v3176_v28  ;;  %v2966_v31 = vadd.f32 %v2965_v54, %v5448_v50 }
 0xaf0   : > { %v2967_v49 = vpop.f32.mrf.mxu1 }
 0xaf1   : > { %v3177_v40 = vadd.f32 %v3151_v43, %v2966_v31 }
 0xaf2   : > { %v2970_v58 = vpop.f32.mrf.mxu1 }
 0xaf3   : > { %3418 = vst [vmem:[%s5498_s0 + $0x58] sm:$0xff] %v3177_v40  ;;  %v2971_v61 = vadd.f32 %v2970_v58, %v5461_v51 }
 0xaf4   : > { %v2972_v47 = vpop.f32.mrf.mxu1 }
 0xaf5   : > { %v3178_v4 = vadd.f32 %v3156_v37, %v2971_v61 }
 0xaf6   : > { %v2975_v27 = vpop.f32.mrf.mxu1 }
 0xaf7   : > { %3419 = vst [vmem:[%s5498_s0 + $0x60] sm:$0xff] %v3178_v4  ;;  %v2976_v50 = vadd.f32 %v2975_v27, %v5459_v25 }
 0xaf8   : > { %v2977_v59 = vpop.f32.mrf.mxu1 }
 0xaf9   : > { %v3179_v1 = vadd.f32 %v3161_v0, %v2976_v50 }
 0xafa   : > { %v2980_v26 = vpop.f32.mrf.mxu1 }
 0xafb   : > { %3420 = vst [vmem:[%s5498_s0 + $0x68] sm:$0xff] %v3179_v1  ;;  %v2981_v51 = vadd.f32 %v2980_v26, %v5472_v45 }
 0xafc   : > { %v2982_v7 = vpop.f32.mrf.mxu1 }
 0xafd   : > { %v3180_v62 = vadd.f32 %v3166_v41, %v2981_v51 }
 0xafe   : > { %v2985_v3 = vpop.f32.mrf.mxu1 }
 0xaff   : > { %3421 = vst [vmem:[%s5498_s0 + $0x70] sm:$0xff] %v3180_v62  ;;  %v2986_v25 = vadd.f32 %v2985_v3, %v5470_v11 }
 0xb00   : > { %v2987_v6 = vpop.f32.mrf.mxu1 }
 0xb01   : > { %v3181_v45 = vadd.f32 %v3171_v30, %v2986_v25 }
 0xb03   : > { %3422 = vst [vmem:[%s5498_s0 + $0x78] sm:$0xff] %v3181_v45 }
 0xb04   : > { %4060 = shalt.err (!%p4057_p3)
}
 0xb05   : > { %s4061_s22 = scalar_lea.hbm %s5542_s26, 2048  ;;  %s4065_s3 = scalar_lea.hbm %s5603_s14, 4096 }
 0xb06   : > { %p4062_p4 = scmp.ne.s32.totalorder %s5542_s26, %s4061_s22  ;;  %p4066_p9 = scmp.lt.s32.totalorder %s5542_s26, %s5603_s14 }
 0xb07   : > { %p4067_p10 = scmp.lt.s32.totalorder %s4065_s3, %s4061_s22 }
 0xb08   : > { %p4063_p7 = pnand %p4062_p4, %p4229_p5 }
 0xb09   : > { %p4068_p11 = por %p4067_p10, %p4066_p9 }
 0xb0a   : > { %p4064_p8 = pneg %p4063_p7 }
 0xb0c   : > { %p4069_p12 = pnand %p4068_p11, %p4064_p8 }
 0xb0e   : > { %4072 = shalt.err (!%p4069_p12)
}
 0xb0f   : > { %s4114_s25 = smov 128   ;;  %s4115_s20 = smov 8  }
 0xb10   : > { %3873 = dma.vmem_to_hbm [thread:$0]  (%p4229_p5), %s5544_s1, 2048, %s5542_s26, %s5549_s17, %s4114_s25, %s4114_s25, %s4115_s20  }
 0xb11 PF: > { %p3879_p13 = scmp.ge.s32.totalorder %s4107_s16, 2  ;;  %s3221_s28 = sand.u32 1, %s4095_s29  }
 0xb12   : > { %s3222_s4 = scalar_lea.sflag [#allocation3], %s3221_s28 }
 0xb13   : > { %p3876_p0 = pnand %p3879_p13, %p4233_p6 }
 0xb15   : > { %p3877_p1 = pneg %p3876_p0 }
 0xb17   : > { %4090 = dma.done.wait (%p3877_p1), %s3222_s4, 2048  }
 0xb18   : > { %4092 = vsyncadd (%p3877_p1), %s3222_s4, 4294965248  ;;  %s5621_s22 = sld [smem:[#allocation5_spill]]  ;;  %p24_p2 = scmp.ge.s32.totalorder %s4216_s19, 4  }
 0xb19   : > { %s5622_s29 = smov %s4099_s30  ;;  %s5623_s30 = smov %s4103_s15 }
 0xb1a   : > { %s5625_s16 = smov %s4216_s19  ;;  %26 = sbr.rel (!%p24_p2) target bundleno = 8 (0x8), region = 117 }
 0xb1e   : > { %s5624_s15 = smov %s5621_s22 }
 0xb1f   :  { %3227 = vsyncpa [#allocation3], 1 }
 0xb20   :  { %3229 = vsyncpa [#allocation3 + $0x1], 1 }

</bundles_post_ra>
